<compile_context>
chip_gen: v7x
topology: tpu7x:2x2x1
jax: 0.10.0
libtpu: 0.0.40
codegen_flags: <defaults>
</compile_context>

<pallas_src>
import functools

import jax
import jax.numpy as jnp
import numpy as np
from jax.experimental import pallas as pl
from jax.experimental.pallas import tpu as pltpu


# ----------------------------- interleave variants ---------------------------
def _interleave_planes_fast(planes, f):
    """planes: list of f arrays (GB, H, W) -> (GB, H, f*W), out[..., w*f+fx] = planes[fx][..., w].

    One stack along a new minor axis + one minor-dim merge reshape.
    """
    GB, H, W = planes[0].shape
    return jnp.stack(planes, axis=-1).reshape(GB, H, f * W)


def _interleave_planes_safe(planes, f):
    """Same contract as _interleave_planes_fast, built only from width-1 lane
    slices + a concatenate (known to lower on all generations; slower)."""
    GB, H, W = planes[0].shape
    pieces = []
    for w in range(W):
        for fx in range(f):
            pieces.append(planes[fx][:, :, w:w + 1])
    return jnp.concatenate(pieces, axis=-1)


# ---------------------------------- kernel -----------------------------------
def _unsqueeze_kernel(x_ref, o_ref, *, factor, interleave):
    """Depth-to-space for one block of groups (group = (batch, out-channel)).

    x_ref : (GB, f*f, H, W)   input block.
    o_ref : (GB, H, f*f*W)    output block; minor index m = fy*(f*W) + w*f + fx,
                              a contiguous view of the final (B, Co, f*H, f*W).
    """
    f = factor
    GB, f2, H, W = x_ref.shape

    # If a per-fy stripe is at least 128 lanes wide, store stripes directly
    # (bounds vreg live ranges).  Otherwise concatenate the f stripes and do a
    # single, wider (lane-dense) store to avoid masked partial stores.
    wide_store = (f * W) >= 128

    stripes = []
    for fy in range(f):
        planes = [x_ref[:, fy * f + fx, :, :] for fx in range(f)]   # (GB, H, W)
        stripe = interleave(planes, f)                               # (GB, H, f*W)
        if wide_store:
            o_ref[:, :, fy * f * W:(fy + 1) * f * W] = stripe
        else:
            stripes.append(stripe)
    if not wide_store:
        o_ref[...] = jnp.concatenate(stripes, axis=-1)


# --------------------------------- wrapper ------------------------------------
def _padded_block_bytes(shape, itemsize):
    """VMEM footprint of a block including dtype-aware minor-tile padding.

    Sublane tile is 8 for 4-byte, 16 for 2-byte, 32 for 1-byte dtypes; lane
    tile is 128.
    """
    *lead, s, l = shape
    sub = max(8, 32 // max(1, itemsize))
    s = -(-s // sub) * sub
    l = -(-l // 128) * 128
    n = itemsize * s * l
    for d in lead:
        n *= d
    return n


def _vmem_budgets():
    """(per-block budget, vmem_limit_bytes), derived from this chip's VMEM."""
    vmem_cap = 128 * 1024 * 1024
    try:
        info = pltpu.get_tpu_info()
        cap = int(getattr(info, "vmem_capacity_bytes", 0) or 0)
        if cap > 0:
            vmem_cap = cap
    except Exception:
        pass
    # ~16 MiB per (in + out) block on 128-MiB parts, tighter on v7x (64 MiB),
    # leaving room for double buffering of both input and output blocks.
    block_budget = min(16 << 20, vmem_cap // 6)
    vmem_limit = min(int(vmem_cap * 0.45), 2 * block_budget + (4 << 20))
    vmem_limit = max(vmem_limit, 16 << 20)
    return block_budget, vmem_limit


def _pick_group_block(n_groups, bytes_per_group, vmem_budget):
    """Largest divisor of n_groups under the VMEM budget; keeps >=2 grid steps
    and prefers an even grid-step count (v7x has 2 TensorCores)."""
    cap = max(1, vmem_budget // max(1, bytes_per_group))
    if n_groups >= 2:
        cap = min(cap, max(1, n_groups // 2))   # >=2 steps: pipelining + megacore
    divisors = [d for d in range(1, n_groups + 1) if n_groups % d == 0 and d <= cap]
    best = max(divisors)
    even = [d for d in divisors if (n_groups // d) % 2 == 0]
    if even:
        best_even = max(even)
        if best_even * 2 >= best:               # accept <=2x smaller block for balance
            best = best_even
    return best


def unsqueeze_forward(x, factor=2):
    """Pallas TPU forward of `Unsqueeze` (NCHW depth-to-space)."""
    if x.ndim != 4:
        raise NotImplementedError
    assert isinstance(factor, int) and factor > 1
    B, C, H, W = x.shape
    f = factor
    f2 = f * f
    assert C >= f2 and C % f2 == 0
    Co = C // f2
    G = B * Co

    xg = x.reshape(G, f2, H, W)                         # free contiguous view

    itemsize = jnp.dtype(x.dtype).itemsize
    block_budget, vmem_limit = _vmem_budgets()
    per_group = (_padded_block_bytes((f2, H, W), itemsize)
                 + _padded_block_bytes((H, f2 * W), itemsize))
    GB = _pick_group_block(G, per_group, block_budget)
    grid = (G // GB,)

    def run(interleave):
        return pl.pallas_call(
            functools.partial(_unsqueeze_kernel, factor=f, interleave=interleave),
            out_shape=jax.ShapeDtypeStruct((G, H, f2 * W), x.dtype),
            grid=grid,
            in_specs=[pl.BlockSpec((GB, f2, H, W), lambda i: (i, 0, 0, 0))],
            out_specs=pl.BlockSpec((GB, H, f2 * W), lambda i: (i, 0, 0)),
            compiler_params=pltpu.CompilerParams(
                dimension_semantics=("parallel",),
                vmem_limit_bytes=vmem_limit),
        )(xg)

    try:
        out = run(_interleave_planes_fast)
        out = jax.block_until_ready(out)
    except Exception:
        # TODO(synk): stack+minor-reshape interleave rejected by Mosaic on this
        # jax/libtpu; fall back to the (slower) slice+concat interleave.
        out = run(_interleave_planes_safe)

    return out.reshape(B, Co, f * H, f * W)             # free contiguous view


# ----------------------------- pure-JAX reference ------------------------------
def unsqueeze_reference(x, factor=2):
    B, C, H, W = x.shape
    f = factor
    y = x.reshape(B, C // (f * f), f, f, H, W)
    y = jnp.transpose(y, (0, 1, 4, 2, 5, 3))
    return y.reshape(B, C // (f * f), H * f, W * f)


# ------------------------------------ main --------------------------------------
if __name__ == "__main__":
    key = jax.random.PRNGKey(0)
    B, C, H, W = 2, 8, 16, 16                 # C % factor^2 == 0, as the module requires
    x = jax.random.normal(key, (B, C, H, W), jnp.float32)

    out = unsqueeze_forward(x, factor=2)
    out = jax.block_until_ready(out)
    assert out.shape == (B, C // 4, 2 * H, 2 * W)

    ref = unsqueeze_reference(x, factor=2)
    np.testing.assert_array_equal(np.asarray(out), np.asarray(ref))
    print("KERNEL_OK")
</pallas_src>

<mosaic_0001>
module attributes {stable_mosaic.version = 11 : i64} {
  func.func @_unsqueeze_kernel(%arg0: i32, %arg1: memref<2x4x16x16xf32, #tpu.memory_space<vmem>>, %arg2: memref<2x16x64xf32, #tpu.memory_space<vmem>>) attributes {dimension_semantics = [#tpu.dimension_semantics<parallel>], iteration_bounds = array<i64: 2>, scalar_prefetch = 0 : i64, scratch_operands = 0 : i64, tpu.core_type = #tpu.core_type<tc>, window_params = [{transform_indices = @transform_0, window_bounds = array<i64: 2, 4, 16, 16>}, {transform_indices = @transform_1, window_bounds = array<i64: 2, 16, 64>}]} {
    %c0 = arith.constant 0 : index
    %c0_0 = arith.constant 0 : index
    %c0_1 = arith.constant 0 : index
    %c0_2 = arith.constant 0 : index
    %0 = vector.load %arg1[%c0, %c0_0, %c0_1, %c0_2] : memref<2x4x16x16xf32, #tpu.memory_space<vmem>>, vector<2x1x16x16xf32>
    %1 = vector.shape_cast %0 : vector<2x1x16x16xf32> to vector<2x16x16xf32>
    %c0_3 = arith.constant 0 : index
    %c1 = arith.constant 1 : index
    %c0_4 = arith.constant 0 : index
    %c0_5 = arith.constant 0 : index
    %2 = vector.load %arg1[%c0_3, %c1, %c0_4, %c0_5] : memref<2x4x16x16xf32, #tpu.memory_space<vmem>>, vector<2x1x16x16xf32>
    %3 = vector.shape_cast %2 : vector<2x1x16x16xf32> to vector<2x16x16xf32>
    %4 = vector.shape_cast %1 : vector<2x16x16xf32> to vector<2x16x16x1xf32>
    %5 = vector.shape_cast %3 : vector<2x16x16xf32> to vector<2x16x16x1xf32>
    %6 = tpu.concatenate %4, %5 in 3 : vector<2x16x16x1xf32>, vector<2x16x16x1xf32> -> vector<2x16x16x2xf32>
    %7 = vector.shape_cast %6 : vector<2x16x16x2xf32> to vector<2x16x32xf32>
    %c0_6 = arith.constant 0 : index
    %c2 = arith.constant 2 : index
    %c0_7 = arith.constant 0 : index
    %c0_8 = arith.constant 0 : index
    %8 = vector.load %arg1[%c0_6, %c2, %c0_7, %c0_8] : memref<2x4x16x16xf32, #tpu.memory_space<vmem>>, vector<2x1x16x16xf32>
    %9 = vector.shape_cast %8 : vector<2x1x16x16xf32> to vector<2x16x16xf32>
    %c0_9 = arith.constant 0 : index
    %c3 = arith.constant 3 : index
    %c0_10 = arith.constant 0 : index
    %c0_11 = arith.constant 0 : index
    %10 = vector.load %arg1[%c0_9, %c3, %c0_10, %c0_11] : memref<2x4x16x16xf32, #tpu.memory_space<vmem>>, vector<2x1x16x16xf32>
    %11 = vector.shape_cast %10 : vector<2x1x16x16xf32> to vector<2x16x16xf32>
    %12 = vector.shape_cast %9 : vector<2x16x16xf32> to vector<2x16x16x1xf32>
    %13 = vector.shape_cast %11 : vector<2x16x16xf32> to vector<2x16x16x1xf32>
    %14 = tpu.concatenate %12, %13 in 3 : vector<2x16x16x1xf32>, vector<2x16x16x1xf32> -> vector<2x16x16x2xf32>
    %15 = vector.shape_cast %14 : vector<2x16x16x2xf32> to vector<2x16x32xf32>
    %16 = tpu.concatenate %7, %15 in 2 : vector<2x16x32xf32>, vector<2x16x32xf32> -> vector<2x16x64xf32>
    %c0_12 = arith.constant 0 : index
    %c0_13 = arith.constant 0 : index
    %c0_14 = arith.constant 0 : index
    %17 = vector.load %arg2[%c0_12, %c0_13, %c0_14] : memref<2x16x64xf32, #tpu.memory_space<vmem>>, vector<2x16x64xf32>
    tpu.vector_store %arg2[%c0_12, %c0_13, %c0_14], %16 {strides = array<i32>} : memref<2x16x64xf32, #tpu.memory_space<vmem>>, vector<2x16x64xf32>,
    return
  }
  func.func @transform_0(%arg0: i32) -> (i32, i32, i32, i32) {
    %c0_i32 = arith.constant 0 : i32
    %c0_i32_0 = arith.constant 0 : i32
    %c0_i32_1 = arith.constant 0 : i32
    %c0_i32_2 = arith.constant 0 : i32
    return %arg0, %c0_i32, %c0_i32_0, %c0_i32_1 : i32, i32, i32, i32
  }
  func.func @transform_1(%arg0: i32) -> (i32, i32, i32) {
    %c0_i32 = arith.constant 0 : i32
    %c0_i32_0 = arith.constant 0 : i32
    %c0_i32_1 = arith.constant 0 : i32
    return %arg0, %c0_i32, %c0_i32_0 : i32, i32, i32
  }
}

module attributes {stable_mosaic.version = 11 : i64} {
  func.func @_unsqueeze_kernel(%arg0: i32, %arg1: memref<2x4x16x16xf32, #tpu.memory_space<vmem>>, %arg2: memref<2x16x64xf32, #tpu.memory_space<vmem>>) attributes {dimension_semantics = [#tpu.dimension_semantics<parallel>], iteration_bounds = array<i64: 2>, scalar_prefetch = 0 : i64, scratch_operands = 0 : i64, tpu.core_type = #tpu.core_type<tc>, window_params = [{transform_indices = @transform_0, window_bounds = array<i64: 2, 4, 16, 16>}, {transform_indices = @transform_1, window_bounds = array<i64: 2, 16, 64>}]} {
    %c0 = arith.constant 0 : index
    %c0_0 = arith.constant 0 : index
    %c0_1 = arith.constant 0 : index
    %c0_2 = arith.constant 0 : index
    %0 = vector.load %arg1[%c0, %c0_0, %c0_1, %c0_2] : memref<2x4x16x16xf32, #tpu.memory_space<vmem>>, vector<2x1x16x16xf32>
    %1 = vector.shape_cast %0 : vector<2x1x16x16xf32> to vector<2x16x16xf32>
    %c0_3 = arith.constant 0 : index
    %c1 = arith.constant 1 : index
    %c0_4 = arith.constant 0 : index
    %c0_5 = arith.constant 0 : index
    %2 = vector.load %arg1[%c0_3, %c1, %c0_4, %c0_5] : memref<2x4x16x16xf32, #tpu.memory_space<vmem>>, vector<2x1x16x16xf32>
    %3 = vector.shape_cast %2 : vector<2x1x16x16xf32> to vector<2x16x16xf32>
    %4 = vector.extract_strided_slice %1 {offsets = [0, 0, 0], sizes = [2, 16, 1], strides = [1, 1, 1]} : vector<2x16x16xf32> to vector<2x16x1xf32>
    %5 = vector.extract_strided_slice %3 {offsets = [0, 0, 0], sizes = [2, 16, 1], strides = [1, 1, 1]} : vector<2x16x16xf32> to vector<2x16x1xf32>
    %6 = vector.extract_strided_slice %1 {offsets = [0, 0, 1], sizes = [2, 16, 1], strides = [1, 1, 1]} : vector<2x16x16xf32> to vector<2x16x1xf32>
    %7 = vector.extract_strided_slice %3 {offsets = [0, 0, 1], sizes = [2, 16, 1], strides = [1, 1, 1]} : vector<2x16x16xf32> to vector<2x16x1xf32>
    %8 = vector.extract_strided_slice %1 {offsets = [0, 0, 2], sizes = [2, 16, 1], strides = [1, 1, 1]} : vector<2x16x16xf32> to vector<2x16x1xf32>
    %9 = vector.extract_strided_slice %3 {offsets = [0, 0, 2], sizes = [2, 16, 1], strides = [1, 1, 1]} : vector<2x16x16xf32> to vector<2x16x1xf32>
    %10 = vector.extract_strided_slice %1 {offsets = [0, 0, 3], sizes = [2, 16, 1], strides = [1, 1, 1]} : vector<2x16x16xf32> to vector<2x16x1xf32>
    %11 = vector.extract_strided_slice %3 {offsets = [0, 0, 3], sizes = [2, 16, 1], strides = [1, 1, 1]} : vector<2x16x16xf32> to vector<2x16x1xf32>
    %12 = vector.extract_strided_slice %1 {offsets = [0, 0, 4], sizes = [2, 16, 1], strides = [1, 1, 1]} : vector<2x16x16xf32> to vector<2x16x1xf32>
    %13 = vector.extract_strided_slice %3 {offsets = [0, 0, 4], sizes = [2, 16, 1], strides = [1, 1, 1]} : vector<2x16x16xf32> to vector<2x16x1xf32>
    %14 = vector.extract_strided_slice %1 {offsets = [0, 0, 5], sizes = [2, 16, 1], strides = [1, 1, 1]} : vector<2x16x16xf32> to vector<2x16x1xf32>
    %15 = vector.extract_strided_slice %3 {offsets = [0, 0, 5], sizes = [2, 16, 1], strides = [1, 1, 1]} : vector<2x16x16xf32> to vector<2x16x1xf32>
    %16 = vector.extract_strided_slice %1 {offsets = [0, 0, 6], sizes = [2, 16, 1], strides = [1, 1, 1]} : vector<2x16x16xf32> to vector<2x16x1xf32>
    %17 = vector.extract_strided_slice %3 {offsets = [0, 0, 6], sizes = [2, 16, 1], strides = [1, 1, 1]} : vector<2x16x16xf32> to vector<2x16x1xf32>
    %18 = vector.extract_strided_slice %1 {offsets = [0, 0, 7], sizes = [2, 16, 1], strides = [1, 1, 1]} : vector<2x16x16xf32> to vector<2x16x1xf32>
    %19 = vector.extract_strided_slice %3 {offsets = [0, 0, 7], sizes = [2, 16, 1], strides = [1, 1, 1]} : vector<2x16x16xf32> to vector<2x16x1xf32>
    %20 = vector.extract_strided_slice %1 {offsets = [0, 0, 8], sizes = [2, 16, 1], strides = [1, 1, 1]} : vector<2x16x16xf32> to vector<2x16x1xf32>
    %21 = vector.extract_strided_slice %3 {offsets = [0, 0, 8], sizes = [2, 16, 1], strides = [1, 1, 1]} : vector<2x16x16xf32> to vector<2x16x1xf32>
    %22 = vector.extract_strided_slice %1 {offsets = [0, 0, 9], sizes = [2, 16, 1], strides = [1, 1, 1]} : vector<2x16x16xf32> to vector<2x16x1xf32>
    %23 = vector.extract_strided_slice %3 {offsets = [0, 0, 9], sizes = [2, 16, 1], strides = [1, 1, 1]} : vector<2x16x16xf32> to vector<2x16x1xf32>
    %24 = vector.extract_strided_slice %1 {offsets = [0, 0, 10], sizes = [2, 16, 1], strides = [1, 1, 1]} : vector<2x16x16xf32> to vector<2x16x1xf32>
    %25 = vector.extract_strided_slice %3 {offsets = [0, 0, 10], sizes = [2, 16, 1], strides = [1, 1, 1]} : vector<2x16x16xf32> to vector<2x16x1xf32>
    %26 = vector.extract_strided_slice %1 {offsets = [0, 0, 11], sizes = [2, 16, 1], strides = [1, 1, 1]} : vector<2x16x16xf32> to vector<2x16x1xf32>
    %27 = vector.extract_strided_slice %3 {offsets = [0, 0, 11], sizes = [2, 16, 1], strides = [1, 1, 1]} : vector<2x16x16xf32> to vector<2x16x1xf32>
    %28 = vector.extract_strided_slice %1 {offsets = [0, 0, 12], sizes = [2, 16, 1], strides = [1, 1, 1]} : vector<2x16x16xf32> to vector<2x16x1xf32>
    %29 = vector.extract_strided_slice %3 {offsets = [0, 0, 12], sizes = [2, 16, 1], strides = [1, 1, 1]} : vector<2x16x16xf32> to vector<2x16x1xf32>
    %30 = vector.extract_strided_slice %1 {offsets = [0, 0, 13], sizes = [2, 16, 1], strides = [1, 1, 1]} : vector<2x16x16xf32> to vector<2x16x1xf32>
    %31 = vector.extract_strided_slice %3 {offsets = [0, 0, 13], sizes = [2, 16, 1], strides = [1, 1, 1]} : vector<2x16x16xf32> to vector<2x16x1xf32>
    %32 = vector.extract_strided_slice %1 {offsets = [0, 0, 14], sizes = [2, 16, 1], strides = [1, 1, 1]} : vector<2x16x16xf32> to vector<2x16x1xf32>
    %33 = vector.extract_strided_slice %3 {offsets = [0, 0, 14], sizes = [2, 16, 1], strides = [1, 1, 1]} : vector<2x16x16xf32> to vector<2x16x1xf32>
    %34 = vector.extract_strided_slice %1 {offsets = [0, 0, 15], sizes = [2, 16, 1], strides = [1, 1, 1]} : vector<2x16x16xf32> to vector<2x16x1xf32>
    %35 = vector.extract_strided_slice %3 {offsets = [0, 0, 15], sizes = [2, 16, 1], strides = [1, 1, 1]} : vector<2x16x16xf32> to vector<2x16x1xf32>
    %36 = tpu.concatenate %4, %5, %6, %7, %8, %9, %10, %11, %12, %13, %14, %15, %16, %17, %18, %19 in 2 : vector<2x16x1xf32>, vector<2x16x1xf32>, vector<2x16x1xf32>, vector<2x16x1xf32>, vector<2x16x1xf32>, vector<2x16x1xf32>, vector<2x16x1xf32>, vector<2x16x1xf32>, vector<2x16x1xf32>, vector<2x16x1xf32>, vector<2x16x1xf32>, vector<2x16x1xf32>, vector<2x16x1xf32>, vector<2x16x1xf32>, vector<2x16x1xf32>, vector<2x16x1xf32> -> vector<2x16x16xf32>
    %37 = tpu.concatenate %20, %21, %22, %23, %24, %25, %26, %27, %28, %29, %30, %31, %32, %33, %34, %35 in 2 : vector<2x16x1xf32>, vector<2x16x1xf32>, vector<2x16x1xf32>, vector<2x16x1xf32>, vector<2x16x1xf32>, vector<2x16x1xf32>, vector<2x16x1xf32>, vector<2x16x1xf32>, vector<2x16x1xf32>, vector<2x16x1xf32>, vector<2x16x1xf32>, vector<2x16x1xf32>, vector<2x16x1xf32>, vector<2x16x1xf32>, vector<2x16x1xf32>, vector<2x16x1xf32> -> vector<2x16x16xf32>
    %38 = tpu.concatenate %36, %37 in 2 : vector<2x16x16xf32>, vector<2x16x16xf32> -> vector<2x16x32xf32>
    %c0_6 = arith.constant 0 : index
    %c2 = arith.constant 2 : index
    %c0_7 = arith.constant 0 : index
    %c0_8 = arith.constant 0 : index
    %39 = vector.load %arg1[%c0_6, %c2, %c0_7, %c0_8] : memref<2x4x16x16xf32, #tpu.memory_space<vmem>>, vector<2x1x16x16xf32>
    %40 = vector.shape_cast %39 : vector<2x1x16x16xf32> to vector<2x16x16xf32>
    %c0_9 = arith.constant 0 : index
    %c3 = arith.constant 3 : index
    %c0_10 = arith.constant 0 : index
    %c0_11 = arith.constant 0 : index
    %41 = vector.load %arg1[%c0_9, %c3, %c0_10, %c0_11] : memref<2x4x16x16xf32, #tpu.memory_space<vmem>>, vector<2x1x16x16xf32>
    %42 = vector.shape_cast %41 : vector<2x1x16x16xf32> to vector<2x16x16xf32>
    %43 = vector.extract_strided_slice %40 {offsets = [0, 0, 0], sizes = [2, 16, 1], strides = [1, 1, 1]} : vector<2x16x16xf32> to vector<2x16x1xf32>
    %44 = vector.extract_strided_slice %42 {offsets = [0, 0, 0], sizes = [2, 16, 1], strides = [1, 1, 1]} : vector<2x16x16xf32> to vector<2x16x1xf32>
    %45 = vector.extract_strided_slice %40 {offsets = [0, 0, 1], sizes = [2, 16, 1], strides = [1, 1, 1]} : vector<2x16x16xf32> to vector<2x16x1xf32>
    %46 = vector.extract_strided_slice %42 {offsets = [0, 0, 1], sizes = [2, 16, 1], strides = [1, 1, 1]} : vector<2x16x16xf32> to vector<2x16x1xf32>
    %47 = vector.extract_strided_slice %40 {offsets = [0, 0, 2], sizes = [2, 16, 1], strides = [1, 1, 1]} : vector<2x16x16xf32> to vector<2x16x1xf32>
    %48 = vector.extract_strided_slice %42 {offsets = [0, 0, 2], sizes = [2, 16, 1], strides = [1, 1, 1]} : vector<2x16x16xf32> to vector<2x16x1xf32>
    %49 = vector.extract_strided_slice %40 {offsets = [0, 0, 3], sizes = [2, 16, 1], strides = [1, 1, 1]} : vector<2x16x16xf32> to vector<2x16x1xf32>
    %50 = vector.extract_strided_slice %42 {offsets = [0, 0, 3], sizes = [2, 16, 1], strides = [1, 1, 1]} : vector<2x16x16xf32> to vector<2x16x1xf32>
    %51 = vector.extract_strided_slice %40 {offsets = [0, 0, 4], sizes = [2, 16, 1], strides = [1, 1, 1]} : vector<2x16x16xf32> to vector<2x16x1xf32>
    %52 = vector.extract_strided_slice %42 {offsets = [0, 0, 4], sizes = [2, 16, 1], strides = [1, 1, 1]} : vector<2x16x16xf32> to vector<2x16x1xf32>
    %53 = vector.extract_strided_slice %40 {offsets = [0, 0, 5], sizes = [2, 16, 1], strides = [1, 1, 1]} : vector<2x16x16xf32> to vector<2x16x1xf32>
    %54 = vector.extract_strided_slice %42 {offsets = [0, 0, 5], sizes = [2, 16, 1], strides = [1, 1, 1]} : vector<2x16x16xf32> to vector<2x16x1xf32>
    %55 = vector.extract_strided_slice %40 {offsets = [0, 0, 6], sizes = [2, 16, 1], strides = [1, 1, 1]} : vector<2x16x16xf32> to vector<2x16x1xf32>
    %56 = vector.extract_strided_slice %42 {offsets = [0, 0, 6], sizes = [2, 16, 1], strides = [1, 1, 1]} : vector<2x16x16xf32> to vector<2x16x1xf32>
    %57 = vector.extract_strided_slice %40 {offsets = [0, 0, 7], sizes = [2, 16, 1], strides = [1, 1, 1]} : vector<2x16x16xf32> to vector<2x16x1xf32>
    %58 = vector.extract_strided_slice %42 {offsets = [0, 0, 7], sizes = [2, 16, 1], strides = [1, 1, 1]} : vector<2x16x16xf32> to vector<2x16x1xf32>
    %59 = vector.extract_strided_slice %40 {offsets = [0, 0, 8], sizes = [2, 16, 1], strides = [1, 1, 1]} : vector<2x16x16xf32> to vector<2x16x1xf32>
    %60 = vector.extract_strided_slice %42 {offsets = [0, 0, 8], sizes = [2, 16, 1], strides = [1, 1, 1]} : vector<2x16x16xf32> to vector<2x16x1xf32>
    %61 = vector.extract_strided_slice %40 {offsets = [0, 0, 9], sizes = [2, 16, 1], strides = [1, 1, 1]} : vector<2x16x16xf32> to vector<2x16x1xf32>
    %62 = vector.extract_strided_slice %42 {offsets = [0, 0, 9], sizes = [2, 16, 1], strides = [1, 1, 1]} : vector<2x16x16xf32> to vector<2x16x1xf32>
    %63 = vector.extract_strided_slice %40 {offsets = [0, 0, 10], sizes = [2, 16, 1], strides = [1, 1, 1]} : vector<2x16x16xf32> to vector<2x16x1xf32>
    %64 = vector.extract_strided_slice %42 {offsets = [0, 0, 10], sizes = [2, 16, 1], strides = [1, 1, 1]} : vector<2x16x16xf32> to vector<2x16x1xf32>
    %65 = vector.extract_strided_slice %40 {offsets = [0, 0, 11], sizes = [2, 16, 1], strides = [1, 1, 1]} : vector<2x16x16xf32> to vector<2x16x1xf32>
    %66 = vector.extract_strided_slice %42 {offsets = [0, 0, 11], sizes = [2, 16, 1], strides = [1, 1, 1]} : vector<2x16x16xf32> to vector<2x16x1xf32>
    %67 = vector.extract_strided_slice %40 {offsets = [0, 0, 12], sizes = [2, 16, 1], strides = [1, 1, 1]} : vector<2x16x16xf32> to vector<2x16x1xf32>
    %68 = vector.extract_strided_slice %42 {offsets = [0, 0, 12], sizes = [2, 16, 1], strides = [1, 1, 1]} : vector<2x16x16xf32> to vector<2x16x1xf32>
    %69 = vector.extract_strided_slice %40 {offsets = [0, 0, 13], sizes = [2, 16, 1], strides = [1, 1, 1]} : vector<2x16x16xf32> to vector<2x16x1xf32>
    %70 = vector.extract_strided_slice %42 {offsets = [0, 0, 13], sizes = [2, 16, 1], strides = [1, 1, 1]} : vector<2x16x16xf32> to vector<2x16x1xf32>
    %71 = vector.extract_strided_slice %40 {offsets = [0, 0, 14], sizes = [2, 16, 1], strides = [1, 1, 1]} : vector<2x16x16xf32> to vector<2x16x1xf32>
    %72 = vector.extract_strided_slice %42 {offsets = [0, 0, 14], sizes = [2, 16, 1], strides = [1, 1, 1]} : vector<2x16x16xf32> to vector<2x16x1xf32>
    %73 = vector.extract_strided_slice %40 {offsets = [0, 0, 15], sizes = [2, 16, 1], strides = [1, 1, 1]} : vector<2x16x16xf32> to vector<2x16x1xf32>
    %74 = vector.extract_strided_slice %42 {offsets = [0, 0, 15], sizes = [2, 16, 1], strides = [1, 1, 1]} : vector<2x16x16xf32> to vector<2x16x1xf32>
    %75 = tpu.concatenate %43, %44, %45, %46, %47, %48, %49, %50, %51, %52, %53, %54, %55, %56, %57, %58 in 2 : vector<2x16x1xf32>, vector<2x16x1xf32>, vector<2x16x1xf32>, vector<2x16x1xf32>, vector<2x16x1xf32>, vector<2x16x1xf32>, vector<2x16x1xf32>, vector<2x16x1xf32>, vector<2x16x1xf32>, vector<2x16x1xf32>, vector<2x16x1xf32>, vector<2x16x1xf32>, vector<2x16x1xf32>, vector<2x16x1xf32>, vector<2x16x1xf32>, vector<2x16x1xf32> -> vector<2x16x16xf32>
    %76 = tpu.concatenate %59, %60, %61, %62, %63, %64, %65, %66, %67, %68, %69, %70, %71, %72, %73, %74 in 2 : vector<2x16x1xf32>, vector<2x16x1xf32>, vector<2x16x1xf32>, vector<2x16x1xf32>, vector<2x16x1xf32>, vector<2x16x1xf32>, vector<2x16x1xf32>, vector<2x16x1xf32>, vector<2x16x1xf32>, vector<2x16x1xf32>, vector<2x16x1xf32>, vector<2x16x1xf32>, vector<2x16x1xf32>, vector<2x16x1xf32>, vector<2x16x1xf32>, vector<2x16x1xf32> -> vector<2x16x16xf32>
    %77 = tpu.concatenate %75, %76 in 2 : vector<2x16x16xf32>, vector<2x16x16xf32> -> vector<2x16x32xf32>
    %78 = tpu.concatenate %38, %77 in 2 : vector<2x16x32xf32>, vector<2x16x32xf32> -> vector<2x16x64xf32>
    %c0_12 = arith.constant 0 : index
    %c0_13 = arith.constant 0 : index
    %c0_14 = arith.constant 0 : index
    %79 = vector.load %arg2[%c0_12, %c0_13, %c0_14] : memref<2x16x64xf32, #tpu.memory_space<vmem>>, vector<2x16x64xf32>
    tpu.vector_store %arg2[%c0_12, %c0_13, %c0_14], %78 {strides = array<i32>} : memref<2x16x64xf32, #tpu.memory_space<vmem>>, vector<2x16x64xf32>,
    return
  }
  func.func @transform_0(%arg0: i32) -> (i32, i32, i32, i32) {
    %c0_i32 = arith.constant 0 : i32
    %c0_i32_0 = arith.constant 0 : i32
    %c0_i32_1 = arith.constant 0 : i32
    %c0_i32_2 = arith.constant 0 : i32
    return %arg0, %c0_i32, %c0_i32_0, %c0_i32_1 : i32, i32, i32, i32
  }
  func.func @transform_1(%arg0: i32) -> (i32, i32, i32) {
    %c0_i32 = arith.constant 0 : i32
    %c0_i32_0 = arith.constant 0 : i32
    %c0_i32_1 = arith.constant 0 : i32
    return %arg0, %c0_i32, %c0_i32_0 : i32, i32, i32
  }
}

</mosaic_0001>

<bundles_post_ra>
// kernel: tpu_custom_call.1
= control target key start
LH: loop header
LB: loop body
LE: loop exit
PB: predicated region body
PF: predicated region fallthrough
CT: control target
= control target key end

     0   :  { %6 = vsyncpa [#allocation3], 0  ;;  %s7465_s0 = inlined_call_operand.hbm [shape: f32[4,4,16,16], index: 0, kind: input, shape index: {}]   ;;  %s7466_s1 = inlined_call_operand.hbm [shape: f32[4,16,64], index: 1, kind: output, shape index: {}]  }
   0x1   :  { %8 = vsyncpa [#allocation3 + $0x1], 0 }
   0x2   :  { %9 = vsyncpa [#allocation4], 0 }
   0x3   :  { %11 = vsyncpa [#allocation4 + $0x1], 0  ;;  %s4829_s6 = smov 0   ;;  %s4831_s7 = smov 0  }
   0x4   :  { %s4833_s8 = smov 0   ;;  %s4835_s9 = smov 0  }
   0x5 LB: > { %s4850_s10 = sadd.s32 4294967295, %s4794_s9   ;;  %s4599_s11 = sadd.s32 4294967294, %s4794_s9   ;;  %s4794_s9 = sphi %s4835_s9, %s7874_s9   ;;  %s4790_s8 = sphi %s4833_s8, %s7873_s8   ;;  %s4786_s7 = sphi %s4831_s7, %s7872_s7   ;;  %s4782_s6 = sphi %s4829_s6, %s7871_s6  }
   0x6   : > { %s4854_s12 = sadd.s32 1, %s4794_s9   ;;  %s24_s13 = sadd.s32 1, %s4790_s8 }
   0x7   : > { %s21_s14 = ssub.s32 %s4794_s9, %s4854_s12  ;;  %p31_p0 = scmp.ne.s32.totalorder %s4790_s8, %s4786_s7 }
   0x8   : > { %p22_p1 = scmp.eq.s32.totalorder %s21_s14, 0  ;;  %p32_p2 = scmp.eq.s32.totalorder %s4794_s9, 0 }
   0x9   : > { %p37_p3 = scmp.ne.s32.totalorder %s4786_s7, %s4782_s6  ;;  %p38_p4 = scmp.eq.s32.totalorder %s4850_s10, 0 }
   0xa   : > { %s4866_s15 = scalar_select %p22_p1, %s4790_s8, %s24_s13  }
   0xb   : > { %p4868_p5 = por %p32_p2, %p31_p0  ;;  %p4872_p6 = por %p38_p4, %p37_p3 }
   0xc   : > { %p61_p7 = scmp.eq.s32.totalorder %s4850_s10, 1  ;;  %p67_p8 = scmp.eq.s32.totalorder %s4599_s11, 1 }
   0xd   : > { %p4643_p10 = scmp.lt.s32.totalorder %s4794_s9, 2  ;;  %s87_s20 = sand.u32 1, %s4790_s8  }
   0xe   : > { %p4879_p11 = por %p61_p7, %p31_p0  ;;  %p4883_p12 = por %p67_p8, %p37_p3 }
   0xf   : > { %s4628_s21 = sshll.u32 %s4794_s9, 11  ;;  %s4602_s22 = sshll.u32 %s87_s20, 7 }
  0x10   : > { %s7515_s18 = scalar_select %p4879_p11, 1, 0 }
  0x11   : > { %s7516_s19 = scalar_select %p4883_p12, 1, 0 }
  0x12   : > { %s4892_s25 = scalar_lea.hbm %s7465_s0, %s4628_s21  ;;  %s91_s26 = scalar_lea.vmem [#allocation2], %s4602_s22 }
  0x13   : > { %s99_s27 = sshll.u32 %s91_s26, 4  ;;  %p4896_p13 = pnand %p4643_p10, %p4868_p5  ;;  %s4900_s27 = int_to_ptr.vmem [resolvable:$true] %s99_s27 }
  0x14   : > { %s4902_s29 = scalar_lea.sflag [#allocation3], %s87_s20  ;;  %s4698_s30 = scalar_lea.hbm %s4892_s25, 2048 }
  0x15   : > { %p4699_p0 = scmp.ne.s32.totalorder %s4892_s25, %s4698_s30  ;;  %p4700_p1 = pneg %p4896_p13 }
  0x16   : > { %s4703_s4 = scalar_lea.hbm %s7465_s0, 4096  ;;  %p4704_p4 = scmp.lt.u32.totalorder %s4892_s25, %s7465_s0 }
  0x17   : > { %p4701_p2 = pnand %p4700_p1, %p4699_p0  ;;  %p4705_p5 = scmp.lt.u32.totalorder %s4703_s4, %s4698_s30 }
  0x18   : > { %p4707_p8 = scmp.lt.u32.totalorder %s4698_s30, %s4892_s25 }
  0x19   : > { %p4702_p3 = pneg %p4701_p2  ;;  %p4706_p7 = por %p4705_p5, %p4704_p4 }
  0x1b   : > { %p4708_p10 = por %p4707_p8, %p4706_p7 }
  0x1d   : > { %p4709_p9 = pnand %p4708_p10, %p4702_p3 }
  0x1f   : > { %4712 = shalt.err (!%p4709_p9)
}
  0x20   : > { %s4713_s13 = scalar_lea.vmem %s4900_s27, 2048  ;;  %s4796_s14 = smov [#allocation2]  }
  0x21   : > { %p4714_p0 = scmp.ne.s32.totalorder %s4900_s27, %s4713_s13  ;;  %s4718_s16 = sshll.u32 %s4796_s14, 4  ;;  %s4719_s16 = int_to_ptr.vmem [resolvable:$false] %s4718_s16 }
  0x22   : > { %s4720_s20 = scalar_lea.vmem %s4719_s16, 4096  ;;  %p4721_p11 = scmp.lt.s32.totalorder %s4900_s27, %s4719_s16 }
  0x23   : > { %p4716_p2 = pnand %p4714_p0, %p4700_p1  ;;  %p4722_p4 = scmp.lt.s32.totalorder %s4720_s20, %s4713_s13 }
  0x25   : > { %p4717_p12 = pneg %p4716_p2  ;;  %p4723_p5 = por %p4722_p4, %p4721_p11 }
  0x27   : > { %p4724_p7 = pnand %p4723_p5, %p4717_p12 }
  0x29   : > { %4727 = shalt.err (!%p4724_p7)
}
  0x2a   : > { %s4797_s21 = smov 128   ;;  %s4798_s22 = smov 8  }
  0x2b   : > { %4638 = dma.hbm_to_vmem [thread:$0]  (!%p4896_p13), %s4892_s25, 2048, %s4900_s27, %s4902_s29, %s4797_s21, %s4797_s21, %s4798_s22  }
  0x2c   : > { %p4606_p9 = scmp.ge.s32.totalorder %s4794_s9, 1  ;;  %p107_p1 = scmp.lt.s32.totalorder %s4794_s9, 3 }
  0x2e   : > { %p108_p3 = pnand %p4606_p9, %p107_p1 }
  0x30   : > { %111 = sbr.rel (%p108_p3) target bundleno = 1258 (0x4ea), region = 24 }
  0x37   : > { %s4933_s23 = sand.u32 1, %s4786_s7  }
  0x38   : > { %s4607_s24 = sshll.u32 %s4933_s23, 7  ;;  %s114_s26 = scalar_lea.sflag [#allocation3], %s4933_s23 }
  0x39   : > { %s4937_s30 = scalar_lea.vmem [#allocation2], %s4607_s24 }
  0x3a   : > { %4773 = dma.done.wait (%p4872_p6), %s114_s26, 2048  }
  0x3b   : > { %4775 = vsyncadd (%p4872_p6), %s114_s26, 4294965248  ;;  %v147_v0 = vlaneseq  ;;  %v138_v4 = vld [vmem:[%s4937_s30] sm:$0xff]  ;;  %v139_v19 = vld [vmem:[%s4937_s30 + $0x8] sm:$0xff]  ;;  %vm851_vm0 = vcmask 7168   ;;  %s4801_s17 = smov 2   ;;  %s4802_s25 = smov 4  }
  0x3c   : > { %v140_v28 = vld [vmem:[%s4937_s30 + $0x40] sm:$0xff]  ;;  %v141_v37 = vld [vmem:[%s4937_s30 + $0x48] sm:$0xff]  ;;  %v4609_v50 = vld [vmem:[%s4937_s30 + $0x10] sm:$0xff]  ;;  %s4803_s27 = smov 6   ;;  %s4804_s28 = smov 8   ;;  %vm2244_vm1 = vcmask 15360  }
  0x3d   : > { %v4943_v1 = vshrl.u32 %v147_v0, 7  ;;  %s4805_s29 = smov 10   ;;  %s4806_s2 = smov 12   ;;  %vm2249_vm2 = vcmask 31744   ;;  %vm2254_vm3 = vcmask 48128   ;;  %vm2259_vm4 = vcmask 64512  }
  0x3e   : > { %s4807_s3 = smov 14   ;;  %s4808_s4 = smov 16   ;;  %vm2264_vm5 = vcmask 80896   ;;  %vm2269_vm6 = vcmask 97280   ;;  %vm7511_vm7 = vcmask 113664   ;;  %vm2279_vm8 = vcmask 130048  }
  0x3f   : > { %v4946_v2 = vsub.s32 1, %v4943_v1  ;;  %v4949_v3 = vsub.s32 0, %v4943_v1  ;;  %v4955_v7 = vsub.s32 2, %v4943_v1  ;;  %v4959_v9 = vsub.s32 3, %v4943_v1  ;;  %s4809_s5 = smov 18   ;;  %s4810_s11 = smov 20  }
  0x40   : > { %v4963_v11 = vsub.s32 4, %v4943_v1  ;;  %v4967_v13 = vsub.s32 5, %v4943_v1  ;;  %v4971_v15 = vsub.s32 6, %v4943_v1  ;;  %v4975_v17 = vsub.s32 7, %v4943_v1  ;;  %s4811_s13 = smov 22   ;;  %s4812_s14 = smov 24  }
  0x41   : > { %7518 = vst [vmem:[#allocation8_spill] sm:$0xff] %v4946_v2  ;;  %7519 = vst [vmem:[#allocation9_spill] sm:$0xff] %v4949_v3  ;;  %v161_v5 = vrot.slane %v138_v4, %v4946_v2  ;;  %v150_v6 = vrot.slane %v138_v4, %v4949_v3  ;;  %v172_v8 = vrot.slane %v138_v4, %v4955_v7  ;;  %s4813_s16 = smov 26   ;;  %s4814_s20 = smov 28   ;;  %vm2284_vm9 = vcmask 146432  }
  0x42   : > { %7520 = vst [vmem:[#allocation10_spill] sm:$0xff] %v4955_v7  ;;  %7521 = vst [vmem:[#allocation11_spill] sm:$0xff] %v4959_v9  ;;  %v183_v10 = vrot.slane %v138_v4, %v4959_v9  ;;  %v194_v12 = vrot.slane %v138_v4, %v4963_v11  ;;  %v205_v14 = vrot.slane %v138_v4, %v4967_v13  ;;  %s4815_s21 = smov 30   ;;  %vm2289_vm10 = vcmask 162816   ;;  %s4816_s22 = smov 32  }
  0x43   : > { %163 = vbcast.lane.b32.xlu1 %v161_v5, 256  ;;  %152 = vbcast.lane.b32.xlu0 %v150_v6, 256  ;;  %7522 = vst [vmem:[#allocation12_spill] sm:$0xff] %v4963_v11  ;;  %7523 = vst [vmem:[#allocation13_spill] sm:$0xff] %v4967_v13  ;;  %v216_v16 = vrot.slane %v138_v4, %v4971_v15  ;;  %v227_v18 = vrot.slane %v138_v4, %v4975_v17  ;;  %vm2294_vm11 = vcmask 179200   ;;  %vm2299_vm12 = vcmask 195584  }
  0x44   : > { %7524 = vst [vmem:[#allocation14_spill] sm:$0xff] %v4971_v15  ;;  %7525 = vst [vmem:[#allocation15_spill] sm:$0xff] %v4975_v17  ;;  %v238_v20 = vrot.slane %v139_v19, %v4949_v3  ;;  %v249_v21 = vrot.slane %v139_v19, %v4946_v2  ;;  %v260_v22 = vrot.slane %v139_v19, %v4955_v7  ;;  %vm2304_vm13 = vcmask 211968   ;;  %s4608_s24 = sshll.u32 %s4933_s23, 5  ;;  %p7868_p11 = scmp.ne.s32.totalorder %s7515_s18, 0 }
  0x45   : > { %v271_v23 = vrot.slane %v139_v19, %v4959_v9  ;;  %v282_v24 = vrot.slane %v139_v19, %v4963_v11  ;;  %v293_v25 = vrot.slane %v139_v19, %v4967_v13  ;;  %v304_v26 = vrot.slane %v139_v19, %v4971_v15  ;;  %s7335_s26 = scalar_lea.vmem [#allocation5], %s4608_s24 }
  0x46   : > { %v315_v27 = vrot.slane %v139_v19, %v4975_v17  ;;  %v326_v29 = vrot.slane %v140_v28, %v4949_v3  ;;  %v337_v30 = vrot.slane %v140_v28, %v4946_v2  ;;  %v348_v31 = vrot.slane %v140_v28, %v4955_v7 }
  0x47   : > { %167 = vbcast.lane.b32.xlu1 %v161_v5, 264  ;;  %156 = vbcast.lane.b32.xlu0 %v150_v6, 264  ;;  %v359_v32 = vrot.slane %v140_v28, %v4959_v9  ;;  %v370_v33 = vrot.slane %v140_v28, %v4963_v11  ;;  %v381_v34 = vrot.slane %v140_v28, %v4967_v13  ;;  %vm2309_vm14 = vcmask 228352  }
  0x48   : > { %v392_v35 = vrot.slane %v140_v28, %v4971_v15  ;;  %v403_v36 = vrot.slane %v140_v28, %v4975_v17  ;;  %v414_v38 = vrot.slane %v141_v37, %v4949_v3  ;;  %v425_v39 = vrot.slane %v141_v37, %v4946_v2 }
  0x49   : > { %v436_v40 = vrot.slane %v141_v37, %v4955_v7  ;;  %v447_v41 = vrot.slane %v141_v37, %v4959_v9  ;;  %v458_v42 = vrot.slane %v141_v37, %v4963_v11  ;;  %v469_v43 = vrot.slane %v141_v37, %v4967_v13 }
  0x4a   : > { %v480_v46 = vrot.slane %v141_v37, %v4971_v15  ;;  %v491_v49 = vrot.slane %v141_v37, %v4975_v17  ;;  %v502_v53 = vrot.slane %v4609_v50, %v4949_v3  ;;  %v513_v56 = vrot.slane %v4609_v50, %v4946_v2 }
  0x4b   : > { %178 = vbcast.lane.b32.xlu1 %v172_v8, 264  ;;  %174 = vbcast.lane.b32.xlu0 %v172_v8, 256  ;;  %v524_v59 = vrot.slane %v4609_v50, %v4955_v7  ;;  %v535_v62 = vrot.slane %v4609_v50, %v4959_v9  ;;  %v546_v4 = vrot.slane %v4609_v50, %v4963_v11  ;;  %vm2314_vm15 = vcmask 244736  }
  0x4c   : > { %v557_v8 = vrot.slane %v4609_v50, %v4967_v13  ;;  %v579_v19 = vrot.slane %v4609_v50, %v4975_v17 }
  0x4f   : > { %189 = vbcast.lane.b32.xlu1 %v183_v10, 264  ;;  %185 = vbcast.lane.b32.xlu0 %v183_v10, 256 }
  0x53   : > { %200 = vbcast.lane.b32.xlu1 %v194_v12, 264  ;;  %196 = vbcast.lane.b32.xlu0 %v194_v12, 256 }
  0x57   : > { %211 = vbcast.lane.b32.xlu1 %v205_v14, 264  ;;  %207 = vbcast.lane.b32.xlu0 %v205_v14, 256  ;;  %v568_v14 = vrot.slane %v4609_v50, %v4971_v15 }
  0x5b   : > { %222 = vbcast.lane.b32.xlu1 %v216_v16, 264  ;;  %218 = vbcast.lane.b32.xlu0 %v216_v16, 256 }
  0x5f   : > { %233 = vbcast.lane.b32.xlu1 %v227_v18, 264  ;;  %229 = vbcast.lane.b32.xlu0 %v227_v18, 256 }
  0x63   : > { %244 = vbcast.lane.b32.xlu1 %v238_v20, 264  ;;  %240 = vbcast.lane.b32.xlu0 %v238_v20, 256  ;;  %v4610_v20 = vld [vmem:[%s4937_s30 + $0x18] sm:$0xff] }
  0x67   : > { %255 = vbcast.lane.b32.xlu1 %v249_v21, 264  ;;  %251 = vbcast.lane.b32.xlu0 %v249_v21, 256 }
  0x6b   : > { %266 = vbcast.lane.b32.xlu1 %v260_v22, 264  ;;  %262 = vbcast.lane.b32.xlu0 %v260_v22, 256 }
  0x6f   : > { %277 = vbcast.lane.b32.xlu1 %v271_v23, 264  ;;  %273 = vbcast.lane.b32.xlu0 %v271_v23, 256  ;;  %v590_v23 = vrot.slane %v4610_v20, %v4949_v3 }
  0x73   : > { %288 = vbcast.lane.b32.xlu1 %v282_v24, 264  ;;  %284 = vbcast.lane.b32.xlu0 %v282_v24, 256 }
  0x77   : > { %299 = vbcast.lane.b32.xlu1 %v293_v25, 264  ;;  %295 = vbcast.lane.b32.xlu0 %v293_v25, 256 }
  0x7b   : > { %310 = vbcast.lane.b32.xlu1 %v304_v26, 264  ;;  %306 = vbcast.lane.b32.xlu0 %v304_v26, 256  ;;  %v601_v26 = vrot.slane %v4610_v20, %v4946_v2 }
  0x7f   : > { %321 = vbcast.lane.b32.xlu1 %v315_v27, 264  ;;  %317 = vbcast.lane.b32.xlu0 %v315_v27, 256 }
  0x83   : > { %332 = vbcast.lane.b32.xlu1 %v326_v29, 264  ;;  %328 = vbcast.lane.b32.xlu0 %v326_v29, 256  ;;  %v612_v29 = vrot.slane %v4610_v20, %v4955_v7 }
  0x87   : > { %343 = vbcast.lane.b32.xlu1 %v337_v30, 264  ;;  %339 = vbcast.lane.b32.xlu0 %v337_v30, 256 }
  0x8b   : > { %354 = vbcast.lane.b32.xlu1 %v348_v31, 264  ;;  %350 = vbcast.lane.b32.xlu0 %v348_v31, 256 }
  0x8f   : > { %365 = vbcast.lane.b32.xlu1 %v359_v32, 264  ;;  %361 = vbcast.lane.b32.xlu0 %v359_v32, 256  ;;  %v623_v32 = vrot.slane %v4610_v20, %v4959_v9 }
  0x93   : > { %376 = vbcast.lane.b32.xlu1 %v370_v33, 264  ;;  %372 = vbcast.lane.b32.xlu0 %v370_v33, 256 }
  0x97   : > { %387 = vbcast.lane.b32.xlu1 %v381_v34, 264  ;;  %383 = vbcast.lane.b32.xlu0 %v381_v34, 256 }
  0x9b   : > { %398 = vbcast.lane.b32.xlu1 %v392_v35, 264  ;;  %394 = vbcast.lane.b32.xlu0 %v392_v35, 256  ;;  %v634_v35 = vrot.slane %v4610_v20, %v4963_v11 }
  0x9f   : > { %409 = vbcast.lane.b32.xlu1 %v403_v36, 264  ;;  %405 = vbcast.lane.b32.xlu0 %v403_v36, 256 }
  0xa3   : > { %420 = vbcast.lane.b32.xlu1 %v414_v38, 264  ;;  %416 = vbcast.lane.b32.xlu0 %v414_v38, 256  ;;  %v645_v38 = vrot.slane %v4610_v20, %v4967_v13 }
  0xa7   : > { %431 = vbcast.lane.b32.xlu1 %v425_v39, 264  ;;  %427 = vbcast.lane.b32.xlu0 %v425_v39, 256 }
  0xab   : > { %442 = vbcast.lane.b32.xlu1 %v436_v40, 264  ;;  %438 = vbcast.lane.b32.xlu0 %v436_v40, 256 }
  0xaf   : > { %453 = vbcast.lane.b32.xlu1 %v447_v41, 264  ;;  %449 = vbcast.lane.b32.xlu0 %v447_v41, 256  ;;  %v656_v41 = vrot.slane %v4610_v20, %v4971_v15 }
  0xb3   : > { %464 = vbcast.lane.b32.xlu1 %v458_v42, 264  ;;  %460 = vbcast.lane.b32.xlu0 %v458_v42, 256 }
  0xb5   : > { %v5003_v44 = vpop.permute.xlu1 %163  ;;  %v5005_v45 = vpop.permute.xlu0 %152 }
  0xb7   : > { %475 = vbcast.lane.b32.xlu1 %v469_v43, 264  ;;  %471 = vbcast.lane.b32.xlu0 %v469_v43, 256 }
  0xb9   : > { %v5008_v47 = vpop.permute.xlu1 %167  ;;  %v5010_v48 = vpop.permute.xlu0 %156 }
  0xba   : > { %7526 = vst [vmem:[#allocation16_spill] sm:$0xff] %v5010_v48 }
  0xbb   : > { %486 = vbcast.lane.b32.xlu1 %v480_v46, 264  ;;  %482 = vbcast.lane.b32.xlu0 %v480_v46, 256  ;;  %v667_v46 = vrot.slane %v4610_v20, %v4975_v17 }
  0xbd   : > { %v5014_v51 = vpop.permute.xlu1 %178  ;;  %v5016_v52 = vpop.permute.xlu0 %174 }
  0xbf   : > { %497 = vbcast.lane.b32.xlu1 %v491_v49, 264  ;;  %493 = vbcast.lane.b32.xlu0 %v491_v49, 256  ;;  %v4611_v49 = vld [vmem:[%s4937_s30 + $0x50] sm:$0xff] }
  0xc1   : > { %v5019_v54 = vpop.permute.xlu1 %189  ;;  %v5021_v55 = vpop.permute.xlu0 %185 }
  0xc3   : > { %508 = vbcast.lane.b32.xlu1 %v502_v53, 264  ;;  %504 = vbcast.lane.b32.xlu0 %v502_v53, 256 }
  0xc5   : > { %v5024_v57 = vpop.permute.xlu1 %200  ;;  %v5026_v58 = vpop.permute.xlu0 %196 }
  0xc6   : > { %7527 = vst [vmem:[#allocation17_spill] sm:$0xff] %v5024_v57 }
  0xc7   : > { %519 = vbcast.lane.b32.xlu1 %v513_v56, 264  ;;  %515 = vbcast.lane.b32.xlu0 %v513_v56, 256  ;;  %v678_v56 = vrot.slane %v4611_v49, %v4949_v3 }
  0xc9   : > { %v5029_v60 = vpop.permute.xlu1 %211  ;;  %v5031_v61 = vpop.permute.xlu0 %207 }
  0xcb   : > { %530 = vbcast.lane.b32.xlu1 %v524_v59, 264  ;;  %526 = vbcast.lane.b32.xlu0 %v524_v59, 256 }
  0xcd   : > { %v5034_v63 = vpop.permute.xlu1 %222  ;;  %v5036_v0 = vpop.permute.xlu0 %218 }
  0xcf   : > { %541 = vbcast.lane.b32.xlu1 %v535_v62, 264  ;;  %537 = vbcast.lane.b32.xlu0 %v535_v62, 256 }
  0xd1   : > { %v5039_v5 = vpop.permute.xlu1 %233  ;;  %v5041_v6 = vpop.permute.xlu0 %229 }
  0xd3   : > { %552 = vbcast.lane.b32.xlu1 %v546_v4, 264  ;;  %548 = vbcast.lane.b32.xlu0 %v546_v4, 256  ;;  %v689_v4 = vrot.slane %v4611_v49, %v4946_v2 }
  0xd5   : > { %v5044_v10 = vpop.permute.xlu1 %244  ;;  %v5046_v12 = vpop.permute.xlu0 %240 }
  0xd6   : > { %7528 = vst [vmem:[#allocation18_spill] sm:$0xff] %v5044_v10 }
  0xd7   : > { %563 = vbcast.lane.b32.xlu1 %v557_v8, 264  ;;  %559 = vbcast.lane.b32.xlu0 %v557_v8, 256 }
  0xd9   : > { %v5049_v16 = vpop.permute.xlu1 %255  ;;  %v5051_v18 = vpop.permute.xlu0 %251 }
  0xda   : > { %7529 = vst [vmem:[#allocation19_spill] sm:$0xff] %v5049_v16 }
  0xdb   : > { %574 = vbcast.lane.b32.xlu1 %v568_v14, 264  ;;  %570 = vbcast.lane.b32.xlu0 %v568_v14, 256 }
  0xdd   : > { %v5055_v21 = vpop.permute.xlu1 %266  ;;  %v5057_v22 = vpop.permute.xlu0 %262 }
  0xde   : > { %7530 = vst [vmem:[#allocation20_spill] sm:$0xff] %v5055_v21 }
  0xdf   : > { %585 = vbcast.lane.b32.xlu1 %v579_v19, 264  ;;  %581 = vbcast.lane.b32.xlu0 %v579_v19, 256  ;;  %v700_v19 = vrot.slane %v4611_v49, %v4955_v7 }
  0xe1   : > { %v5060_v24 = vpop.permute.xlu1 %277  ;;  %v5062_v25 = vpop.permute.xlu0 %273 }
  0xe2   : > { %7531 = vst [vmem:[#allocation21_spill] sm:$0xff] %v5060_v24  ;;  %v4799_v24 = vmov 1983009808  }
  0xe3   : > { %596 = vbcast.lane.b32.xlu1 %v590_v23, 264  ;;  %592 = vbcast.lane.b32.xlu0 %v590_v23, 256 }
  0xe5   : > { %v5065_v27 = vpop.permute.xlu1 %288  ;;  %v5067_v28 = vpop.permute.xlu0 %284 }
  0xe6   : > { %7532 = vst [vmem:[#allocation22_spill] sm:$0xff] %v5065_v27 }
  0xe7   : > { %607 = vbcast.lane.b32.xlu1 %v601_v26, 264  ;;  %603 = vbcast.lane.b32.xlu0 %v601_v26, 256  ;;  %v711_v26 = vrot.slane %v4611_v49, %v4959_v9 }
  0xe9   : > { %v5070_v30 = vpop.permute.xlu1 %299  ;;  %v5072_v31 = vpop.permute.xlu0 %295 }
  0xea   : > { %7533 = vst [vmem:[#allocation23_spill] sm:$0xff] %v5070_v30  ;;  %v4612_v30 = vld [vmem:[%s4937_s30 + $0x58] sm:$0xff] }
  0xeb   : > { %618 = vbcast.lane.b32.xlu1 %v612_v29, 264  ;;  %614 = vbcast.lane.b32.xlu0 %v612_v29, 256 }
  0xed   : > { %v5075_v33 = vpop.permute.xlu1 %310  ;;  %v5077_v34 = vpop.permute.xlu0 %306 }
  0xee   : > { %7534 = vst [vmem:[#allocation24_spill] sm:$0xff] %v5075_v33  ;;  %v755_v33 = vrot.slane %v4611_v49, %v4975_v17 }
  0xef   : > { %629 = vbcast.lane.b32.xlu1 %v623_v32, 264  ;;  %625 = vbcast.lane.b32.xlu0 %v623_v32, 256 }
  0xf1   : > { %v5080_v36 = vpop.permute.xlu1 %321  ;;  %v5082_v37 = vpop.permute.xlu0 %317 }
  0xf2   : > { %7535 = vst [vmem:[#allocation25_spill] sm:$0xff] %v5080_v36 }
  0xf3   : > { %640 = vbcast.lane.b32.xlu1 %v634_v35, 264  ;;  %636 = vbcast.lane.b32.xlu0 %v634_v35, 256  ;;  %v722_v35 = vrot.slane %v4611_v49, %v4963_v11 }
  0xf5   : > { %v5085_v39 = vpop.permute.xlu1 %332  ;;  %v5087_v40 = vpop.permute.xlu0 %328 }
  0xf6   : > { %7536 = vst [vmem:[#allocation26_spill] sm:$0xff] %v5085_v39 }
  0xf7   : > { %651 = vbcast.lane.b32.xlu1 %v645_v38, 264  ;;  %647 = vbcast.lane.b32.xlu0 %v645_v38, 256 }
  0xf9   : > { %v5090_v42 = vpop.permute.xlu1 %343  ;;  %v5092_v43 = vpop.permute.xlu0 %339 }
  0xfa   : > { %7537 = vst [vmem:[#allocation27_spill] sm:$0xff] %v5090_v42 }
  0xfb   : > { %662 = vbcast.lane.b32.xlu1 %v656_v41, 264  ;;  %658 = vbcast.lane.b32.xlu0 %v656_v41, 256 }
  0xfd   : > { %v5096_v50 = vpop.permute.xlu1 %354  ;;  %v5098_v53 = vpop.permute.xlu0 %350 }
  0xfe   : > { %7538 = vst [vmem:[#allocation28_spill] sm:$0xff] %v5096_v50 }
  0xff   : > { %673 = vbcast.lane.b32.xlu1 %v667_v46, 264  ;;  %669 = vbcast.lane.b32.xlu0 %v667_v46, 256  ;;  %v733_v46 = vrot.slane %v4611_v49, %v4967_v13 }
 0x101   : > { %v5101_v59 = vpop.permute.xlu1 %365  ;;  %v5103_v62 = vpop.permute.xlu0 %361 }
 0x102   : > { %7539 = vst [vmem:[#allocation29_spill] sm:$0xff] %v5101_v59 }
 0x103   : > { %684 = vbcast.lane.b32.xlu1 %v678_v56, 264  ;;  %680 = vbcast.lane.b32.xlu0 %v678_v56, 256 }
 0x105   : > { %v5106_v8 = vpop.permute.xlu1 %376  ;;  %v5108_v14 = vpop.permute.xlu0 %372 }
 0x106   : > { %7540 = vst [vmem:[#allocation30_spill] sm:$0xff] %v5106_v8 }
 0x107   : > { %695 = vbcast.lane.b32.xlu1 %v689_v4, 264  ;;  %691 = vbcast.lane.b32.xlu0 %v689_v4, 256 }
 0x109   : > { %v5111_v20 = vpop.permute.xlu1 %387  ;;  %v5113_v23 = vpop.permute.xlu0 %383 }
 0x10a   : > { %7541 = vst [vmem:[#allocation31_spill] sm:$0xff] %v5111_v20 }
 0x10b   : > { %706 = vbcast.lane.b32.xlu1 %v700_v19, 264  ;;  %702 = vbcast.lane.b32.xlu0 %v700_v19, 256  ;;  %v744_v19 = vrot.slane %v4611_v49, %v4971_v15 }
 0x10d   : > { %v5116_v29 = vpop.permute.xlu1 %398  ;;  %v5118_v32 = vpop.permute.xlu0 %394 }
 0x10e   : > { %7542 = vst [vmem:[#allocation32_spill] sm:$0xff] %v5116_v29 }
 0x10f   : > { %717 = vbcast.lane.b32.xlu1 %v711_v26, 264  ;;  %713 = vbcast.lane.b32.xlu0 %v711_v26, 256 }
 0x111   : > { %v5121_v38 = vpop.permute.xlu1 %409  ;;  %v5123_v41 = vpop.permute.xlu0 %405 }
 0x112   : > { %7543 = vst [vmem:[#allocation33_spill] sm:$0xff] %v5121_v38 }
 0x113   : > { %728 = vbcast.lane.b32.xlu1 %v722_v35, 264  ;;  %724 = vbcast.lane.b32.xlu0 %v722_v35, 256 }
 0x115   : > { %v5126_v56 = vpop.permute.xlu1 %420  ;;  %v5128_v4 = vpop.permute.xlu0 %416 }
 0x116   : > { %7544 = vst [vmem:[#allocation34_spill] sm:$0xff] %v5126_v56  ;;  %v766_v56 = vrot.slane %v4612_v30, %v4949_v3  ;;  %v799_v3 = vrot.slane %v4612_v30, %v4959_v9  ;;  %v832_v9 = vrot.slane %v4612_v30, %v4971_v15 }
 0x117   : > { %739 = vbcast.lane.b32.xlu1 %v733_v46, 264  ;;  %735 = vbcast.lane.b32.xlu0 %v733_v46, 256 }
 0x119   : > { %v5131_v26 = vpop.permute.xlu1 %431  ;;  %v5133_v27 = vpop.permute.xlu0 %427 }
 0x11a   : > { %7545 = vst [vmem:[#allocation35_spill] sm:$0xff] %v5131_v26  ;;  %v777_v26 = vrot.slane %v4612_v30, %v4946_v2  ;;  %v810_v2 = vrot.slane %v4612_v30, %v4963_v11  ;;  %v919_v11 = vunpack.c.l.s4 %v4799_v24 }
 0x11b   : > { %750 = vbcast.lane.b32.xlu1 %v744_v19, 264  ;;  %746 = vbcast.lane.b32.xlu0 %v744_v19, 256 }
 0x11c   : > { %v920_v21 = vunpack.c.0.s8 %v919_v11 }
 0x11d   : > { %v5137_v35 = vpop.permute.xlu1 %442  ;;  %v5139_v36 = vpop.permute.xlu0 %438 }
 0x11e   : > { %7546 = vst [vmem:[#allocation36_spill] sm:$0xff] %v5137_v35  ;;  %v788_v35 = vrot.slane %v4612_v30, %v4955_v7  ;;  %v821_v7 = vrot.slane %v4612_v30, %v4967_v13 }
 0x11f   : > { %761 = vbcast.lane.b32.xlu1 %v755_v33, 264  ;;  %757 = vbcast.lane.b32.xlu0 %v755_v33, 256 }
 0x121   : > { %v5142_v46 = vpop.permute.xlu1 %453  ;;  %v5144_v16 = vpop.permute.xlu0 %449 }
 0x122   : > { %7547 = vst [vmem:[#allocation37_spill] sm:$0xff] %v5142_v46 }
 0x123   : > { %772 = vbcast.lane.b32.xlu1 %v766_v56, 264  ;;  %768 = vbcast.lane.b32.xlu0 %v766_v56, 256 }
 0x125   : > { %v5147_v19 = vpop.permute.xlu1 %464  ;;  %v5149_v49 = vpop.permute.xlu0 %460 }
 0x126   : > { %7548 = vst [vmem:[#allocation38_spill] sm:$0xff] %v5147_v19 }
 0x127   : > { %783 = vbcast.lane.b32.xlu1 %v777_v26, 264  ;;  %779 = vbcast.lane.b32.xlu0 %v777_v26, 256 }
 0x129   : > { %v5152_v10 = vpop.permute.xlu1 %475  ;;  %v5154_v33 = vpop.permute.xlu0 %471 }
 0x12a   : > { %7549 = vst [vmem:[#allocation39_spill] sm:$0xff] %v5152_v10 }
 0x12b   : > { %794 = vbcast.lane.b32.xlu1 %v788_v35, 264  ;;  %790 = vbcast.lane.b32.xlu0 %v788_v35, 256 }
 0x12d   : > { %v5157_v46 = vpop.permute.xlu1 %486  ;;  %v5159_v56 = vpop.permute.xlu0 %482 }
 0x12e   : > { %7550 = vst [vmem:[#allocation40_spill] sm:$0xff] %v5157_v46 }
 0x12f   : > { %805 = vbcast.lane.b32.xlu1 %v799_v3, 264  ;;  %801 = vbcast.lane.b32.xlu0 %v799_v3, 256 }
 0x131   : > { %v5162_v19 = vpop.permute.xlu1 %497  ;;  %v5164_v26 = vpop.permute.xlu0 %493 }
 0x132   : > { %7551 = vst [vmem:[#allocation41_spill] sm:$0xff] %v5162_v19  ;;  %v843_v19 = vrot.slane %v4612_v30, %v4975_v17 }
 0x133   : > { %816 = vbcast.lane.b32.xlu1 %v810_v2, 264  ;;  %812 = vbcast.lane.b32.xlu0 %v810_v2, 256 }
 0x135   : > { %v5167_v10 = vpop.permute.xlu1 %508  ;;  %v505_v35 = vpop.permute.xlu0 %504 }
 0x136   : > { %v852_v42 = vsel %vm851_vm0, %v5005_v45, %v505_v35 }
 0x137   : > { %827 = vbcast.lane.b32.xlu1 %v821_v7, 264  ;;  %823 = vbcast.lane.b32.xlu0 %v821_v7, 256 }
 0x139   : > { %v5170_v46 = vpop.permute.xlu1 %519  ;;  %v516_v3 = vpop.permute.xlu0 %515 }
 0x13a   : > { %v854_v30 = vsel %vm851_vm0, %v5003_v44, %v516_v3 }
 0x13b   : > { %838 = vbcast.lane.b32.xlu1 %v832_v9, 264  ;;  %834 = vbcast.lane.b32.xlu0 %v832_v9, 256  ;;  %v5182_v9 = vsub.s32 %v920_v21, %v4943_v1 }
 0x13d   : > { %v5173_v2 = vpop.permute.xlu1 %530  ;;  %v527_v13 = vpop.permute.xlu0 %526 }
 0x13e   : > { %v856_v7 = vsel %vm851_vm0, %v5016_v52, %v527_v13 }
 0x13f   : > { %v917_v15 = vcombine.high %v852_v42, %v856_v7  ;;  %849 = vbcast.lane.b32.xlu1 %v843_v19, 264  ;;  %845 = vbcast.lane.b32.xlu0 %v843_v19, 256  ;;  %v916_v17 = vcombine.low %v852_v42, %v856_v7 }
 0x141   : > { %v5179_v39 = vpop.permute.xlu1 %541  ;;  %v538_v24 = vpop.permute.xlu0 %537  ;;  %v924_v59 = vrot.slane %v916_v17, %v5182_v9  ;;  %v931_v21 = vrot.slane %v917_v15, %v5182_v9 }
 0x142   : > { %v858_v11 = vsel %vm851_vm0, %v5021_v55, %v538_v24  ;;  %v4800_v55 = vmov 1934713408  }
 0x143   : > { %v932_v45 = vcombine.low %v854_v30, %v858_v11  ;;  %v933_v35 = vcombine.high %v854_v30, %v858_v11  ;;  %v983_v7 = vunpack.c.l.s4 %v4800_v55 }
 0x145   : > { %v940_v13 = vrot.slane %v932_v45, %v5182_v9  ;;  %v947_v52 = vrot.slane %v933_v35, %v5182_v9  ;;  %v5190_v19 = vpop.permute.xlu1 %552  ;;  %v549_v8 = vpop.permute.xlu0 %548  ;;  %v984_v35 = vunpack.c.0.s8 %v983_v7 }
 0x146   : > { %7552 = vst [vmem:[#allocation42_spill] sm:$0xff] %v5190_v19  ;;  %v860_v11 = vsel %vm851_vm0, %v5026_v58, %v549_v8 }
 0x147   : > { %v981_v50 = vcombine.high %v924_v59, %v940_v13  ;;  %v996_v29 = vcombine.low %v931_v21, %v947_v52  ;;  %v997_v44 = vcombine.high %v931_v21, %v947_v52  ;;  %v5209_v19 = vsub.s32 %v984_v35, %v4943_v1 }
 0x148   : > { %v980_v58 = vcombine.low %v924_v59, %v940_v13 }
 0x149   : > { %v5194_v42 = vpop.permute.xlu1 %563  ;;  %v560_v3 = vpop.permute.xlu0 %559  ;;  %v5221_v1 = vrot.slane %v981_v50, %v5209_v19  ;;  %v5224_v59 = vrot.slane %v996_v29, %v5209_v19  ;;  %v5241_v50 = vrot.slane %v997_v44, %v5209_v19 }
 0x14a   : > { %v862_v52 = vsel %vm851_vm0, %v5031_v61, %v560_v3 }
 0x14d   : > { %v5196_v24 = vpop.permute.xlu1 %574  ;;  %v571_v30 = vpop.permute.xlu0 %570 }
 0x14e   : > { %v864_v45 = vsel %vm851_vm0, %v5036_v0, %v571_v30 }
 0x14f   : > { %v949_v17 = vcombine.high %v860_v11, %v864_v45  ;;  %v948_v21 = vcombine.low %v860_v11, %v864_v45  ;;  %v5218_v45 = vrot.slane %v980_v58, %v5209_v19 }
 0x151   : > { %v5202_v15 = vpop.permute.xlu1 %585  ;;  %v582_v20 = vpop.permute.xlu0 %581  ;;  %v956_v48 = vrot.slane %v948_v21, %v5182_v9  ;;  %v963_v61 = vrot.slane %v949_v17, %v5182_v9  ;;  %7554 = vst [vmem:[#allocation44_spill] sm:$0xff] %v5218_v45 }
 0x152   : > { %v866_v55 = vsel %vm851_vm0, %v5041_v6, %v582_v20 }
 0x153   : > { %v964_v38 = vcombine.low %v862_v52, %v866_v55  ;;  %v965_v57 = vcombine.high %v862_v52, %v866_v55 }
 0x155   : > { %v972_v0 = vrot.slane %v964_v38, %v5182_v9  ;;  %v979_v8 = vrot.slane %v965_v57, %v5182_v9  ;;  %v5213_v7 = vpop.permute.xlu1 %596  ;;  %v593_v30 = vpop.permute.xlu0 %592 }
 0x156   : > { %7553 = vst [vmem:[#allocation43_spill] sm:$0xff] %v5213_v7 }
 0x157   : > { %v1012_v3 = vcombine.low %v956_v48, %v972_v0  ;;  %v1013_v11 = vcombine.high %v956_v48, %v972_v0  ;;  %v1028_v6 = vcombine.low %v963_v61, %v979_v8  ;;  %v1029_v20 = vcombine.high %v963_v61, %v979_v8 }
 0x159   : > { %v604_v57 = vpop.permute.xlu0 %603  ;;  %v5227_v38 = vrot.slane %v1012_v3, %v5209_v19  ;;  %v5230_v13 = vrot.slane %v1013_v11, %v5209_v19  ;;  %v5233_v48 = vrot.slane %v1028_v6, %v5209_v19  ;;  %v5236_v17 = vrot.slane %v1029_v20, %v5209_v19  ;;  %v5238_v35 = vpop.permute.xlu1 %607 }
 0x15a   : > { %7556 = vst [vmem:[#allocation46_spill] sm:$0xff] %v5238_v35  ;;  %v868_v3 = vsel %vm851_vm0, %v5046_v12, %v593_v30  ;;  %v870_v44 = vsel %vm851_vm0, %v5051_v18, %v604_v57 }
 0x15b   : > { %7555 = vst [vmem:[#allocation45_spill] sm:$0xff] %v5227_v38  ;;  %v1045_v29 = vcombine.high %v5218_v45, %v5227_v38 }
 0x15d   : > { %v615_v58 = vpop.permute.xlu0 %614  ;;  %2008 = vrot.lane.b32.xlu0 %v1045_v29, %s4801_s17  ;;  %v5264_v20 = vpop.permute.xlu1 %618 }
 0x15e   : > { %v872_v11 = vsel %vm851_vm0, %v5057_v22, %v615_v58  ;;  %7557 = vst [vmem:[#allocation47_spill] sm:$0xff] %v5264_v20 }
 0x15f   : > { %v1053_v6 = vcombine.high %v868_v3, %v872_v11  ;;  %v1052_v8 = vcombine.low %v868_v3, %v872_v11 }
 0x161   : > { %v626_v0 = vpop.permute.xlu0 %625  ;;  %v1060_v22 = vrot.slane %v1052_v8, %v5182_v9  ;;  %v1067_v58 = vrot.slane %v1053_v6, %v5182_v9  ;;  %v5274_v52 = vpop.permute.xlu1 %629 }
 0x162   : > { %v874_v61 = vsel %vm851_vm0, %v5062_v25, %v626_v0  ;;  %7558 = vst [vmem:[#allocation48_spill] sm:$0xff] %v5274_v52 }
 0x163   : > { %v1068_v55 = vcombine.low %v870_v44, %v874_v61  ;;  %v1069_v21 = vcombine.high %v870_v44, %v874_v61 }
 0x165   : > { %v1076_v12 = vrot.slane %v1068_v55, %v5182_v9  ;;  %v1083_v30 = vrot.slane %v1069_v21, %v5182_v9  ;;  %v637_v29 = vpop.permute.xlu0 %636  ;;  %v5276_v3 = vpop.permute.xlu1 %640 }
 0x166   : > { %7559 = vst [vmem:[#allocation49_spill] sm:$0xff] %v5276_v3  ;;  %v876_v0 = vsel %vm851_vm0, %v5067_v28, %v637_v29 }
 0x167   : > { %v1117_v38 = vcombine.high %v1060_v22, %v1076_v12  ;;  %v1132_v45 = vcombine.low %v1067_v58, %v1083_v30  ;;  %v1133_v18 = vcombine.high %v1067_v58, %v1083_v30  ;;  %v1116_v3 = vcombine.low %v1060_v22, %v1076_v12 }
 0x169   : > { %v648_v57 = vpop.permute.xlu0 %647  ;;  %v5282_v8 = vpop.permute.xlu1 %651  ;;  %v5298_v12 = vrot.slane %v1117_v38, %v5209_v19  ;;  %v5301_v22 = vrot.slane %v1132_v45, %v5209_v19 }
 0x16a   : > { %7560 = vst [vmem:[#allocation50_spill] sm:$0xff] %v5282_v8  ;;  %v878_v61 = vsel %vm851_vm0, %v5072_v31, %v648_v57 }
 0x16d   : > { %v659_v25 = vpop.permute.xlu0 %658  ;;  %v5292_v8 = vpop.permute.xlu1 %662 }
 0x16e   : > { %v880_v21 = vsel %vm851_vm0, %v5077_v34, %v659_v25  ;;  %7561 = vst [vmem:[#allocation51_spill] sm:$0xff] %v5292_v8 }
 0x16f   : > { %v1085_v55 = vcombine.high %v876_v0, %v880_v21  ;;  %v1084_v11 = vcombine.low %v876_v0, %v880_v21 }
 0x171   : > { %v670_v44 = vpop.permute.xlu0 %669  ;;  %v1092_v34 = vrot.slane %v1084_v11, %v5182_v9  ;;  %v1099_v25 = vrot.slane %v1085_v55, %v5182_v9 }
 0x172   : > { %v882_v6 = vsel %vm851_vm0, %v5082_v37, %v670_v44  ;;  %v5295_v37 = vrot.slane %v1116_v3, %v5209_v19  ;;  %v5316_v3 = vrot.slane %v1133_v18, %v5209_v19 }
 0x173   : > { %v1100_v30 = vcombine.low %v878_v61, %v882_v6  ;;  %v1101_v58 = vcombine.high %v878_v61, %v882_v6 }
 0x174   : > { %7562 = vst [vmem:[#allocation52_spill] sm:$0xff] %v5295_v37  ;;  %7566 = vst [vmem:[#allocation56_spill] sm:$0xff] %v5316_v3 }
 0x175   : > { %v1108_v35 = vrot.slane %v1100_v30, %v5182_v9  ;;  %v1115_v28 = vrot.slane %v1101_v58, %v5182_v9  ;;  %v681_v29 = vpop.permute.xlu0 %680 }
 0x177   : > { %v1148_v7 = vcombine.low %v1092_v34, %v1108_v35  ;;  %v1149_v31 = vcombine.high %v1092_v34, %v1108_v35  ;;  %v1164_v57 = vcombine.low %v1099_v25, %v1115_v28  ;;  %v1165_v0 = vcombine.high %v1099_v25, %v1115_v28  ;;  %v5334_v34 = vpop.permute.xlu1 %673 }
 0x178   : > { %7567 = vst [vmem:[#allocation57_spill] sm:$0xff] %v5334_v34 }
 0x179   : > { %v692_v21 = vpop.permute.xlu0 %691  ;;  %v5304_v44 = vrot.slane %v1148_v7, %v5209_v19  ;;  %v5307_v55 = vrot.slane %v1149_v31, %v5209_v19  ;;  %v5310_v35 = vrot.slane %v1164_v57, %v5209_v19  ;;  %v5313_v61 = vrot.slane %v1165_v0, %v5209_v19 }
 0x17a   : > { %v886_v58 = vsel %vm851_vm0, %v5092_v43, %v692_v21 }
 0x17b   : > { %7563 = vst [vmem:[#allocation53_spill] sm:$0xff] %v5304_v44  ;;  %7564 = vst [vmem:[#allocation54_spill] sm:$0xff] %v5310_v35  ;;  %v1181_v45 = vcombine.high %v5295_v37, %v5304_v44  ;;  %v5337_v31 = vpop.permute.xlu1 %684 }
 0x17c   : > { %7565 = vst [vmem:[#allocation55_spill] sm:$0xff] %v5313_v61 }
 0x17d   : > { %v703_v6 = vpop.permute.xlu0 %702  ;;  %2010 = vrot.lane.b32.xlu1 %v1181_v45, %s4801_s17  ;;  %v884_v45 = vsel %vm851_vm0, %v5087_v40, %v681_v29 }
 0x17e   : > { %v888_v28 = vsel %vm851_vm0, %v5098_v53, %v703_v6 }
 0x17f   : > { %v5339_v11 = vpop.permute.xlu1 %695  ;;  %v1460_v37 = vcombine.low %v884_v45, %v888_v28 }
 0x181   : > { %v714_v25 = vpop.permute.xlu0 %713  ;;  %v1468_v29 = vrot.slane %v1460_v37, %v5182_v9 }
 0x182   : > { %v890_v18 = vsel %vm851_vm0, %v5103_v62, %v714_v25 }
 0x183   : > { %v1476_v7 = vcombine.low %v886_v58, %v890_v18  ;;  %v5351_v44 = vpop.permute.xlu1 %706 }
 0x185   : > { %v725_v57 = vpop.permute.xlu0 %724  ;;  %v1484_v43 = vrot.slane %v1476_v7, %v5182_v9 }
 0x186   : > { %v892_v62 = vsel %vm851_vm0, %v5108_v14, %v725_v57 }
 0x187   : > { %v5362_v61 = vpop.permute.xlu1 %717  ;;  %v1524_v3 = vcombine.low %v1468_v29, %v1484_v43 }
 0x189   : > { %v736_v0 = vpop.permute.xlu0 %735  ;;  %v5366_v8 = vrot.slane %v1524_v3, %v5209_v19 }
 0x18a   : > { %v894_v53 = vsel %vm851_vm0, %v5113_v23, %v736_v0 }
 0x18b   : > { %7568 = vst [vmem:[#allocation58_spill] sm:$0xff] %v5366_v8 }
 0x18d   : > { %v747_v30 = vpop.permute.xlu0 %746 }
 0x18e   : > { %v896_v38 = vsel %vm851_vm0, %v5118_v32, %v747_v30 }
 0x18f   : > { %v1492_v21 = vcombine.low %v892_v62, %v896_v38  ;;  %v1493_v20 = vcombine.high %v892_v62, %v896_v38 }
 0x191   : > { %v758_v25 = vpop.permute.xlu0 %757  ;;  %v1500_v14 = vrot.slane %v1492_v21, %v5182_v9  ;;  %v1507_v35 = vrot.slane %v1493_v20, %v5182_v9 }
 0x192   : > { %v898_v6 = vsel %vm851_vm0, %v5123_v41, %v758_v25  ;;  %v5371_v41 = vpop.permute.xlu1 %728 }
 0x193   : > { %v1508_v40 = vcombine.low %v894_v53, %v898_v6 }
 0x195   : > { %v1516_v32 = vrot.slane %v1508_v40, %v5182_v9  ;;  %v769_v30 = vpop.permute.xlu0 %768  ;;  %v1525_v40 = vcombine.high %v1468_v29, %v1484_v43 }
 0x197   : > { %v1556_v57 = vcombine.low %v1500_v14, %v1516_v32  ;;  %v1557_v0 = vcombine.high %v1500_v14, %v1516_v32  ;;  %v1539_v52 = vrot.slane %v1525_v40, %v5209_v19  ;;  %v7570_v32 = vcombine.low %v5221_v1, %v5230_v13 }
 0x198   : > { %v1509_v14 = vcombine.high %v894_v53, %v898_v6 }
 0x199   : > { %v780_v7 = vpop.permute.xlu0 %779  ;;  %v5369_v23 = vrot.slane %v1556_v57, %v5209_v19  ;;  %v1571_v21 = vrot.slane %v1557_v0, %v5209_v19  ;;  %v5380_v57 = vpop.permute.xlu1 %739  ;;  %v1461_v0 = vcombine.high %v884_v45, %v888_v28 }
 0x19a   : > { %v5390_v40 = vrot.slane %v1509_v14, %v5182_v9  ;;  %v5410_v62 = vsel %vm851_vm0, %v5133_v27, %v780_v7 }
 0x19b   : > { %7569 = vst [vmem:[#allocation59_spill] sm:$0xff] %v5369_v23  ;;  %v1589_v37 = vcombine.high %v5366_v8, %v5369_v23  ;;  %v1590_v43 = vcombine.low %v1539_v52, %v1571_v21  ;;  %v1591_v45 = vcombine.high %v1539_v52, %v1571_v21  ;;  %v5423_v52 = vsel %vm851_vm0, %v5128_v4, %v769_v30 }
 0x19c   : > { %v1572_v28 = vcombine.low %v1507_v35, %v5390_v40 }
 0x19d   : > { %v791_v25 = vpop.permute.xlu0 %790  ;;  %2012 = vrot.lane.b32.xlu0 %v1589_v37, %s4801_s17  ;;  %v1477_v37 = vcombine.high %v886_v58, %v890_v18  ;;  %v5387_v34 = vpop.permute.xlu1 %750  ;;  %v7571_v18 = vcombine.high %v5221_v1, %v5230_v13  ;;  %v5405_v58 = vrot.slane %v1461_v0, %v5182_v9 }
 0x19e   : > { %v5414_v20 = vsel %vm851_vm0, %v5139_v36, %v791_v25  ;;  %v1580_v36 = vrot.slane %v1572_v28, %v5209_v19 }
 0x19f   : > { %v5393_v8 = vrot.slane %v1477_v37, %v5182_v9  ;;  %v1596_v6 = vcombine.low %v5423_v52, %v5414_v20 }
 0x1a1   : > { %v802_v3 = vpop.permute.xlu0 %801  ;;  %2024 = vrot.lane.b32.xlu0 %v7570_v32, %s4802_s25  ;;  %v1540_v13 = vcombine.low %v5405_v58, %v5393_v8  ;;  %v1604_v14 = vrot.slane %v1596_v6, %v5182_v9 }
 0x1a2   : > { %v5402_v38 = vsel %vm851_vm0, %v5144_v16, %v802_v3  ;;  %v762_v16 = vpop.permute.xlu1 %761 }
 0x1a3   : > { %v1612_v53 = vcombine.low %v5410_v62, %v5402_v38  ;;  %v1548_v25 = vrot.slane %v1540_v13, %v5209_v19  ;;  %v5480_v13 = vsel %vm851_vm0, %v5008_v47, %v5170_v46  ;;  %v1541_v46 = vcombine.high %v5405_v58, %v5393_v8 }
 0x1a5   : > { %v813_v29 = vpop.permute.xlu0 %812  ;;  %2028 = vrot.lane.b32.xlu0 %v1590_v43, %s4802_s25  ;;  %v1620_v21 = vrot.slane %v1612_v53, %v5182_v9  ;;  %v1593_v6 = vcombine.high %v1548_v25, %v1580_v36 }
 0x1a6   : > { %v5434_v7 = vsel %vm851_vm0, %v5149_v49, %v813_v29  ;;  %v5452_v32 = vpop.permute.xlu1 %772  ;;  %v1592_v29 = vcombine.low %v1548_v25, %v1580_v36 }
 0x1a7   : > { %v1660_v37 = vcombine.low %v1604_v14, %v1620_v21 }
 0x1a9   : > { %v824_v23 = vpop.permute.xlu0 %823  ;;  %2040 = vrot.lane.b32.xlu0 %v7571_v18, %s4803_s27  ;;  %v5468_v28 = vrot.slane %v1660_v37, %v5209_v19 }
 0x1aa   : > { %v5446_v3 = vsel %vm851_vm0, %v5154_v33, %v824_v23  ;;  %v5465_v23 = vpop.permute.xlu1 %783 }
 0x1ab   : > { %7573 = vst [vmem:[#allocation60_spill] sm:$0xff] %v5468_v28 }
 0x1ad   : > { %v835_v1 = vpop.permute.xlu0 %834  ;;  %2044 = vrot.lane.b32.xlu0 %v1591_v45, %s4803_s27 }
 0x1ae   : > { %v5427_v27 = vsel %vm851_vm0, %v5159_v56, %v835_v1  ;;  %v7572_v56 = vcombine.low %v5224_v59, %v5233_v48  ;;  %v7575_v1 = vcombine.high %v5224_v59, %v5233_v48  ;;  %v5493_v59 = vsel %vm851_vm0, %v5014_v51, %v5173_v2  ;;  %v7576_v51 = vld [vmem:[#allocation16_spill] sm:$0xff]  ;;  %v5530_v36 = vpop.permute.xlu1 %794 }
 0x1af   : > { %v1628_v4 = vcombine.low %v5434_v7, %v5427_v27  ;;  %v1661_v48 = vcombine.high %v1604_v14, %v1620_v21  ;;  %v5514_v2 = vsel %vm851_vm0, %v7576_v51, %v5167_v10  ;;  %v7587_v51 = vld [vmem:[#allocation26_spill] sm:$0xff] }
 0x1b0   : > { %v1188_v25 = vcombine.low %v5514_v2, %v5493_v59 }
 0x1b1   : > { %2056 = vrot.lane.b32.xlu0 %v7572_v56, %s4804_s28  ;;  %v846_v30 = vpop.permute.xlu0 %845  ;;  %v1636_v0 = vrot.slane %v1628_v4, %v5182_v9  ;;  %v1675_v37 = vrot.slane %v1661_v48, %v5209_v19 }
 0x1b2   : > { %v5450_v49 = vsel %vm851_vm0, %v5164_v26, %v846_v30  ;;  %v5463_v26 = vsel %vm851_vm0, %v5019_v54, %v5179_v39  ;;  %v5485_v54 = vsel %vm851_vm0, %v5039_v5, %v5202_v15  ;;  %v1573_v39 = vcombine.high %v1507_v35, %v5390_v40  ;;  %v7578_v35 = vld [vmem:[#allocation17_spill] sm:$0xff] }
 0x1b3   : > { %v1644_v43 = vcombine.low %v5446_v3, %v5450_v49  ;;  %v1204_v47 = vcombine.low %v5480_v13, %v5463_v26  ;;  %v5502_v5 = vsel %vm851_vm0, %v5029_v60, %v5194_v42  ;;  %v5507_v15 = vsel %vm851_vm0, %v5034_v63, %v5196_v24  ;;  %v7577_v42 = vld [vmem:[#allocation42_spill] sm:$0xff]  ;;  %v7579_v24 = vld [vmem:[#allocation33_spill] sm:$0xff] }
 0x1b4   : > { %v1236_v8 = vcombine.low %v5502_v5, %v5485_v54  ;;  %v5523_v63 = vsel %vm851_vm0, %v7578_v35, %v7577_v42  ;;  %v5527_v40 = vsel %vm851_vm0, %v7579_v24, %v762_v16  ;;  %v1587_v58 = vrot.slane %v1573_v39, %v5209_v19  ;;  %v7580_v16 = vld [vmem:[#allocation31_spill] sm:$0xff] }
 0x1b5   : > { %v1652_v18 = vrot.slane %v1644_v43, %v5182_v9  ;;  %2060 = vrot.lane.b32.xlu0 %v1592_v29, %s4804_s28  ;;  %v5536_v21 = vrot.slane %v1204_v47, %v5182_v9  ;;  %v1220_v56 = vcombine.low %v5523_v63, %v5507_v15  ;;  %v1555_v30 = vrot.slane %v1541_v46, %v5209_v19  ;;  %v7581_v43 = vld [vmem:[#allocation32_spill] sm:$0xff] }
 0x1b6   : > { %v5544_v14 = vsel %vm851_vm0, %v7580_v16, %v5380_v57  ;;  %v5549_v29 = vsel %vm851_vm0, %v7581_v43, %v5387_v34  ;;  %v5561_v57 = vrot.slane %v1236_v8, %v5182_v9  ;;  %v1645_v47 = vcombine.high %v5446_v3, %v5450_v49  ;;  %v7588_v8 = vld [vmem:[#allocation27_spill] sm:$0xff]  ;;  %v5599_v49 = vpop.permute.xlu1 %805 }
 0x1b7   : > { %v1692_v33 = vcombine.low %v1636_v0, %v1652_v18  ;;  %v1693_v53 = vcombine.high %v1636_v0, %v1652_v18  ;;  %v7582_v0 = vcombine.low %v5241_v50, %v5236_v17  ;;  %v7583_v18 = vcombine.low %v5298_v12, %v5307_v55 }
 0x1b8   : > { %v1594_v46 = vcombine.low %v1555_v30, %v1587_v58  ;;  %v5593_v42 = vsel %vm851_vm0, %v7588_v8, %v5339_v11  ;;  %v1613_v35 = vcombine.high %v5410_v62, %v5402_v38  ;;  %v1196_v11 = vrot.slane %v1188_v25, %v5182_v9 }
 0x1b9   : > { %v5471_v45 = vrot.slane %v1692_v33, %v5209_v19  ;;  %2072 = vrot.lane.b32.xlu0 %v7575_v1, %s4805_s29  ;;  %v1707_v10 = vrot.slane %v1693_v53, %v5209_v19  ;;  %v7584_v33 = vld [vmem:[#allocation28_spill] sm:$0xff]  ;;  %v7585_v1 = vld [vmem:[#allocation29_spill] sm:$0xff]  ;;  %v1780_v53 = vcombine.low %v5544_v14, %v5527_v40  ;;  %v1597_v38 = vcombine.high %v5423_v52, %v5414_v20 }
 0x1ba   : > { %v5566_v34 = vsel %vm851_vm0, %v7584_v33, %v5351_v44  ;;  %v5571_v39 = vsel %vm851_vm0, %v7585_v1, %v5362_v61  ;;  %v5583_v44 = vrot.slane %v1220_v56, %v5182_v9  ;;  %v5588_v61 = vsel %vm851_vm0, %v7587_v51, %v5337_v31 }
 0x1bb   : > { %7574 = vst [vmem:[#allocation61_spill] sm:$0xff] %v5471_v45  ;;  %v1725_v4 = vcombine.high %v5468_v28, %v5471_v45  ;;  %v1726_v48 = vcombine.low %v1675_v37, %v1707_v10  ;;  %v1748_v3 = vcombine.low %v5593_v42, %v5571_v39  ;;  %v1629_v31 = vcombine.high %v5434_v7, %v5427_v27 }
 0x1bc   : > { %v1284_v24 = vcombine.low %v5583_v44, %v5561_v57  ;;  %v1732_v56 = vcombine.low %v5588_v61, %v5566_v34  ;;  %v5613_v16 = vrot.slane %v1780_v53, %v5182_v9  ;;  %v5618_v62 = vrot.slane %v1645_v47, %v5182_v9 }
 0x1bd   : > { %2076 = vrot.lane.b32.xlu0 %v1593_v6, %s4805_s29  ;;  %2014 = vrot.lane.b32.xlu1 %v1725_v4, %s4801_s17  ;;  %v7586_v6 = vld [vmem:[#allocation30_spill] sm:$0xff]  ;;  %v1252_v27 = vcombine.low %v1196_v11, %v5536_v21  ;;  %v5625_v25 = vrot.slane %v1748_v3, %v5182_v9  ;;  %v5628_v43 = vrot.slane %v1613_v35, %v5182_v9 }
 0x1be   : > { %v5578_v4 = vsel %vm851_vm0, %v7586_v6, %v5371_v41  ;;  %v7589_v20 = vcombine.high %v5241_v50, %v5236_v17  ;;  %v7590_v52 = vcombine.high %v5298_v12, %v5307_v55  ;;  %v5643_v33 = vrot.slane %v1732_v56, %v5182_v9  ;;  %v5650_v6 = vpop.permute.xlu1 %816 }
 0x1bf   : > { %v1764_v41 = vcombine.low %v5578_v4, %v5549_v29  ;;  %v5648_v53 = vrot.slane %v1597_v38, %v5182_v9  ;;  %v1595_v50 = vcombine.high %v1555_v30, %v1587_v58  ;;  %v1727_v47 = vcombine.high %v1675_v37, %v1707_v10  ;;  %v7591_v37 = vld [vmem:[#allocation54_spill] sm:$0xff] }
 0x1c0   : > { %v1260_v12 = vrot.slane %v1252_v27, %v5209_v19  ;;  %v1796_v55 = vcombine.low %v5643_v33, %v5625_v25  ;;  %v1285_v56 = vcombine.high %v5583_v44, %v5561_v57  ;;  %v7595_v44 = vld [vmem:[#allocation48_spill] sm:$0xff] }
 0x1c1   : > { %2088 = vrot.lane.b32.xlu0 %v7582_v0, %s4806_s2  ;;  %2026 = vrot.lane.b32.xlu1 %v7583_v18, %s4802_s25  ;;  %v5622_v7 = vrot.slane %v1764_v41, %v5182_v9  ;;  %v5631_v0 = vrot.slane %v1629_v31, %v5182_v9  ;;  %v1292_v18 = vrot.slane %v1284_v24, %v5209_v19 }
 0x1c2   : > { %v1804_v58 = vrot.slane %v1796_v55, %v5209_v19  ;;  %v828_v30 = vpop.permute.xlu1 %827  ;;  %v7592_v41 = vcombine.low %v5301_v22, %v7591_v37  ;;  %v1253_v31 = vcombine.high %v1196_v11, %v5536_v21  ;;  %v1237_v24 = vcombine.high %v5502_v5, %v5485_v54  ;;  %v7593_v11 = vld [vmem:[#allocation47_spill] sm:$0xff]  ;;  %v7603_v55 = vld [vmem:[#allocation25_spill] sm:$0xff] }
 0x1c3   : > { %v1828_v1 = vcombine.low %v5622_v7, %v5613_v16  ;;  %v1708_v17 = vcombine.low %v5631_v0, %v5618_v62  ;;  %v1316_v8 = vcombine.low %v1260_v12, %v1292_v18  ;;  %v1317_v27 = vcombine.high %v1260_v12, %v1292_v18  ;;  %v7596_v18 = vld [vmem:[#allocation21_spill] sm:$0xff] }
 0x1c4   : > { %v5682_v21 = vrot.slane %v1253_v31, %v5209_v19  ;;  %v1221_v54 = vcombine.high %v5523_v63, %v5507_v15  ;;  %v5687_v5 = vrot.slane %v1237_v24, %v5182_v9  ;;  %v7598_v15 = vld [vmem:[#allocation43_spill] sm:$0xff]  ;;  %v7602_v12 = vld [vmem:[#allocation57_spill] sm:$0xff]  ;;  %v7604_v31 = vld [vmem:[#allocation50_spill] sm:$0xff] }
 0x1c5   : > { %2092 = vrot.lane.b32.xlu0 %v1594_v46, %s4806_s2  ;;  %2030 = vrot.lane.b32.xlu1 %v1726_v48, %s4802_s25  ;;  %v1676_v46 = vcombine.low %v5648_v53, %v5628_v43  ;;  %v1836_v48 = vrot.slane %v1828_v1, %v5209_v19  ;;  %v1716_v51 = vrot.slane %v1708_v17, %v5209_v19  ;;  %v7594_v1 = vld [vmem:[#allocation20_spill] sm:$0xff]  ;;  %v7600_v17 = vld [vmem:[#allocation46_spill] sm:$0xff]  ;;  %v7605_v24 = vld [vmem:[#allocation23_spill] sm:$0xff] }
 0x1c6   : > { %v839_v38 = vpop.permute.xlu1 %838  ;;  %v5692_v57 = vsel %vm851_vm0, %v7594_v1, %v7593_v11  ;;  %v7607_v11 = vld [vmem:[#allocation24_spill] sm:$0xff]  ;;  %v7608_v1 = vld [vmem:[#allocation49_spill] sm:$0xff] }
 0x1c7   : > { %v1684_v10 = vrot.slane %v1676_v46, %v5209_v19  ;;  %v1860_v3 = vcombine.low %v1804_v58, %v1836_v48  ;;  %v5720_v46 = vsel %vm851_vm0, %v7603_v55, %v7602_v12  ;;  %v7611_v12 = vld [vmem:[#allocation56_spill] sm:$0xff]  ;;  %v7612_v55 = vld [vmem:[#allocation55_spill] sm:$0xff] }
 0x1c9   : > { %2104 = vrot.lane.b32.xlu0 %v7589_v20, %s4807_s3  ;;  %2042 = vrot.lane.b32.xlu1 %v7590_v52, %s4803_s27  ;;  %v1728_v35 = vcombine.low %v1684_v10, %v1716_v51  ;;  %v1189_v20 = vcombine.high %v5514_v2, %v5493_v59  ;;  %v1205_v52 = vcombine.high %v5480_v13, %v5463_v26  ;;  %v7599_v2 = vld [vmem:[#allocation18_spill] sm:$0xff] }
 0x1ca   : > { %v5697_v59 = vsel %vm851_vm0, %v7596_v18, %v7595_v44  ;;  %v7597_v26 = vcombine.high %v5301_v22, %v7591_v37  ;;  %v5705_v13 = vrot.slane %v1285_v56, %v5209_v19  ;;  %v5710_v63 = vsel %vm851_vm0, %v7599_v2, %v7598_v15  ;;  %v7609_v44 = vld [vmem:[#allocation22_spill] sm:$0xff] }
 0x1cb   : > { %v1829_v22 = vcombine.high %v5622_v7, %v5613_v16  ;;  %v1861_v37 = vcombine.high %v1804_v58, %v1836_v48  ;;  %v5733_v56 = vsel %vm851_vm0, %v7605_v24, %v7604_v31  ;;  %v1797_v7 = vcombine.high %v5643_v33, %v5625_v25  ;;  %v850_v48 = vpop.permute.xlu1 %849  ;;  %v7616_v31 = vld [vmem:[#allocation40_spill] sm:$0xff] }
 0x1cc   : > { %v5752_v58 = vrot.slane %v1205_v52, %v5182_v9  ;;  %v5760_v25 = vsel %vm851_vm0, %v7609_v44, %v7608_v1  ;;  %v5803_v24 = vsel %vm851_vm0, %v7616_v31, %v839_v38  ;;  %v1749_v1 = vcombine.high %v5593_v42, %v5571_v39  ;;  %v7620_v39 = vld [vmem:[#allocation34_spill] sm:$0xff] }
 0x1cd   : > { %2108 = vrot.lane.b32.xlu0 %v1595_v50, %s4807_s3  ;;  %2046 = vrot.lane.b32.xlu1 %v1727_v47, %s4803_s27  ;;  %v7601_v50 = vld [vmem:[#allocation19_spill] sm:$0xff]  ;;  %v1843_v33 = vrot.slane %v1829_v22, %v5209_v19  ;;  %v7613_v22 = vcombine.low %v7611_v12, %v7612_v55  ;;  %v5845_v42 = vsel %vm851_vm0, %v7620_v39, %v5452_v32 }
 0x1ce   : > { %v5715_v47 = vsel %vm851_vm0, %v7601_v50, %v7600_v17  ;;  %v1811_v17 = vrot.slane %v1797_v7, %v5209_v19  ;;  %v7618_v7 = vld [vmem:[#allocation36_spill] sm:$0xff] }
 0x1cf   : > { %v5820_v38 = vsel %vm851_vm0, %v7618_v7, %v5530_v36 }
 0x1d0   : > { %v1868_v44 = vcombine.low %v5845_v42, %v5820_v38 }
 0x1d1   : > { %2120 = vrot.lane.b32.xlu0 %v1316_v8, %s4808_s4  ;;  %2058 = vrot.lane.b32.xlu1 %v7592_v41, %s4804_s28  ;;  %v1709_v8 = vcombine.high %v5631_v0, %v5618_v62  ;;  %v1729_v41 = vcombine.high %v1684_v10, %v1716_v51  ;;  %v1372_v62 = vcombine.low %v5733_v56, %v5720_v46 }
 0x1d2   : > { %v1677_v0 = vcombine.high %v5648_v53, %v5628_v43  ;;  %v5749_v51 = vrot.slane %v1189_v20, %v5182_v9  ;;  %v5755_v10 = vrot.slane %v1221_v54, %v5182_v9  ;;  %v1318_v20 = vcombine.low %v5682_v21, %v5705_v13 }
 0x1d3   : > { %v1723_v53 = vrot.slane %v1709_v8, %v5209_v19  ;;  %v5781_v2 = vrot.slane %v1372_v62, %v5182_v9  ;;  %v1781_v8 = vcombine.high %v5544_v14, %v5527_v40  ;;  %v1862_v40 = vcombine.low %v1811_v17, %v1843_v33  ;;  %v7617_v62 = vld [vmem:[#allocation35_spill] sm:$0xff] }
 0x1d4   : > { %v1300_v52 = vcombine.low %v5755_v10, %v5687_v5  ;;  %v1691_v50 = vrot.slane %v1677_v0, %v5209_v19  ;;  %v7619_v0 = vld [vmem:[#allocation38_spill] sm:$0xff] }
 0x1d5   : > { %2124 = vrot.lane.b32.xlu0 %v1860_v3, %s4808_s4  ;;  %2062 = vrot.lane.b32.xlu1 %v1728_v35, %s4804_s28  ;;  %v1324_v3 = vcombine.low %v5710_v63, %v5692_v57  ;;  %v1340_v35 = vcombine.low %v5715_v47, %v5697_v59 }
 0x1d6   : > { %v1730_v14 = vcombine.low %v1691_v50, %v1723_v53 }
 0x1d7   : > { %v5771_v54 = vrot.slane %v1324_v3, %v5182_v9  ;;  %v5774_v18 = vrot.slane %v1340_v35, %v5182_v9  ;;  %v7615_v3 = vld [vmem:[#allocation39_spill] sm:$0xff] }
 0x1d8   : > { %v5799_v35 = vsel %vm851_vm0, %v7615_v3, %v828_v30  ;;  %v5815_v30 = vsel %vm851_vm0, %v7617_v62, %v5465_v23 }
 0x1d9   : > { %2136 = vrot.lane.b32.xlu0 %v1317_v27, %s4809_s5  ;;  %2074 = vrot.lane.b32.xlu1 %v7597_v26, %s4805_s29  ;;  %v7606_v27 = vld [vmem:[#allocation51_spill] sm:$0xff]  ;;  %v7610_v26 = vld [vmem:[#allocation41_spill] sm:$0xff] }
 0x1da   : > { %v5738_v16 = vsel %vm851_vm0, %v7607_v11, %v7606_v27  ;;  %v5778_v15 = vsel %vm851_vm0, %v7610_v26, %v850_v48  ;;  %v5825_v48 = vsel %vm851_vm0, %v7619_v0, %v5650_v6  ;;  %v5840_v6 = vrot.slane %v1781_v8, %v5182_v9 }
 0x1db   : > { %v1356_v43 = vcombine.low %v5760_v25, %v5738_v16  ;;  %v1916_v11 = vcombine.low %v5799_v35, %v5778_v15  ;;  %v1900_v23 = vcombine.low %v5825_v48, %v5803_v24  ;;  %v1268_v26 = vcombine.low %v5749_v51, %v5752_v58 }
 0x1dd   : > { %2140 = vrot.lane.b32.xlu0 %v1861_v37, %s4809_s5  ;;  %2078 = vrot.lane.b32.xlu1 %v1729_v41, %s4805_s29  ;;  %v7614_v37 = vld [vmem:[#allocation37_spill] sm:$0xff]  ;;  %v5806_v27 = vrot.slane %v1356_v43, %v5182_v9  ;;  %v1924_v43 = vrot.slane %v1916_v11, %v5182_v9  ;;  %v1908_v8 = vrot.slane %v1900_v23, %v5182_v9 }
 0x1de   : > { %v5795_v41 = vsel %vm851_vm0, %v7614_v37, %v5599_v49  ;;  %v1765_v49 = vcombine.high %v5578_v4, %v5549_v29  ;;  %v1733_v4 = vcombine.high %v5588_v61, %v5566_v34  ;;  %v1388_v34 = vcombine.low %v5771_v54, %v5774_v18 }
 0x1df   : > { %v1884_v29 = vcombine.low %v5815_v30, %v5795_v41  ;;  %v1420_v36 = vcombine.low %v5806_v27, %v5781_v2  ;;  %v1876_v11 = vrot.slane %v1868_v44, %v5182_v9  ;;  %v1276_v62 = vrot.slane %v1268_v26, %v5209_v19 }
 0x1e0   : > { %v1779_v61 = vrot.slane %v1765_v49, %v5182_v9  ;;  %v1747_v3 = vrot.slane %v1733_v4, %v5182_v9  ;;  %v1731_v49 = vcombine.high %v1691_v50, %v1723_v53  ;;  %v1396_v7 = vrot.slane %v1388_v34, %v5209_v19 }
 0x1e1   : > { %2152 = vrot.lane.b32.xlu0 %v1318_v20, %s4810_s11  ;;  %2090 = vrot.lane.b32.xlu1 %v7613_v22, %s4806_s2  ;;  %v1319_v20 = vcombine.high %v5682_v21, %v5705_v13  ;;  %v1763_v22 = vrot.slane %v1749_v1, %v5182_v9  ;;  %v1892_v32 = vrot.slane %v1884_v29, %v5182_v9 }
 0x1e2   : > { %v7621_v21 = vcombine.high %v7611_v12, %v7612_v55  ;;  %v1308_v13 = vrot.slane %v1300_v52, %v5209_v19  ;;  %v1428_v37 = vrot.slane %v1420_v36, %v5209_v19  ;;  %v1844_v31 = vcombine.low %v1779_v61, %v5840_v6 }
 0x1e3   : > { %v1812_v0 = vcombine.low %v1747_v3, %v1763_v22  ;;  %v1932_v12 = vcombine.low %v1876_v11, %v1892_v32  ;;  %v1301_v50 = vcombine.high %v5755_v10, %v5687_v5  ;;  %v1421_v36 = vcombine.high %v5806_v27, %v5781_v2 }
 0x1e4   : > { %v1852_v52 = vrot.slane %v1844_v31, %v5209_v19  ;;  %v1320_v1 = vcombine.low %v1276_v62, %v1308_v13  ;;  %v1452_v29 = vcombine.low %v1396_v7, %v1428_v37  ;;  %v1321_v4 = vcombine.high %v1276_v62, %v1308_v13 }
 0x1e5   : > { %2156 = vrot.lane.b32.xlu0 %v1862_v40, %s4810_s11  ;;  %2094 = vrot.lane.b32.xlu1 %v1730_v14, %s4806_s2  ;;  %v1964_v40 = vcombine.low %v1908_v8, %v1924_v43  ;;  %v1863_v14 = vcombine.high %v1811_v17, %v1843_v33  ;;  %v1820_v23 = vrot.slane %v1812_v0, %v5209_v19 }
 0x1e6   : > { %v1940_v33 = vrot.slane %v1932_v12, %v5209_v19  ;;  %v1453_v39 = vcombine.high %v1396_v7, %v1428_v37  ;;  %v1269_v44 = vcombine.high %v5749_v51, %v5752_v58  ;;  %v1315_v26 = vrot.slane %v1301_v50, %v5209_v19 }
 0x1e7   : > { %v1972_v55 = vrot.slane %v1964_v40, %v5209_v19  ;;  %v1864_v53 = vcombine.low %v1820_v23, %v1852_v52  ;;  %v1435_v5 = vrot.slane %v1421_v36, %v5209_v19  ;;  %v1845_v10 = vcombine.high %v1779_v61, %v5840_v6 }
 0x1e8   : > { %v1965_v2 = vcombine.high %v1908_v8, %v1924_v43  ;;  %v1865_v27 = vcombine.high %v1820_v23, %v1852_v52  ;;  %v1813_v58 = vcombine.high %v1747_v3, %v1763_v22  ;;  %v1357_v8 = vcombine.high %v5760_v25, %v5738_v16 }
 0x1e9   : > { %2168 = vrot.lane.b32.xlu0 %v1319_v20, %s4811_s13  ;;  %2106 = vrot.lane.b32.xlu1 %v7621_v21, %s4807_s3  ;;  %v1996_v17 = vcombine.low %v1940_v33, %v1972_v55  ;;  %v1389_v20 = vcombine.high %v5771_v54, %v5774_v18  ;;  %v1997_v34 = vcombine.high %v1940_v33, %v1972_v55  ;;  %v7623_v55 = vld [vmem:[#allocation9_spill] sm:$0xff] }
 0x1ea   : > { %v1283_v21 = vrot.slane %v1269_v44, %v5209_v19  ;;  %v1933_v54 = vcombine.high %v1876_v11, %v1892_v32  ;;  %v1373_v18 = vcombine.high %v5733_v56, %v5720_v46  ;;  %v1859_v13 = vrot.slane %v1845_v10, %v5209_v19 }
 0x1eb   : > { %v1403_v51 = vrot.slane %v1389_v20, %v5209_v19  ;;  %v1979_v6 = vrot.slane %v1965_v2, %v5209_v19  ;;  %v1341_v22 = vcombine.high %v5715_v47, %v5697_v59  ;;  %v1827_v32 = vrot.slane %v1813_v58, %v5209_v19  ;;  %v7629_v2 = vld [vmem:[#allocation11_spill] sm:$0xff] }
 0x1ec   : > { %v1322_v43 = vcombine.low %v1283_v21, %v1315_v26  ;;  %v1947_v37 = vrot.slane %v1933_v54, %v5209_v19  ;;  %v1387_v46 = vrot.slane %v1373_v18, %v5182_v9  ;;  %v1325_v56 = vcombine.high %v5710_v63, %v5692_v57 }
 0x1ed   : > { %2172 = vrot.lane.b32.xlu0 %v1863_v14, %s4811_s13  ;;  %2110 = vrot.lane.b32.xlu1 %v1731_v49, %s4807_s3  ;;  %v1454_v61 = vcombine.low %v1403_v51, %v1435_v5  ;;  %v1917_v16 = vcombine.high %v5799_v35, %v5778_v15  ;;  %v1866_v25 = vcombine.low %v1827_v32, %v1859_v13 }
 0x1ee   : > { %v1998_v3 = vcombine.low %v1947_v37, %v1979_v6  ;;  %v1371_v59 = vrot.slane %v1357_v8, %v5182_v9  ;;  %v1355_v47 = vrot.slane %v1341_v22, %v5182_v9  ;;  %v1885_v31 = vcombine.high %v5815_v30, %v5795_v41 }
 0x1ef   : > { %v1901_v11 = vcombine.high %v5825_v48, %v5803_v24  ;;  %v1323_v63 = vcombine.high %v1283_v21, %v1315_v26  ;;  %v1339_v15 = vrot.slane %v1325_v56, %v5182_v9  ;;  %v1869_v35 = vcombine.high %v5845_v42, %v5820_v38  ;;  %v4613_v48 = vld [vmem:[%s4937_s30 + $0x20] sm:$0xff]  ;;  %v5935_v38 = vpop.permute.xlu0 %2008 }
 0x1f0   : > { %v1436_v57 = vcombine.low %v1371_v59, %v1387_v46  ;;  %v1931_v40 = vrot.slane %v1917_v16, %v5182_v9  ;;  %v1455_v14 = vcombine.high %v1403_v51, %v1435_v5  ;;  %v1899_v41 = vrot.slane %v1885_v31, %v5182_v9  ;;  %7622 = vst [vmem:[#allocation16_spill] sm:$0xff] %v5935_v38  ;;  %v7635_v16 = vld [vmem:[#allocation14_spill] sm:$0xff] }
 0x1f1   : > { %2184 = vrot.lane.b32.xlu0 %v1320_v1, %s4812_s14  ;;  %2122 = vrot.lane.b32.xlu1 %v1452_v29, %s4808_s4  ;;  %v1404_v49 = vcombine.low %v1339_v15, %v1355_v47  ;;  %v1915_v24 = vrot.slane %v1901_v11, %v5182_v9  ;;  %v1883_v62 = vrot.slane %v1869_v35, %v5182_v9  ;;  %v4614_v11 = vld [vmem:[%s4937_s30 + $0x28] sm:$0xff] }
 0x1f2   : > { %v1444_v30 = vrot.slane %v1436_v57, %v5209_v19  ;;  %v1867_v42 = vcombine.high %v1827_v32, %v1859_v13  ;;  %v1999_v0 = vcombine.high %v1947_v37, %v1979_v6  ;;  %v2332_v1 = vrot.slane %v4613_v48, %v7623_v55  ;;  %v7631_v13 = vld [vmem:[#allocation12_spill] sm:$0xff]  ;;  %v7633_v32 = vld [vmem:[#allocation13_spill] sm:$0xff]  ;;  %v5976_v57 = vpop.permute.xlu1 %2010 }
 0x1f3   : > { %v1980_v7 = vcombine.low %v1915_v24, %v1931_v40  ;;  %v1412_v12 = vrot.slane %v1404_v49, %v5209_v19  ;;  %v1948_v52 = vcombine.low %v1883_v62, %v1899_v41  ;;  %v1437_v20 = vcombine.high %v1371_v59, %v1387_v46  ;;  %7638 = vst [vmem:[#allocation30_spill] sm:$0xff] %v5976_v57 }
 0x1f4   : > { %v1405_v10 = vcombine.high %v1339_v15, %v1355_v47  ;;  %v1981_v21 = vcombine.high %v1915_v24, %v1931_v40  ;;  %v1949_v18 = vcombine.high %v1883_v62, %v1899_v41  ;;  %v2376_v6 = vrot.slane %v4613_v48, %v7631_v13  ;;  %v7637_v47 = vld [vmem:[#allocation15_spill] sm:$0xff] }
 0x1f5   : > { %2188 = vrot.lane.b32.xlu0 %v1864_v53, %s4812_s14  ;;  %2126 = vrot.lane.b32.xlu1 %v1996_v17, %s4808_s4  ;;  %v1988_v29 = vrot.slane %v1980_v7, %v5209_v19  ;;  %v1456_v33 = vcombine.low %v1412_v12, %v1444_v30  ;;  %v1956_v53 = vrot.slane %v1948_v52, %v5209_v19  ;;  %v7625_v17 = vld [vmem:[#allocation8_spill] sm:$0xff] }
 0x1f6   : > { %v2343_v50 = vrot.slane %v4613_v48, %v7625_v17  ;;  %v1457_v5 = vcombine.high %v1412_v12, %v1444_v30  ;;  %v1419_v54 = vrot.slane %v1405_v10, %v5209_v19  ;;  %v1963_v22 = vrot.slane %v1949_v18, %v5209_v19 }
 0x1f7   : > { %v2001_v58 = vcombine.high %v1956_v53, %v1988_v29  ;;  %v2387_v37 = vrot.slane %v4613_v48, %v7633_v32  ;;  %v2409_v31 = vrot.slane %v4613_v48, %v7637_v47  ;;  %v2420_v35 = vrot.slane %v4614_v11, %v7623_v55 }
 0x1f8   : > { %v2431_v49 = vrot.slane %v4614_v11, %v7625_v17  ;;  %v2453_v7 = vrot.slane %v4614_v11, %v7629_v2  ;;  %v2464_v12 = vrot.slane %v4614_v11, %v7631_v13 }
 0x1f9   : > { %2200 = vrot.lane.b32.xlu0 %v1321_v4, %s4813_s16  ;;  %2138 = vrot.lane.b32.xlu1 %v1453_v39, %s4809_s5  ;;  %v2000_v4 = vcombine.low %v1956_v53, %v1988_v29  ;;  %v7627_v39 = vld [vmem:[#allocation10_spill] sm:$0xff]  ;;  %v2475_v29 = vrot.slane %v4614_v11, %v7633_v32 }
 0x1fa   : > { %v2354_v44 = vrot.slane %v4613_v48, %v7627_v39  ;;  %v2442_v30 = vrot.slane %v4614_v11, %v7627_v39 }
 0x1fd   : > { %2204 = vrot.lane.b32.xlu0 %v1865_v27, %s4813_s16  ;;  %2142 = vrot.lane.b32.xlu1 %v1997_v34, %s4809_s5  ;;  %v2365_v27 = vrot.slane %v4613_v48, %v7629_v2  ;;  %v1451_v34 = vrot.slane %v1437_v20, %v5209_v19  ;;  %v2497_v20 = vrot.slane %v4614_v11, %v7637_v47 }
 0x1ff   : > { %v1458_v8 = vcombine.low %v1419_v54, %v1451_v34  ;;  %v1459_v59 = vcombine.high %v1419_v54, %v1451_v34 }
 0x201   : > { %2216 = vrot.lane.b32.xlu0 %v1322_v43, %s4814_s20  ;;  %2154 = vrot.lane.b32.xlu1 %v1454_v61, %s4810_s11  ;;  %v1995_v43 = vrot.slane %v1981_v21, %v5209_v19 }
 0x203   : > { %v2002_v56 = vcombine.low %v1963_v22, %v1995_v43  ;;  %v2003_v15 = vcombine.high %v1963_v22, %v1995_v43 }
 0x205   : > { %2220 = vrot.lane.b32.xlu0 %v1866_v25, %s4814_s20  ;;  %2158 = vrot.lane.b32.xlu1 %v1998_v3, %s4810_s11  ;;  %v2398_v25 = vrot.slane %v4613_v48, %v7635_v16 }
 0x209   : > { %2232 = vrot.lane.b32.xlu0 %v1323_v63, %s4815_s21  ;;  %2170 = vrot.lane.b32.xlu1 %v1455_v14, %s4811_s13 }
 0x20d   : > { %2236 = vrot.lane.b32.xlu0 %v1867_v42, %s4815_s21  ;;  %2174 = vrot.lane.b32.xlu1 %v1999_v0, %s4811_s13 }
 0x20f   : > { %v5942_v23 = vpop.permute.xlu0 %2012 }
 0x210   : > { %7624 = vst [vmem:[#allocation42_spill] sm:$0xff] %v5942_v23 }
 0x211   : > { %2334 = vbcast.lane.b32.xlu0 %v2332_v1, 256  ;;  %2186 = vrot.lane.b32.xlu1 %v1456_v33, %s4812_s14 }
 0x213   : > { %v5947_v36 = vpop.permute.xlu0 %2024 }
 0x214   : > { %7626 = vst [vmem:[#allocation17_spill] sm:$0xff] %v5947_v36 }
 0x215   : > { %2345 = vbcast.lane.b32.xlu0 %v2343_v50, 256  ;;  %2190 = vrot.lane.b32.xlu1 %v2000_v4, %s4812_s14 }
 0x217   : > { %v5951_v26 = vpop.permute.xlu0 %2028 }
 0x218   : > { %7628 = vst [vmem:[#allocation33_spill] sm:$0xff] %v5951_v26  ;;  %v4620_v26 = vld [vmem:[%s4937_s30 + $0x78] sm:$0xff] }
 0x219   : > { %2356 = vbcast.lane.b32.xlu0 %v2354_v44, 256  ;;  %2202 = vrot.lane.b32.xlu1 %v1457_v5, %s4813_s16  ;;  %v4615_v5 = vld [vmem:[%s4937_s30 + $0x60] sm:$0xff] }
 0x21a   : > { %v2508_v34 = vrot.slane %v4615_v5, %v7623_v55  ;;  %v2519_v54 = vrot.slane %v4615_v5, %v7625_v17  ;;  %v2530_v43 = vrot.slane %v4615_v5, %v7627_v39 }
 0x21b   : > { %v5956_v51 = vpop.permute.xlu0 %2040 }
 0x21c   : > { %7630 = vst [vmem:[#allocation31_spill] sm:$0xff] %v5956_v51 }
 0x21d   : > { %2367 = vbcast.lane.b32.xlu0 %v2365_v27, 256  ;;  %2206 = vrot.lane.b32.xlu1 %v2001_v58, %s4813_s16 }
 0x21f   : > { %v5962_v61 = vpop.permute.xlu0 %2044 }
 0x220   : > { %7632 = vst [vmem:[#allocation32_spill] sm:$0xff] %v5962_v61 }
 0x221   : > { %2378 = vbcast.lane.b32.xlu0 %v2376_v6, 256  ;;  %2218 = vrot.lane.b32.xlu1 %v1458_v8, %s4814_s20 }
 0x223   : > { %v5967_v46 = vpop.permute.xlu0 %2056 }
 0x224   : > { %7634 = vst [vmem:[#allocation28_spill] sm:$0xff] %v5967_v46 }
 0x225   : > { %2389 = vbcast.lane.b32.xlu0 %v2387_v37, 256  ;;  %2222 = vrot.lane.b32.xlu1 %v2002_v56, %s4814_s20 }
 0x227   : > { %v5971_v3 = vpop.permute.xlu0 %2060 }
 0x228   : > { %7636 = vst [vmem:[#allocation29_spill] sm:$0xff] %v5971_v3 }
 0x229   : > { %2400 = vbcast.lane.b32.xlu0 %v2398_v25, 256  ;;  %2234 = vrot.lane.b32.xlu1 %v1459_v59, %s4815_s21  ;;  %v2552_v59 = vrot.slane %v4615_v5, %v7631_v13 }
 0x22b   : > { %v5978_v63 = vpop.permute.xlu0 %2072 }
 0x22c   : > { %7639 = vst [vmem:[#allocation26_spill] sm:$0xff] %v5978_v63 }
 0x22d   : > { %2411 = vbcast.lane.b32.xlu0 %v2409_v31, 256  ;;  %2238 = vrot.lane.b32.xlu1 %v2003_v15, %s4815_s21  ;;  %v2563_v15 = vrot.slane %v4615_v5, %v7633_v32 }
 0x22f   : > { %v5982_v40 = vpop.permute.xlu1 %2014  ;;  %v5984_v14 = vpop.permute.xlu0 %2076 }
 0x230   : > { %7640 = vst [vmem:[#allocation27_spill] sm:$0xff] %v5982_v40  ;;  %7641 = vst [vmem:[#allocation54_spill] sm:$0xff] %v5984_v14 }
 0x231   : > { %2422 = vbcast.lane.b32.xlu0 %v2420_v35, 256  ;;  %2338 = vbcast.lane.b32.xlu1 %v2332_v1, 264 }
 0x233   : > { %v5987_v41 = vpop.permute.xlu1 %2026  ;;  %v5989_v24 = vpop.permute.xlu0 %2088 }
 0x234   : > { %7642 = vst [vmem:[#allocation47_spill] sm:$0xff] %v5987_v41  ;;  %7643 = vst [vmem:[#allocation20_spill] sm:$0xff] %v5989_v24 }
 0x235   : > { %2433 = vbcast.lane.b32.xlu0 %v2431_v49, 256  ;;  %2349 = vbcast.lane.b32.xlu1 %v2343_v50, 264  ;;  %v2486_v50 = vrot.slane %v4614_v11, %v7635_v16 }
 0x237   : > { %v5992_v48 = vpop.permute.xlu1 %2030  ;;  %v5994_v62 = vpop.permute.xlu0 %2092 }
 0x238   : > { %7644 = vst [vmem:[#allocation48_spill] sm:$0xff] %v5992_v48  ;;  %7645 = vst [vmem:[#allocation21_spill] sm:$0xff] %v5994_v62 }
 0x239   : > { %2444 = vbcast.lane.b32.xlu0 %v2442_v30, 256  ;;  %2360 = vbcast.lane.b32.xlu1 %v2354_v44, 264 }
 0x23b   : > { %v5997_v42 = vpop.permute.xlu1 %2042  ;;  %v5999_v0 = vpop.permute.xlu0 %2104 }
 0x23c   : > { %7646 = vst [vmem:[#allocation43_spill] sm:$0xff] %v5997_v42  ;;  %7647 = vst [vmem:[#allocation18_spill] sm:$0xff] %v5999_v0 }
 0x23d   : > { %2455 = vbcast.lane.b32.xlu0 %v2453_v7, 256  ;;  %2371 = vbcast.lane.b32.xlu1 %v2365_v27, 264 }
 0x23f   : > { %v6002_v52 = vpop.permute.xlu1 %2046  ;;  %v6004_v1 = vpop.permute.xlu0 %2108 }
 0x240   : > { %7648 = vst [vmem:[#allocation46_spill] sm:$0xff] %v6002_v52  ;;  %7649 = vst [vmem:[#allocation19_spill] sm:$0xff] %v6004_v1 }
 0x241   : > { %2466 = vbcast.lane.b32.xlu0 %v2464_v12, 256  ;;  %2382 = vbcast.lane.b32.xlu1 %v2376_v6, 264 }
 0x243   : > { %v6007_v33 = vpop.permute.xlu1 %2058  ;;  %v6009_v53 = vpop.permute.xlu0 %2120 }
 0x244   : > { %7650 = vst [vmem:[#allocation57_spill] sm:$0xff] %v6007_v33  ;;  %7651 = vst [vmem:[#allocation25_spill] sm:$0xff] %v6009_v53 }
 0x245   : > { %2477 = vbcast.lane.b32.xlu0 %v2475_v29, 256  ;;  %2393 = vbcast.lane.b32.xlu1 %v2387_v37, 264  ;;  %v2541_v37 = vrot.slane %v4615_v5, %v7629_v2 }
 0x247   : > { %v6012_v4 = vpop.permute.xlu1 %2062  ;;  %v6014_v44 = vpop.permute.xlu0 %2124 }
 0x248   : > { %7652 = vst [vmem:[#allocation50_spill] sm:$0xff] %v6012_v4  ;;  %7653 = vst [vmem:[#allocation23_spill] sm:$0xff] %v6014_v44 }
 0x249   : > { %2488 = vbcast.lane.b32.xlu0 %v2486_v50, 256  ;;  %2404 = vbcast.lane.b32.xlu1 %v2398_v25, 264 }
 0x24b   : > { %v6018_v10 = vpop.permute.xlu1 %2074  ;;  %v6020_v27 = vpop.permute.xlu0 %2136 }
 0x24c   : > { %7654 = vst [vmem:[#allocation51_spill] sm:$0xff] %v6018_v10  ;;  %7655 = vst [vmem:[#allocation24_spill] sm:$0xff] %v6020_v27 }
 0x24d   : > { %2499 = vbcast.lane.b32.xlu0 %v2497_v20, 256  ;;  %2415 = vbcast.lane.b32.xlu1 %v2409_v31, 264 }
 0x24f   : > { %v6023_v21 = vpop.permute.xlu1 %2078  ;;  %v6025_v58 = vpop.permute.xlu0 %2140 }
 0x250   : > { %7656 = vst [vmem:[#allocation49_spill] sm:$0xff] %v6023_v21  ;;  %7657 = vst [vmem:[#allocation22_spill] sm:$0xff] %v6025_v58 }
 0x251   : > { %2510 = vbcast.lane.b32.xlu0 %v2508_v34, 256  ;;  %2426 = vbcast.lane.b32.xlu1 %v2420_v35, 264 }
 0x253   : > { %v6028_v18 = vpop.permute.xlu1 %2090  ;;  %v6030_v6 = vpop.permute.xlu0 %2152 }
 0x254   : > { %7658 = vst [vmem:[#allocation41_spill] sm:$0xff] %v6028_v18  ;;  %7659 = vst [vmem:[#allocation56_spill] sm:$0xff] %v6030_v6  ;;  %v4619_v6 = vld [vmem:[%s4937_s30 + $0x70] sm:$0xff] }
 0x255   : > { %2521 = vbcast.lane.b32.xlu0 %v2519_v54, 256  ;;  %2437 = vbcast.lane.b32.xlu1 %v2431_v49, 264  ;;  %v6197_v27 = vrot.slane %v4619_v6, %v7625_v17  ;;  %v6205_v53 = vrot.slane %v4619_v6, %v7629_v2 }
 0x257   : > { %v6033_v8 = vpop.permute.xlu1 %2094  ;;  %v6035_v22 = vpop.permute.xlu0 %2156 }
 0x258   : > { %7660 = vst [vmem:[#allocation55_spill] sm:$0xff] %v6033_v8  ;;  %7661 = vst [vmem:[#allocation37_spill] sm:$0xff] %v6035_v22 }
 0x259   : > { %2448 = vbcast.lane.b32.xlu1 %v2442_v30, 264  ;;  %2532 = vbcast.lane.b32.xlu0 %v2530_v43, 256  ;;  %v2574_v30 = vrot.slane %v4615_v5, %v7635_v16 }
 0x25b   : > { %v6038_v56 = vpop.permute.xlu1 %2106  ;;  %v6040_v25 = vpop.permute.xlu0 %2168 }
 0x25c   : > { %7662 = vst [vmem:[#allocation39_spill] sm:$0xff] %v6038_v56  ;;  %7663 = vst [vmem:[#allocation40_spill] sm:$0xff] %v6040_v25 }
 0x25d   : > { %2459 = vbcast.lane.b32.xlu1 %v2453_v7, 264  ;;  %2543 = vbcast.lane.b32.xlu0 %v2541_v37, 256 }
 0x25f   : > { %v6043_v31 = vpop.permute.xlu1 %2110  ;;  %v6045_v11 = vpop.permute.xlu0 %2172 }
 0x260   : > { %7664 = vst [vmem:[#allocation35_spill] sm:$0xff] %v6043_v31  ;;  %7665 = vst [vmem:[#allocation36_spill] sm:$0xff] %v6045_v11  ;;  %v2585_v31 = vrot.slane %v4615_v5, %v7637_v47 }
 0x261   : > { %2470 = vbcast.lane.b32.xlu1 %v2464_v12, 264  ;;  %2554 = vbcast.lane.b32.xlu0 %v2552_v59, 256  ;;  %v4616_v12 = vld [vmem:[%s4937_s30 + $0x68] sm:$0xff] }
 0x263   : > { %v6048_v35 = vpop.permute.xlu1 %2122  ;;  %v6050_v49 = vpop.permute.xlu0 %2184 }
 0x264   : > { %7666 = vst [vmem:[#allocation38_spill] sm:$0xff] %v6048_v35  ;;  %7667 = vst [vmem:[#allocation34_spill] sm:$0xff] %v6050_v49 }
 0x265   : > { %2481 = vbcast.lane.b32.xlu1 %v2475_v29, 264  ;;  %2565 = vbcast.lane.b32.xlu0 %v2563_v15, 256  ;;  %v2596_v29 = vrot.slane %v4616_v12, %v7623_v55 }
 0x267   : > { %v6053_v7 = vpop.permute.xlu1 %2126  ;;  %v6055_v60 = vpop.permute.xlu0 %2188 }
 0x268   : > { %7668 = vst [vmem:[#allocation9_spill] sm:$0xff] %v6053_v7  ;;  %7669 = vst [vmem:[#allocation8_spill] sm:$0xff] %v6055_v60 }
 0x269   : > { %2492 = vbcast.lane.b32.xlu1 %v2486_v50, 264  ;;  %2576 = vbcast.lane.b32.xlu0 %v2574_v30, 256  ;;  %v2607_v50 = vrot.slane %v4616_v12, %v7625_v17 }
 0x26b   : > { %v6059_v8 = vpop.permute.xlu1 %2138  ;;  %v6061_v21 = vpop.permute.xlu0 %2200 }
 0x26c   : > { %7670 = vst [vmem:[#allocation10_spill] sm:$0xff] %v6059_v8  ;;  %7671 = vst [vmem:[#allocation11_spill] sm:$0xff] %v6061_v21  ;;  %v2618_v8 = vrot.slane %v4616_v12, %v7627_v39 }
 0x26d   : > { %2503 = vbcast.lane.b32.xlu1 %v2497_v20, 264  ;;  %2587 = vbcast.lane.b32.xlu0 %v2585_v31, 256 }
 0x26f   : > { %v6064_v35 = vpop.permute.xlu1 %2142  ;;  %v6066_v4 = vpop.permute.xlu0 %2204 }
 0x270   : > { %7672 = vst [vmem:[#allocation12_spill] sm:$0xff] %v6064_v35  ;;  %7673 = vst [vmem:[#allocation13_spill] sm:$0xff] %v6066_v4  ;;  %v2629_v35 = vrot.slane %v4616_v12, %v7629_v2 }
 0x271   : > { %2514 = vbcast.lane.b32.xlu1 %v2508_v34, 264  ;;  %2598 = vbcast.lane.b32.xlu0 %v2596_v29, 256 }
 0x273   : > { %v6069_v7 = vpop.permute.xlu1 %2154  ;;  %v6071_v5 = vpop.permute.xlu0 %2216 }
 0x274   : > { %7674 = vst [vmem:[#allocation14_spill] sm:$0xff] %v6069_v7  ;;  %7675 = vst [vmem:[#allocation15_spill] sm:$0xff] %v6071_v5  ;;  %v2640_v7 = vrot.slane %v4616_v12, %v7631_v13 }
 0x275   : > { %2525 = vbcast.lane.b32.xlu1 %v2519_v54, 264  ;;  %2609 = vbcast.lane.b32.xlu0 %v2607_v50, 256 }
 0x277   : > { %v6074_v20 = vpop.permute.xlu1 %2158  ;;  %v6076_v56 = vpop.permute.xlu0 %2220 }
 0x278   : > { %7676 = vst [vmem:[#allocation62_spill] sm:$0xff] %v6074_v20  ;;  %7677 = vst [vmem:[#allocation63_spill] sm:$0xff] %v6076_v56 }
 0x279   : > { %2536 = vbcast.lane.b32.xlu1 %v2530_v43, 264  ;;  %2620 = vbcast.lane.b32.xlu0 %v2618_v8, 256  ;;  %v2651_v43 = vrot.slane %v4616_v12, %v7633_v32 }
 0x27b   : > { %v6079_v34 = vpop.permute.xlu1 %2170  ;;  %v6081_v52 = vpop.permute.xlu0 %2232 }
 0x27c   : > { %7678 = vst [vmem:[#allocation64_spill] sm:$0xff] %v6079_v34  ;;  %7679 = vst [vmem:[#allocation65_spill] sm:$0xff] %v6081_v52 }
 0x27d   : > { %2547 = vbcast.lane.b32.xlu1 %v2541_v37, 264  ;;  %2631 = vbcast.lane.b32.xlu0 %v2629_v35, 256  ;;  %v2662_v37 = vrot.slane %v4616_v12, %v7635_v16 }
 0x27f   : > { %v6084_v54 = vpop.permute.xlu1 %2174  ;;  %v6086_v18 = vpop.permute.xlu0 %2236 }
 0x280   : > { %7680 = vst [vmem:[#allocation66_spill] sm:$0xff] %v6084_v54  ;;  %7681 = vst [vmem:[#allocation67_spill] sm:$0xff] %v6086_v18  ;;  %v2673_v54 = vrot.slane %v4616_v12, %v7637_v47 }
 0x281   : > { %2558 = vbcast.lane.b32.xlu1 %v2552_v59, 264  ;;  %2642 = vbcast.lane.b32.xlu0 %v2640_v7, 256  ;;  %v4617_v59 = vld [vmem:[%s4937_s30 + $0x30] sm:$0xff] }
 0x283   : > { %v6089_v20 = vpop.permute.xlu1 %2186  ;;  %v6091_v48 = vpop.permute.xlu0 %2334 }
 0x284   : > { %7682 = vst [vmem:[#allocation68_spill] sm:$0xff] %v6089_v20 }
 0x285   : > { %2569 = vbcast.lane.b32.xlu1 %v2563_v15, 264  ;;  %2653 = vbcast.lane.b32.xlu0 %v2651_v43, 256  ;;  %v2684_v15 = vrot.slane %v4617_v59, %v7623_v55 }
 0x287   : > { %v6094_v34 = vpop.permute.xlu1 %2190  ;;  %v6096_v10 = vpop.permute.xlu0 %2345 }
 0x288   : > { %7683 = vst [vmem:[#allocation69_spill] sm:$0xff] %v6094_v34 }
 0x289   : > { %2580 = vbcast.lane.b32.xlu1 %v2574_v30, 264  ;;  %2664 = vbcast.lane.b32.xlu0 %v2662_v37, 256  ;;  %v2695_v30 = vrot.slane %v4617_v59, %v7625_v17 }
 0x28b   : > { %v6100_v45 = vpop.permute.xlu1 %2202  ;;  %v6102_v28 = vpop.permute.xlu0 %2356 }
 0x28c   : > { %7684 = vst [vmem:[#allocation70_spill] sm:$0xff] %v6100_v45  ;;  %v2706_v45 = vrot.slane %v4617_v59, %v7627_v39 }
 0x28d   : > { %2591 = vbcast.lane.b32.xlu1 %v2585_v31, 264  ;;  %2675 = vbcast.lane.b32.xlu0 %v2673_v54, 256 }
 0x28f   : > { %v6105_v20 = vpop.permute.xlu1 %2206  ;;  %v6107_v40 = vpop.permute.xlu0 %2367 }
 0x290   : > { %7685 = vst [vmem:[#allocation71_spill] sm:$0xff] %v6105_v20  ;;  %v2717_v20 = vrot.slane %v4617_v59, %v7629_v2 }
 0x291   : > { %2602 = vbcast.lane.b32.xlu1 %v2596_v29, 264  ;;  %2686 = vbcast.lane.b32.xlu0 %v2684_v15, 256 }
 0x293   : > { %v6110_v34 = vpop.permute.xlu1 %2218  ;;  %v6112_v12 = vpop.permute.xlu0 %2378 }
 0x294   : > { %7686 = vst [vmem:[#allocation72_spill] sm:$0xff] %v6110_v34  ;;  %v2728_v34 = vrot.slane %v4617_v59, %v7631_v13 }
 0x295   : > { %2613 = vbcast.lane.b32.xlu1 %v2607_v50, 264  ;;  %2697 = vbcast.lane.b32.xlu0 %v2695_v30, 256 }
 0x297   : > { %v6115_v31 = vpop.permute.xlu1 %2222  ;;  %v6117_v33 = vpop.permute.xlu0 %2389 }
 0x298   : > { %7687 = vst [vmem:[#allocation73_spill] sm:$0xff] %v6115_v31 }
 0x299   : > { %2624 = vbcast.lane.b32.xlu1 %v2618_v8, 264  ;;  %2708 = vbcast.lane.b32.xlu0 %v2706_v45, 256  ;;  %v2739_v8 = vrot.slane %v4617_v59, %v7633_v32 }
 0x29b   : > { %v6120_v29 = vpop.permute.xlu1 %2234  ;;  %v6122_v18 = vpop.permute.xlu0 %2400 }
 0x29c   : > { %7688 = vst [vmem:[#allocation74_spill] sm:$0xff] %v6120_v29 }
 0x29d   : > { %2635 = vbcast.lane.b32.xlu1 %v2629_v35, 264  ;;  %2719 = vbcast.lane.b32.xlu0 %v2717_v20, 256  ;;  %v2750_v35 = vrot.slane %v4617_v59, %v7635_v16 }
 0x29f   : > { %v6125_v50 = vpop.permute.xlu1 %2238  ;;  %v6127_v42 = vpop.permute.xlu0 %2411 }
 0x2a0   : > { %7689 = vst [vmem:[#allocation75_spill] sm:$0xff] %v6125_v50  ;;  %v2761_v50 = vrot.slane %v4617_v59, %v7637_v47 }
 0x2a1   : > { %2646 = vbcast.lane.b32.xlu1 %v2640_v7, 264  ;;  %2730 = vbcast.lane.b32.xlu0 %v2728_v34, 256  ;;  %v6141_v7 = vld [vmem:[%s4937_s30 + $0x38] sm:$0xff]  ;;  %s4526_s30 = sshll.u32 %s7335_s26, 4  ;;  %s7410_s30 = int_to_ptr.vmem [resolvable:$true] %s4526_s30 }
 0x2a3   : > { %v6130_v31 = vpop.permute.xlu1 %2338  ;;  %v6132_v56 = vpop.permute.xlu0 %2422 }
 0x2a4   : > { %7690 = vst [vmem:[#allocation76_spill] sm:$0xff] %v6130_v31 }
 0x2a5   : > { %2657 = vbcast.lane.b32.xlu1 %v2651_v43, 264  ;;  %2741 = vbcast.lane.b32.xlu0 %v2739_v8, 256  ;;  %v2772_v43 = vrot.slane %v6141_v7, %v7623_v55 }
 0x2a7   : > { %v6135_v29 = vpop.permute.xlu1 %2349  ;;  %v6137_v41 = vpop.permute.xlu0 %2433 }
 0x2a9   : > { %2668 = vbcast.lane.b32.xlu1 %v2662_v37, 264  ;;  %2752 = vbcast.lane.b32.xlu0 %v2750_v35, 256  ;;  %v2783_v37 = vrot.slane %v6141_v7, %v7625_v17 }
 0x2ab   : > { %v6143_v4 = vpop.permute.xlu1 %2360  ;;  %v6145_v57 = vpop.permute.xlu0 %2444 }
 0x2ad   : > { %2679 = vbcast.lane.b32.xlu1 %v2673_v54, 264  ;;  %2763 = vbcast.lane.b32.xlu0 %v2761_v50, 256  ;;  %v2794_v54 = vrot.slane %v6141_v7, %v7627_v39 }
 0x2af   : > { %v6149_v60 = vpop.permute.xlu1 %2371  ;;  %v6151_v52 = vpop.permute.xlu0 %2455 }
 0x2b1   : > { %2690 = vbcast.lane.b32.xlu1 %v2684_v15, 264  ;;  %2774 = vbcast.lane.b32.xlu0 %v2772_v43, 256  ;;  %v2805_v15 = vrot.slane %v6141_v7, %v7629_v2 }
 0x2b3   : > { %v6155_v59 = vpop.permute.xlu1 %2382  ;;  %v6157_v11 = vpop.permute.xlu0 %2466 }
 0x2b4   : > { %7691 = vst [vmem:[#allocation77_spill] sm:$0xff] %v6155_v59 }
 0x2b5   : > { %2701 = vbcast.lane.b32.xlu1 %v2695_v30, 264  ;;  %2785 = vbcast.lane.b32.xlu0 %v2783_v37, 256  ;;  %v2816_v30 = vrot.slane %v6141_v7, %v7631_v13 }
 0x2b7   : > { %v6161_v5 = vpop.permute.xlu1 %2393  ;;  %v6163_v22 = vpop.permute.xlu0 %2477 }
 0x2b9   : > { %2712 = vbcast.lane.b32.xlu1 %v2706_v45, 264  ;;  %2796 = vbcast.lane.b32.xlu0 %v2794_v54, 256  ;;  %v6179_v45 = vrot.slane %v6141_v7, %v7633_v32 }
 0x2bb   : > { %v6167_v21 = vpop.permute.xlu1 %2404  ;;  %v6169_v58 = vpop.permute.xlu0 %2488 }
 0x2bc   : > { %7692 = vst [vmem:[#allocation78_spill] sm:$0xff] %v6167_v21 }
 0x2bd   : > { %2723 = vbcast.lane.b32.xlu1 %v2717_v20, 264  ;;  %2807 = vbcast.lane.b32.xlu0 %v2805_v15, 256  ;;  %v6188_v20 = vrot.slane %v6141_v7, %v7637_v47 }
 0x2bf   : > { %v6173_v49 = vpop.permute.xlu1 %2415  ;;  %v6175_v44 = vpop.permute.xlu0 %2499 }
 0x2c1   : > { %2734 = vbcast.lane.b32.xlu1 %v2728_v34, 264  ;;  %2818 = vbcast.lane.b32.xlu0 %v2816_v30, 256 }
 0x2c3   : > { %v6181_v25 = vpop.permute.xlu1 %2426  ;;  %v6183_v1 = vpop.permute.xlu0 %2510 }
 0x2c4   : > { %7693 = vst [vmem:[#allocation79_spill] sm:$0xff] %v6181_v25 }
 0x2c5   : > { %2745 = vbcast.lane.b32.xlu1 %v2739_v8, 264  ;;  %2829 = vbcast.lane.b32.xlu0 %v6179_v45, 256 }
 0x2c7   : > { %v6191_v62 = vpop.permute.xlu1 %2437  ;;  %v6193_v34 = vpop.permute.xlu0 %2521 }
 0x2c8   : > { %7694 = vst [vmem:[#allocation80_spill] sm:$0xff] %v6191_v62 }
 0x2c9   : > { %2756 = vbcast.lane.b32.xlu1 %v2750_v35, 264  ;;  %2851 = vbcast.lane.b32.xlu0 %v6188_v20, 256  ;;  %v6213_v35 = vrot.slane %v4619_v6, %v7633_v32 }
 0x2cb   : > { %v6199_v14 = vpop.permute.xlu1 %2448  ;;  %v6201_v8 = vpop.permute.xlu0 %2532 }
 0x2cc   : > { %7695 = vst [vmem:[#allocation81_spill] sm:$0xff] %v6199_v14 }
 0x2cd   : > { %2767 = vbcast.lane.b32.xlu1 %v2761_v50, 264  ;;  %2873 = vbcast.lane.b32.xlu0 %v6197_v27, 256  ;;  %v6221_v50 = vrot.slane %v4619_v6, %v7637_v47 }
 0x2cf   : > { %v6207_v3 = vpop.permute.xlu1 %2459  ;;  %v6209_v0 = vpop.permute.xlu0 %2543 }
 0x2d0   : > { %7696 = vst [vmem:[#allocation82_spill] sm:$0xff] %v6207_v3  ;;  %v2926_v3 = vrot.slane %v4619_v6, %v7635_v16 }
 0x2d1   : > { %2778 = vbcast.lane.b32.xlu1 %v2772_v43, 264  ;;  %2895 = vbcast.lane.b32.xlu0 %v6205_v53, 256  ;;  %v6230_v43 = vrot.slane %v4620_v26, %v7625_v17  ;;  %v2838_v17 = vrot.slane %v6141_v7, %v7635_v16 }
 0x2d3   : > { %v6215_v61 = vpop.permute.xlu1 %2470  ;;  %v6217_v24 = vpop.permute.xlu0 %2554 }
 0x2d4   : > { %7697 = vst [vmem:[#allocation83_spill] sm:$0xff] %v6215_v61 }
 0x2d5   : > { %2789 = vbcast.lane.b32.xlu1 %v2783_v37, 264  ;;  %2917 = vbcast.lane.b32.xlu0 %v6213_v35, 256  ;;  %v6238_v37 = vrot.slane %v4620_v26, %v7629_v2  ;;  %v2860_v2 = vrot.slane %v4619_v6, %v7623_v55 }
 0x2d7   : > { %v6224_v63 = vpop.permute.xlu1 %2481  ;;  %v6226_v23 = vpop.permute.xlu0 %2565 }
 0x2d8   : > { %7698 = vst [vmem:[#allocation84_spill] sm:$0xff] %v6224_v63  ;;  %v6257_v63 = vrot.slane %v4620_v26, %v7637_v47 }
 0x2d9   : > { %2800 = vbcast.lane.b32.xlu1 %v2794_v54, 264  ;;  %2939 = vbcast.lane.b32.xlu0 %v6221_v50, 256  ;;  %v6248_v54 = vrot.slane %v4620_v26, %v7633_v32  ;;  %v2882_v32 = vrot.slane %v4619_v6, %v7627_v39 }
 0x2db   : > { %v6232_v46 = vpop.permute.xlu1 %2492  ;;  %v6234_v51 = vpop.permute.xlu0 %2576 }
 0x2dc   : > { %7699 = vst [vmem:[#allocation85_spill] sm:$0xff] %v6232_v46  ;;  %v2904_v46 = vrot.slane %v4619_v6, %v7631_v13  ;;  %v2992_v6 = vrot.slane %v4620_v26, %v7631_v13 }
 0x2dd   : > { %2811 = vbcast.lane.b32.xlu1 %v2805_v15, 264  ;;  %2961 = vbcast.lane.b32.xlu0 %v6230_v43, 256 }
 0x2df   : > { %v6240_v36 = vpop.permute.xlu1 %2503  ;;  %v6242_v38 = vpop.permute.xlu0 %2587 }
 0x2e0   : > { %7700 = vst [vmem:[#allocation86_spill] sm:$0xff] %v6240_v36 }
 0x2e1   : > { %2822 = vbcast.lane.b32.xlu1 %v2816_v30, 264  ;;  %2983 = vbcast.lane.b32.xlu0 %v6238_v37, 256 }
 0x2e3   : > { %v6250_v25 = vpop.permute.xlu1 %2514  ;;  %v6252_v15 = vpop.permute.xlu0 %2598 }
 0x2e4   : > { %7701 = vst [vmem:[#allocation87_spill] sm:$0xff] %v6250_v25 }
 0x2e5   : > { %2840 = vbcast.lane.b32.xlu1 %v2838_v17, 256  ;;  %3005 = vbcast.lane.b32.xlu0 %v6248_v54, 256 }
 0x2e7   : > { %v6259_v30 = vpop.permute.xlu1 %2525  ;;  %v6261_v61 = vpop.permute.xlu0 %2609 }
 0x2e8   : > { %7702 = vst [vmem:[#allocation88_spill] sm:$0xff] %v6259_v30  ;;  %v2948_v30 = vrot.slane %v4620_v26, %v7623_v55  ;;  %v3014_v55 = vrot.slane %v4620_v26, %v7635_v16 }
 0x2e9   : > { %2862 = vbcast.lane.b32.xlu1 %v2860_v2, 256  ;;  %3027 = vbcast.lane.b32.xlu0 %v6257_v63, 256 }
 0x2eb   : > { %v6265_v7 = vpop.permute.xlu1 %2536  ;;  %v6267_v14 = vpop.permute.xlu0 %2620 }
 0x2ec   : > { %7703 = vst [vmem:[#allocation89_spill] sm:$0xff] %v6265_v7 }
 0x2ed   : > { %2884 = vbcast.lane.b32.xlu1 %v2882_v32, 256  ;;  %2844 = vbcast.lane.b32.xlu0 %v2838_v17, 264 }
 0x2ef   : > { %v6270_v36 = vpop.permute.xlu1 %2547  ;;  %v6272_v47 = vpop.permute.xlu0 %2631 }
 0x2f0   : > { %7704 = vst [vmem:[#allocation90_spill] sm:$0xff] %v6270_v36  ;;  %v2970_v36 = vrot.slane %v4620_v26, %v7627_v39 }
 0x2f1   : > { %2906 = vbcast.lane.b32.xlu1 %v2904_v46, 256  ;;  %2866 = vbcast.lane.b32.xlu0 %v2860_v2, 264 }
 0x2f3   : > { %v6275_v62 = vpop.permute.xlu1 %2558  ;;  %v6277_v25 = vpop.permute.xlu0 %2642 }
 0x2f4   : > { %7705 = vst [vmem:[#allocation91_spill] sm:$0xff] %v6275_v62 }
 0x2f5   : > { %2928 = vbcast.lane.b32.xlu1 %v2926_v3, 256  ;;  %2888 = vbcast.lane.b32.xlu0 %v2882_v32, 264 }
 0x2f7   : > { %v6280_v7 = vpop.permute.xlu1 %2569  ;;  %v6282_v17 = vpop.permute.xlu0 %2653 }
 0x2f8   : > { %7706 = vst [vmem:[#allocation92_spill] sm:$0xff] %v6280_v7 }
 0x2f9   : > { %2950 = vbcast.lane.b32.xlu1 %v2948_v30, 256  ;;  %2910 = vbcast.lane.b32.xlu0 %v2904_v46, 264 }
 0x2fb   : > { %v6285_v59 = vpop.permute.xlu1 %2580  ;;  %v6287_v2 = vpop.permute.xlu0 %2664 }
 0x2fc   : > { %7707 = vst [vmem:[#allocation93_spill] sm:$0xff] %v6285_v59 }
 0x2fd   : > { %2972 = vbcast.lane.b32.xlu1 %v2970_v36, 256  ;;  %2932 = vbcast.lane.b32.xlu0 %v2926_v3, 264 }
 0x2ff   : > { %v6290_v62 = vpop.permute.xlu1 %2591  ;;  %v6292_v32 = vpop.permute.xlu0 %2675 }
 0x300   : > { %7708 = vst [vmem:[#allocation94_spill] sm:$0xff] %v6290_v62 }
 0x301   : > { %2994 = vbcast.lane.b32.xlu1 %v2992_v6, 256  ;;  %2954 = vbcast.lane.b32.xlu0 %v2948_v30, 264 }
 0x303   : > { %v6295_v7 = vpop.permute.xlu1 %2602  ;;  %v2687_v46 = vpop.permute.xlu0 %2686 }
 0x304   : > { %7709 = vst [vmem:[#allocation95_spill] sm:$0xff] %v6295_v7  ;;  %v3033_v62 = vsel %vm851_vm0, %v6091_v48, %v2687_v46 }
 0x305   : > { %3016 = vbcast.lane.b32.xlu1 %v3014_v55, 256  ;;  %2976 = vbcast.lane.b32.xlu0 %v2970_v36, 264 }
 0x307   : > { %v6297_v39 = vpop.permute.xlu1 %2613  ;;  %v2698_v59 = vpop.permute.xlu0 %2697 }
 0x308   : > { %7710 = vst [vmem:[#allocation96_spill] sm:$0xff] %v6297_v39 }
 0x309   : > { %2833 = vbcast.lane.b32.xlu1 %v6179_v45, 264  ;;  %2998 = vbcast.lane.b32.xlu0 %v2992_v6, 264  ;;  %v3035_v45 = vsel %vm851_vm0, %v6096_v10, %v2698_v59 }
 0x30b   : > { %v6300_v13 = vpop.permute.xlu1 %2624  ;;  %v2709_v3 = vpop.permute.xlu0 %2708 }
 0x30c   : > { %7711 = vst [vmem:[#allocation97_spill] sm:$0xff] %v6300_v13  ;;  %v3037_v26 = vsel %vm851_vm0, %v6102_v28, %v2709_v3 }
 0x30d   : > { %v3098_v16 = vcombine.high %v3033_v62, %v3037_v26  ;;  %2855 = vbcast.lane.b32.xlu1 %v6188_v20, 264  ;;  %3020 = vbcast.lane.b32.xlu0 %v3014_v55, 264  ;;  %v3097_v36 = vcombine.low %v3033_v62, %v3037_v26 }
 0x30f   : > { %v6307_v30 = vpop.permute.xlu1 %2635  ;;  %v2720_v7 = vpop.permute.xlu0 %2719  ;;  %v3105_v28 = vrot.slane %v3097_v36, %v5182_v9  ;;  %v3112_v48 = vrot.slane %v3098_v16, %v5182_v9 }
 0x310   : > { %7712 = vst [vmem:[#allocation98_spill] sm:$0xff] %v6307_v30  ;;  %v3039_v6 = vsel %vm851_vm0, %v6107_v40, %v2720_v7 }
 0x311   : > { %v3113_v39 = vcombine.low %v3035_v45, %v3039_v6  ;;  %v3114_v13 = vcombine.high %v3035_v45, %v3039_v6  ;;  %2877 = vbcast.lane.b32.xlu1 %v6197_v27, 264 }
 0x313   : > { %v3121_v20 = vrot.slane %v3113_v39, %v5182_v9  ;;  %v3128_v62 = vrot.slane %v3114_v13, %v5182_v9  ;;  %v6318_v55 = vpop.permute.xlu1 %2646  ;;  %v2731_v46 = vpop.permute.xlu0 %2730 }
 0x314   : > { %7713 = vst [vmem:[#allocation99_spill] sm:$0xff] %v6318_v55  ;;  %v3041_v39 = vsel %vm851_vm0, %v6112_v12, %v2731_v46 }
 0x315   : > { %v3162_v3 = vcombine.high %v3105_v28, %v3121_v20  ;;  %v3177_v10 = vcombine.low %v3112_v48, %v3128_v62  ;;  %v3178_v59 = vcombine.high %v3112_v48, %v3128_v62  ;;  %2899 = vbcast.lane.b32.xlu1 %v6205_v53, 264  ;;  %v3161_v12 = vcombine.low %v3105_v28, %v3121_v20 }
 0x317   : > { %v6321_v40 = vpop.permute.xlu1 %2657  ;;  %v2742_v7 = vpop.permute.xlu0 %2741  ;;  %v6349_v28 = vrot.slane %v3162_v3, %v5209_v19  ;;  %v6352_v20 = vrot.slane %v3177_v10, %v5209_v19  ;;  %v6369_v3 = vrot.slane %v3178_v59, %v5209_v19 }
 0x318   : > { %7714 = vst [vmem:[#allocation100_spill] sm:$0xff] %v6321_v40  ;;  %v3043_v6 = vsel %vm851_vm0, %v6117_v33, %v2742_v7 }
 0x319   : > { %2921 = vbcast.lane.b32.xlu1 %v6213_v35, 264  ;;  %7721 = vst [vmem:[#allocation107_spill] sm:$0xff] %v6369_v3 }
 0x31b   : > { %v6324_v27 = vpop.permute.xlu1 %2668  ;;  %v2753_v26 = vpop.permute.xlu0 %2752 }
 0x31c   : > { %7715 = vst [vmem:[#allocation101_spill] sm:$0xff] %v6324_v27  ;;  %v3045_v13 = vsel %vm851_vm0, %v6122_v18, %v2753_v26 }
 0x31d   : > { %v3130_v16 = vcombine.high %v3041_v39, %v3045_v13  ;;  %2943 = vbcast.lane.b32.xlu1 %v6221_v50, 264  ;;  %v3129_v36 = vcombine.low %v3041_v39, %v3045_v13 }
 0x31f   : > { %v6331_v45 = vpop.permute.xlu1 %2679  ;;  %v2764_v53 = vpop.permute.xlu0 %2763  ;;  %v3137_v18 = vrot.slane %v3129_v36, %v5182_v9  ;;  %v3144_v46 = vrot.slane %v3130_v16, %v5182_v9 }
 0x320   : > { %7716 = vst [vmem:[#allocation102_spill] sm:$0xff] %v6331_v45  ;;  %v3047_v35 = vsel %vm851_vm0, %v6127_v42, %v2764_v53 }
 0x321   : > { %v3145_v48 = vcombine.low %v3043_v6, %v3047_v35  ;;  %v3146_v62 = vcombine.high %v3043_v6, %v3047_v35  ;;  %2965 = vbcast.lane.b32.xlu1 %v6230_v43, 264  ;;  %v6346_v43 = vrot.slane %v3161_v12, %v5209_v19 }
 0x323   : > { %v3153_v50 = vrot.slane %v3145_v48, %v5182_v9  ;;  %v3160_v26 = vrot.slane %v3146_v62, %v5182_v9  ;;  %v6342_v39 = vpop.permute.xlu1 %2690  ;;  %v2775_v13 = vpop.permute.xlu0 %2774  ;;  %7718 = vst [vmem:[#allocation104_spill] sm:$0xff] %v6346_v43 }
 0x324   : > { %7717 = vst [vmem:[#allocation103_spill] sm:$0xff] %v6342_v39 }
 0x325   : > { %v3193_v33 = vcombine.low %v3137_v18, %v3153_v50  ;;  %v3194_v7 = vcombine.high %v3137_v18, %v3153_v50  ;;  %v3209_v55 = vcombine.low %v3144_v46, %v3160_v26  ;;  %v3210_v42 = vcombine.high %v3144_v46, %v3160_v26  ;;  %2987 = vbcast.lane.b32.xlu1 %v6238_v37, 264 }
 0x327   : > { %v6355_v16 = vrot.slane %v3193_v33, %v5209_v19  ;;  %v6358_v36 = vrot.slane %v3194_v7, %v5209_v19  ;;  %v6361_v53 = vrot.slane %v3209_v55, %v5209_v19  ;;  %v6364_v37 = vrot.slane %v3210_v42, %v5209_v19  ;;  %v6366_v6 = vpop.permute.xlu1 %2701  ;;  %v2786_v35 = vpop.permute.xlu0 %2785 }
 0x328   : > { %v6416_v27 = vsel %vm851_vm0, %v6137_v41, %v2786_v35 }
 0x329   : > { %7719 = vst [vmem:[#allocation105_spill] sm:$0xff] %v6355_v16  ;;  %7720 = vst [vmem:[#allocation106_spill] sm:$0xff] %v6364_v37  ;;  %3009 = vbcast.lane.b32.xlu1 %v6248_v54, 264  ;;  %v3226_v10 = vcombine.high %v6346_v43, %v6355_v16 }
 0x32b   : > { %v6388_v46 = vpop.permute.xlu1 %2712  ;;  %4189 = vrot.lane.b32.xlu0 %v3226_v10, %s4801_s17  ;;  %v2797_v50 = vpop.permute.xlu0 %2796 }
 0x32c   : > { %v6420_v45 = vsel %vm851_vm0, %v6145_v57, %v2797_v50 }
 0x32d   : > { %3031 = vbcast.lane.b32.xlu1 %v6257_v63, 264 }
 0x32f   : > { %v6392_v26 = vpop.permute.xlu1 %2723  ;;  %v2808_v33 = vpop.permute.xlu0 %2807 }
 0x330   : > { %v6412_v40 = vsel %vm851_vm0, %v6151_v52, %v2808_v33  ;;  %v6432_v52 = vsel %vm851_vm0, %v6132_v56, %v2775_v13 }
 0x331   : > { %v3233_v41 = vcombine.low %v6432_v52, %v6420_v45 }
 0x333   : > { %v6394_v7 = vpop.permute.xlu1 %2734  ;;  %v2819_v42 = vpop.permute.xlu0 %2818 }
 0x334   : > { %7722 = vst [vmem:[#allocation108_spill] sm:$0xff] %v6394_v7 }
 0x337   : > { %v6396_v59 = vpop.permute.xlu1 %2745  ;;  %v2830_v12 = vpop.permute.xlu0 %2829 }
 0x338   : > { %v6438_v57 = vsel %vm851_vm0, %v6163_v22, %v2830_v12  ;;  %v6456_v12 = vrot.slane %v3233_v41, %v5182_v9 }
 0x33b   : > { %v6398_v54 = vpop.permute.xlu1 %2756  ;;  %v2852_v18 = vpop.permute.xlu0 %2851 }
 0x33c   : > { %7723 = vst [vmem:[#allocation109_spill] sm:$0xff] %v6398_v54 }
 0x33f   : > { %v6400_v62 = vpop.permute.xlu1 %2767  ;;  %v2874_v10 = vpop.permute.xlu0 %2873 }
 0x343   : > { %v6402_v55 = vpop.permute.xlu1 %2778  ;;  %v2896_v16 = vpop.permute.xlu0 %2895 }
 0x344   : > { %7724 = vst [vmem:[#allocation110_spill] sm:$0xff] %v6402_v55  ;;  %v6482_v37 = vsel %vm851_vm0, %v6209_v0, %v2896_v16 }
 0x347   : > { %v6404_v48 = vpop.permute.xlu1 %2789  ;;  %v2918_v30 = vpop.permute.xlu0 %2917 }
 0x348   : > { %7725 = vst [vmem:[#allocation111_spill] sm:$0xff] %v6404_v48 }
 0x34b   : > { %v6406_v63 = vpop.permute.xlu1 %2800  ;;  %v2940_v56 = vpop.permute.xlu0 %2939 }
 0x34c   : > { %7726 = vst [vmem:[#allocation112_spill] sm:$0xff] %v6406_v63  ;;  %v3249_v63 = vcombine.low %v6416_v27, %v6412_v40 }
 0x34e   : > { %v6443_v33 = vrot.slane %v3249_v63, %v5182_v9 }
 0x34f   : > { %v6408_v43 = vpop.permute.xlu1 %2811 }
 0x350   : > { %7727 = vst [vmem:[#allocation113_spill] sm:$0xff] %v6408_v43  ;;  %v6428_v43 = vsel %vm851_vm0, %v6175_v44, %v2852_v18  ;;  %v6447_v44 = vsel %vm851_vm0, %v6157_v11, %v2819_v42  ;;  %v3297_v11 = vcombine.low %v6456_v12, %v6443_v33  ;;  %v2962_v42 = vpop.permute.xlu0 %2961 }
 0x351   : > { %v3281_v35 = vcombine.low %v6438_v57, %v6428_v43 }
 0x352   : > { %v6472_v41 = vrot.slane %v3297_v11, %v5209_v19  ;;  %v6490_v11 = vsel %vm851_vm0, %v6242_v38, %v2940_v56 }
 0x353   : > { %v6422_v55 = vpop.permute.xlu1 %2822  ;;  %v6459_v18 = vrot.slane %v3281_v35, %v5182_v9 }
 0x354   : > { %7728 = vst [vmem:[#allocation114_spill] sm:$0xff] %v6422_v55  ;;  %7730 = vst [vmem:[#allocation116_spill] sm:$0xff] %v6472_v41  ;;  %v2984_v7 = vpop.permute.xlu0 %2983 }
 0x357   : > { %v2841_v50 = vpop.permute.xlu1 %2840 }
 0x358   : > { %v6451_v13 = vsel %vm851_vm0, %v6169_v58, %v2841_v50  ;;  %v3006_v39 = vpop.permute.xlu0 %3005 }
 0x359   : > { %v3265_v22 = vcombine.low %v6447_v44, %v6451_v13 }
 0x35b   : > { %v6462_v63 = vrot.slane %v3265_v22, %v5182_v9  ;;  %v2863_v55 = vpop.permute.xlu1 %2862 }
 0x35c   : > { %v6486_v3 = vsel %vm851_vm0, %v6183_v1, %v2863_v55  ;;  %v3075_v1 = vsel %vm851_vm0, %v6226_v23, %v2918_v30  ;;  %v3028_v54 = vpop.permute.xlu0 %3027 }
 0x35d   : > { %v3329_v58 = vcombine.low %v6462_v63, %v6459_v18  ;;  %v3689_v16 = vcombine.low %v3075_v1, %v6490_v11 }
 0x35f   : > { %v6469_v50 = vrot.slane %v3329_v58, %v5209_v19  ;;  %v2885_v48 = vpop.permute.xlu1 %2884  ;;  %v3697_v23 = vrot.slane %v3689_v16, %v5182_v9  ;;  %v6528_v16 = vsel %vm851_vm0, %v6272_v47, %v2984_v7 }
 0x360   : > { %v6476_v35 = vsel %vm851_vm0, %v6201_v8, %v2885_v48  ;;  %v6497_v48 = vsel %vm851_vm0, %v6193_v34, %v2874_v10  ;;  %v6551_v7 = vpop.permute.xlu0 %2844 }
 0x361   : > { %7729 = vst [vmem:[#allocation115_spill] sm:$0xff] %v6469_v50  ;;  %v3362_v22 = vcombine.high %v6472_v41, %v6469_v50  ;;  %v3641_v8 = vcombine.low %v6486_v3, %v6476_v35  ;;  %v3657_v0 = vcombine.low %v6497_v48, %v6482_v37 }
 0x363   : > { %v2907_v58 = vpop.permute.xlu1 %2906  ;;  %4191 = vrot.lane.b32.xlu1 %v3362_v22, %s4801_s17  ;;  %v3649_v56 = vrot.slane %v3641_v8, %v5182_v9  ;;  %v3665_v31 = vrot.slane %v3657_v0, %v5182_v9 }
 0x364   : > { %v3073_v22 = vsel %vm851_vm0, %v6217_v24, %v2907_v58 }
 0x365   : > { %v3705_v50 = vcombine.low %v3649_v56, %v3665_v31 }
 0x367   : > { %v2929_v55 = vpop.permute.xlu1 %2928  ;;  %v6518_v24 = vrot.slane %v3705_v50, %v5209_v19  ;;  %v6536_v50 = vsel %vm851_vm0, %v6292_v32, %v3028_v54  ;;  %v7770_v32 = vld [vmem:[#allocation102_spill] sm:$0xff] }
 0x368   : > { %v3077_v34 = vsel %vm851_vm0, %v6234_v51, %v2929_v55 }
 0x369   : > { %v3673_v10 = vcombine.low %v3073_v22, %v3077_v34  ;;  %7732 = vst [vmem:[#allocation118_spill] sm:$0xff] %v6518_v24 }
 0x36b   : > { %v3681_v30 = vrot.slane %v3673_v10, %v5182_v9  ;;  %v2951_v38 = vpop.permute.xlu1 %2950  ;;  %v3706_v10 = vcombine.high %v3649_v56, %v3665_v31 }
 0x36d   : > { %v3737_v41 = vcombine.low %v3681_v30, %v3697_v23  ;;  %v3738_v58 = vcombine.high %v3681_v30, %v3697_v23  ;;  %v6543_v23 = vsel %vm851_vm0, %v6261_v61, %v2962_v42  ;;  %v3720_v61 = vrot.slane %v3706_v10, %v5209_v19 }
 0x36e   : > { %v3793_v47 = vcombine.low %v6543_v23, %v6528_v16 }
 0x36f   : > { %v6515_v21 = vrot.slane %v3737_v41, %v5209_v19  ;;  %v2973_v8 = vpop.permute.xlu1 %2972  ;;  %v6532_v41 = vsel %vm851_vm0, %v6252_v15, %v2951_v38  ;;  %v6549_v15 = vsel %vm851_vm0, %v6282_v17, %v3006_v39  ;;  %v3752_v31 = vrot.slane %v3738_v58, %v5209_v19 }
 0x370   : > { %v6522_v51 = vsel %vm851_vm0, %v6267_v14, %v2973_v8  ;;  %v3825_v54 = vcombine.low %v6549_v15, %v6536_v50  ;;  %v7733_v39 = vcombine.low %v6349_v28, %v6358_v36  ;;  %v3801_v8 = vrot.slane %v3793_v47, %v5182_v9 }
 0x371   : > { %7731 = vst [vmem:[#allocation117_spill] sm:$0xff] %v6515_v21  ;;  %v3770_v0 = vcombine.high %v6518_v24, %v6515_v21  ;;  %v3777_v14 = vcombine.low %v6532_v41, %v6522_v51  ;;  %v3674_v58 = vcombine.high %v3073_v22, %v3077_v34  ;;  %v3658_v22 = vcombine.high %v6497_v48, %v6482_v37  ;;  %v7772_v21 = vld [vmem:[#allocation101_spill] sm:$0xff] }
 0x372   : > { %v3833_v10 = vrot.slane %v3825_v54, %v5182_v9  ;;  %v3330_v34 = vcombine.high %v6462_v63, %v6459_v18  ;;  %v7736_v63 = vcombine.high %v6349_v28, %v6358_v36 }
 0x373   : > { %v2995_v55 = vpop.permute.xlu1 %2994  ;;  %4193 = vrot.lane.b32.xlu0 %v3770_v0, %s4801_s17  ;;  %v3785_v42 = vrot.slane %v3777_v14, %v5182_v9  ;;  %v3771_v0 = vcombine.low %v3720_v61, %v3752_v31  ;;  %v3642_v14 = vcombine.high %v6486_v3, %v6476_v35  ;;  %v6590_v54 = vrot.slane %v3674_v58, %v5182_v9 }
 0x374   : > { %v6562_v56 = vsel %vm851_vm0, %v6277_v25, %v2995_v55  ;;  %v3298_v3 = vcombine.high %v6456_v12, %v6443_v33  ;;  %v6613_v48 = vrot.slane %v3658_v22, %v5182_v9  ;;  %v3266_v22 = vcombine.high %v6447_v44, %v6451_v13 }
 0x375   : > { %v6603_v37 = vrot.slane %v3642_v14, %v5182_v9  ;;  %v7737_v13 = vcombine.low %v6352_v20, %v6361_v53 }
 0x376   : > { %v3312_v28 = vrot.slane %v3298_v3, %v5209_v19 }
 0x377   : > { %v3017_v38 = vpop.permute.xlu1 %3016  ;;  %4205 = vrot.lane.b32.xlu0 %v7733_v39, %s4802_s25  ;;  %v3841_v39 = vcombine.low %v3785_v42, %v3801_v8  ;;  %v3721_v36 = vcombine.low %v6603_v37, %v6613_v48 }
 0x378   : > { %v6566_v17 = vsel %vm851_vm0, %v6287_v2, %v3017_v38  ;;  %v3690_v2 = vcombine.high %v3075_v1, %v6490_v11  ;;  %v6582_v38 = vpop.permute.xlu0 %2866 }
 0x379   : > { %v3809_v30 = vcombine.low %v6562_v56, %v6566_v17  ;;  %v6606_v18 = vrot.slane %v3841_v39, %v5209_v19  ;;  %v3842_v39 = vcombine.high %v3785_v42, %v3801_v8  ;;  %v3282_v42 = vcombine.high %v6438_v57, %v6428_v43 }
 0x37a   : > { %v6600_v35 = vrot.slane %v3690_v2, %v5182_v9  ;;  %v3810_v43 = vcombine.high %v6562_v56, %v6566_v17  ;;  %v3794_v56 = vcombine.high %v6543_v23, %v6528_v16  ;;  %v7738_v23 = vcombine.high %v6352_v20, %v6361_v53 }
 0x37b   : > { %v3817_v25 = vrot.slane %v3809_v30, %v5182_v9  ;;  %v6577_v55 = vpop.permute.xlu1 %2833  ;;  %4209 = vrot.lane.b32.xlu0 %v3771_v0, %s4802_s25  ;;  %7735 = vst [vmem:[#allocation120_spill] sm:$0xff] %v6606_v18  ;;  %v3344_v30 = vrot.slane %v3330_v34, %v5209_v19  ;;  %v3772_v0 = vcombine.high %v3720_v61, %v3752_v31 }
 0x37c   : > { %v3753_v33 = vcombine.low %v6590_v54, %v6600_v35  ;;  %v6618_v12 = vpop.permute.xlu0 %2888  ;;  %v3250_v34 = vcombine.high %v6416_v27, %v6412_v40  ;;  %v3856_v44 = vrot.slane %v3842_v39, %v5209_v19  ;;  %v3234_v40 = vcombine.high %v6432_v52, %v6420_v45 }
 0x37d   : > { %v3873_v47 = vcombine.low %v3817_v25, %v3833_v10  ;;  %v3874_v58 = vcombine.high %v3817_v25, %v3833_v10  ;;  %v3363_v10 = vcombine.low %v3312_v28, %v3344_v30  ;;  %v6653_v27 = vrot.slane %v3266_v22, %v5182_v9 }
 0x37e   : > { %v3761_v31 = vrot.slane %v3753_v33, %v5209_v19  ;;  %v6658_v33 = vrot.slane %v3250_v34, %v5182_v9  ;;  %v3778_v45 = vcombine.high %v6532_v41, %v6522_v51  ;;  %v6670_v52 = vrot.slane %v3234_v40, %v5182_v9  ;;  %v7744_v40 = vld [vmem:[#allocation77_spill] sm:$0xff] }
 0x37f   : > { %v6593_v11 = vrot.slane %v3873_v47, %v5209_v19  ;;  %v6595_v1 = vpop.permute.xlu1 %2855  ;;  %4221 = vrot.lane.b32.xlu0 %v7736_v63, %s4803_s27  ;;  %v3888_v61 = vrot.slane %v3874_v58, %v5209_v19  ;;  %v3729_v47 = vrot.slane %v3721_v36, %v5209_v19  ;;  %v6661_v58 = vrot.slane %v3282_v42, %v5182_v9 }
 0x380   : > { %v6642_v3 = vpop.permute.xlu0 %2910  ;;  %v6677_v39 = vrot.slane %v3810_v43, %v5182_v9  ;;  %v3313_v51 = vcombine.low %v6670_v52, %v6658_v33  ;;  %v6690_v16 = vrot.slane %v3778_v45, %v5182_v9  ;;  %v3754_v20 = vcombine.high %v6590_v54, %v6600_v35  ;;  %v7739_v35 = vld [vmem:[#allocation109_spill] sm:$0xff]  ;;  %v7745_v45 = vld [vmem:[#allocation94_spill] sm:$0xff] }
 0x381   : > { %7734 = vst [vmem:[#allocation119_spill] sm:$0xff] %v6593_v11  ;;  %v3906_v2 = vcombine.high %v6606_v18, %v6593_v11  ;;  %v3773_v57 = vcombine.low %v3729_v47, %v3761_v31  ;;  %v3907_v63 = vcombine.low %v3856_v44, %v3888_v61  ;;  %v3345_v17 = vcombine.low %v6653_v27, %v6661_v58 }
 0x382   : > { %v3908_v34 = vcombine.high %v3856_v44, %v3888_v61 }
 0x383   : > { %v6622_v14 = vpop.permute.xlu1 %2877  ;;  %4225 = vrot.lane.b32.xlu0 %v3772_v0, %s4803_s27  ;;  %4195 = vrot.lane.b32.xlu1 %v3906_v2, %s4801_s17  ;;  %v3826_v2 = vcombine.high %v6549_v15, %v6536_v50  ;;  %v3364_v50 = vcombine.high %v3312_v28, %v3344_v30  ;;  %v6684_v15 = vsel %vm851_vm0, %v6149_v60, %v6392_v26  ;;  %s4630_s17 = sshll.u32 %s4850_s10, 9 }
 0x384   : > { %v2933_v36 = vpop.permute.xlu0 %2932  ;;  %v6700_v30 = vsel %vm851_vm0, %v6135_v29, %v6366_v6  ;;  %v6705_v60 = vsel %vm851_vm0, %v6173_v49, %v6400_v62  ;;  %v6708_v26 = vrot.slane %v3794_v56, %v5182_v9  ;;  %v3353_v28 = vrot.slane %v3345_v17, %v5209_v19  ;;  %s7417_s10 = scalar_lea.hbm %s7466_s1, %s4630_s17 }
 0x385   : > { %v6687_v22 = vrot.slane %v3826_v2, %v5182_v9  ;;  %v6718_v29 = vsel %vm851_vm0, %v6143_v4, %v6388_v46  ;;  %v3385_v49 = vcombine.low %v6700_v30, %v6684_v15  ;;  %v3321_v6 = vrot.slane %v3313_v51, %v5209_v19 }
 0x386   : > { %v6726_v62 = vsel %vm851_vm0, %v6161_v5, %v6396_v59  ;;  %v3722_v4 = vcombine.high %v6603_v37, %v6613_v48  ;;  %v3857_v46 = vcombine.low %v6690_v16, %v6708_v26  ;;  %v7741_v5 = vld [vmem:[#allocation103_spill] sm:$0xff]  ;;  %v7742_v59 = vld [vmem:[#allocation76_spill] sm:$0xff]  ;;  %v3768_v48 = vrot.slane %v3754_v20, %v5209_v19 }
 0x387   : > { %v6639_v8 = vpop.permute.xlu1 %2899  ;;  %4237 = vrot.lane.b32.xlu0 %v7737_v13, %s4804_s28  ;;  %4207 = vrot.lane.b32.xlu1 %v3363_v10, %s4802_s25  ;;  %v3889_v53 = vcombine.low %v6677_v39, %v6687_v22  ;;  %v3774_v10 = vcombine.high %v3729_v47, %v3761_v31  ;;  %v7740_v31 = vld [vmem:[#allocation78_spill] sm:$0xff]  ;;  %v6746_v47 = vsel %vm851_vm0, %v7742_v59, %v7741_v5  ;;  %v7743_v13 = vld [vmem:[#allocation108_spill] sm:$0xff]  ;;  %v7746_v20 = vld [vmem:[#allocation107_spill] sm:$0xff] }
 0x388   : > { %v6733_v61 = vsel %vm851_vm0, %v7740_v31, %v7739_v35  ;;  %v6739_v42 = vpop.permute.xlu0 %2954  ;;  %v3417_v44 = vcombine.low %v6726_v62, %v6705_v60  ;;  %v6753_v37 = vsel %vm851_vm0, %v7744_v40, %v7743_v13  ;;  %v6766_v17 = vrot.slane %v3385_v49, %v5182_v9  ;;  %v7750_v35 = vld [vmem:[#allocation90_spill] sm:$0xff]  ;;  %v7752_v5 = vld [vmem:[#allocation89_spill] sm:$0xff] }
 0x389   : > { %v3897_v43 = vrot.slane %v3889_v53, %v5209_v19  ;;  %v3401_v2 = vcombine.low %v6753_v37, %v6733_v61  ;;  %v3865_v51 = vrot.slane %v3857_v46, %v5209_v19  ;;  %v7747_v53 = vld [vmem:[#allocation106_spill] sm:$0xff]  ;;  %v6787_v31 = vsel %vm851_vm0, %v7750_v35, %v6639_v8 }
 0x38a   : > { %v6796_v59 = vsel %vm851_vm0, %v7752_v5, %v6618_v12  ;;  %v7754_v12 = vld [vmem:[#allocation88_spill] sm:$0xff] }
 0x38b   : > { %v2922_v0 = vpop.permute.xlu1 %2921  ;;  %4241 = vrot.lane.b32.xlu0 %v3773_v57, %s4804_s28  ;;  %4211 = vrot.lane.b32.xlu1 %v3907_v63, %s4802_s25  ;;  %v3365_v57 = vcombine.low %v3321_v6, %v3353_v28  ;;  %v3369_v63 = vcombine.low %v6746_v47, %v6718_v29  ;;  %v3909_v40 = vcombine.low %v3865_v51, %v3897_v43 }
 0x38c   : > { %v6806_v8 = vrot.slane %v3401_v2, %v5182_v9 }
 0x38f   : > { %v2944_v41 = vpop.permute.xlu1 %2943  ;;  %4253 = vrot.lane.b32.xlu0 %v7738_v23, %s4805_s29  ;;  %4223 = vrot.lane.b32.xlu1 %v3364_v50, %s4803_s27  ;;  %v3736_v50 = vrot.slane %v3722_v4, %v5209_v19  ;;  %v7751_v4 = vld [vmem:[#allocation92_spill] sm:$0xff] }
 0x390   : > { %v6763_v56 = vsel %vm851_vm0, %v7745_v45, %v2944_v41  ;;  %v7749_v41 = vld [vmem:[#allocation93_spill] sm:$0xff]  ;;  %v6791_v46 = vsel %vm851_vm0, %v7751_v4, %v2922_v0  ;;  %v7753_v0 = vld [vmem:[#allocation91_spill] sm:$0xff] }
 0x391   : > { %v6782_v49 = vsel %vm851_vm0, %v7749_v41, %v2933_v36  ;;  %v3961_v36 = vcombine.low %v6791_v46, %v6763_v56  ;;  %v3775_v13 = vcombine.low %v3736_v50, %v3768_v48  ;;  %v6811_v45 = vsel %vm851_vm0, %v7753_v0, %v6642_v3  ;;  %v7755_v41 = vld [vmem:[#allocation87_spill] sm:$0xff] }
 0x392   : > { %v6821_v35 = vsel %vm851_vm0, %v7755_v41, %v6582_v38  ;;  %v3346_v38 = vcombine.high %v6653_v27, %v6661_v58  ;;  %v7756_v27 = vcombine.high %v7746_v20, %v7747_v53 }
 0x393   : > { %v6728_v54 = vpop.permute.xlu1 %2965  ;;  %4257 = vrot.lane.b32.xlu0 %v3774_v10, %s4805_s29  ;;  %4227 = vrot.lane.b32.xlu1 %v3908_v34, %s4803_s27  ;;  %v7748_v10 = vcombine.low %v7746_v20, %v7747_v53  ;;  %v6778_v34 = vrot.slane %v3417_v44, %v5182_v9  ;;  %v6798_v44 = vpop.permute.xlu0 %2976  ;;  %v3913_v4 = vcombine.low %v6821_v35, %v6796_v59 }
 0x394   : > { %v6838_v5 = vrot.slane %v3961_v36, %v5182_v9  ;;  %v3776_v53 = vcombine.high %v3736_v50, %v3768_v48  ;;  %v3910_v36 = vcombine.high %v3865_v51, %v3897_v43  ;;  %v3858_v43 = vcombine.high %v6690_v16, %v6708_v26  ;;  %v7767_v16 = vld [vmem:[#allocation84_spill] sm:$0xff] }
 0x395   : > { %v6907_v26 = vsel %vm851_vm0, %v7767_v16, %v6577_v55 }
 0x397   : > { %v6770_v23 = vpop.permute.xlu1 %2987  ;;  %4269 = vrot.lane.b32.xlu0 %v7748_v10, %s4806_s2  ;;  %4239 = vrot.lane.b32.xlu1 %v3365_v57, %s4804_s28  ;;  %v6803_v57 = vrot.slane %v3369_v63, %v5182_v9  ;;  %v6816_v10 = vsel %vm851_vm0, %v7754_v12, %v6622_v14  ;;  %v3945_v63 = vcombine.low %v6811_v45, %v6782_v49  ;;  %v2999_v41 = vpop.permute.xlu0 %2998 }
 0x398   : > { %v3929_v2 = vcombine.low %v6816_v10, %v6787_v31  ;;  %v3465_v14 = vcombine.low %v6806_v8, %v6778_v34  ;;  %v3366_v12 = vcombine.high %v3321_v6, %v3353_v28  ;;  %v3890_v6 = vcombine.high %v6677_v39, %v6687_v22  ;;  %v7762_v22 = vld [vmem:[#allocation85_spill] sm:$0xff] }
 0x399   : > { %v3433_v3 = vcombine.low %v6803_v57, %v6766_v17  ;;  %v6886_v48 = vsel %vm851_vm0, %v7762_v22, %v6551_v7 }
 0x39a   : > { %v6846_v25 = vrot.slane %v3929_v2, %v5182_v9  ;;  %v6857_v28 = vrot.slane %v3465_v14, %v5209_v19  ;;  %v7757_v2 = vld [vmem:[#allocation111_spill] sm:$0xff] }
 0x39b   : > { %4273 = vrot.lane.b32.xlu0 %v3775_v13, %s4806_s2  ;;  %4243 = vrot.lane.b32.xlu1 %v3909_v40, %s4804_s28  ;;  %v3010_v0 = vpop.permute.xlu1 %3009  ;;  %v3314_v13 = vcombine.high %v6670_v52, %v6658_v33  ;;  %v6843_v40 = vrot.slane %v3945_v63, %v5182_v9  ;;  %v6854_v58 = vrot.slane %v3433_v3, %v5209_v19  ;;  %v7758_v3 = vld [vmem:[#allocation80_spill] sm:$0xff] }
 0x39c   : > { %v3360_v33 = vrot.slane %v3346_v38, %v5209_v19  ;;  %v6861_v52 = vrot.slane %v3913_v4, %v5182_v9  ;;  %v6871_v14 = vsel %vm851_vm0, %v7758_v3, %v7757_v2  ;;  %v7760_v38 = vld [vmem:[#allocation82_spill] sm:$0xff]  ;;  %v7764_v2 = vld [vmem:[#allocation81_spill] sm:$0xff] }
 0x39d   : > { %v4009_v20 = vcombine.low %v6843_v40, %v6838_v5  ;;  %v3328_v63 = vrot.slane %v3314_v13, %v5209_v19  ;;  %v7763_v13 = vld [vmem:[#allocation112_spill] sm:$0xff]  ;;  %v7765_v3 = vld [vmem:[#allocation114_spill] sm:$0xff] }
 0x39e   : > { %v3977_v50 = vcombine.low %v6861_v52, %v6846_v25 }
 0x39f   : > { %4285 = vrot.lane.b32.xlu0 %v7756_v27, %s4807_s3  ;;  %4255 = vrot.lane.b32.xlu1 %v3366_v12, %s4805_s29  ;;  %v7759_v12 = vld [vmem:[#allocation113_spill] sm:$0xff]  ;;  %v7761_v27 = vld [vmem:[#allocation86_spill] sm:$0xff]  ;;  %v3032_v51 = vpop.permute.xlu1 %3031  ;;  %v4017_v22 = vrot.slane %v4009_v20, %v5209_v19  ;;  %v3872_v20 = vrot.slane %v3858_v43, %v5209_v19  ;;  %v7774_v43 = vld [vmem:[#allocation100_spill] sm:$0xff] }
 0x3a0   : > { %v6876_v4 = vsel %vm851_vm0, %v7760_v38, %v7759_v12  ;;  %v6881_v39 = vsel %vm851_vm0, %v7761_v27, %v6595_v1  ;;  %v6897_v1 = vsel %vm851_vm0, %v7764_v2, %v7763_v13  ;;  %v7766_v12 = vld [vmem:[#allocation83_spill] sm:$0xff]  ;;  %v3021_v27 = vpop.permute.xlu0 %3020  ;;  %v3367_v13 = vcombine.low %v3328_v63, %v3360_v33  ;;  %v7768_v2 = vld [vmem:[#allocation110_spill] sm:$0xff] }
 0x3a1   : > { %v6902_v7 = vsel %vm851_vm0, %v7766_v12, %v7765_v3  ;;  %v3553_v38 = vcombine.low %v6907_v26, %v6881_v39  ;;  %v7769_v3 = vld [vmem:[#allocation79_spill] sm:$0xff]  ;;  %v3521_v55 = vcombine.low %v6871_v14, %v6876_v4  ;;  %v3985_v18 = vrot.slane %v3977_v50, %v5209_v19 }
 0x3a2   : > { %v6918_v12 = vsel %vm851_vm0, %v7769_v3, %v7768_v2  ;;  %v3537_v16 = vcombine.low %v6902_v7, %v6886_v48  ;;  %v7771_v2 = vld [vmem:[#allocation97_spill] sm:$0xff]  ;;  %v6950_v50 = vsel %vm851_vm0, %v7774_v43, %v3010_v0  ;;  %v7777_v0 = vld [vmem:[#allocation96_spill] sm:$0xff]  ;;  %v7778_v43 = vld [vmem:[#allocation95_spill] sm:$0xff] }
 0x3a3   : > { %4289 = vrot.lane.b32.xlu0 %v3776_v53, %s4807_s3  ;;  %4259 = vrot.lane.b32.xlu1 %v3910_v36, %s4805_s29  ;;  %v3497_v53 = vcombine.low %v6854_v58, %v6857_v28  ;;  %v3904_v36 = vrot.slane %v3890_v6, %v5209_v19  ;;  %v6926_v6 = vsel %vm851_vm0, %v7770_v32, %v3032_v51  ;;  %v7773_v51 = vld [vmem:[#allocation98_spill] sm:$0xff]  ;;  %s4512_s29 = scalar_lea.sflag [#allocation4], %s4933_s23 }
 0x3a4   : > { %v3505_v11 = vcombine.low %v6918_v12, %v6897_v1  ;;  %v6937_v3 = vsel %vm851_vm0, %v7771_v2, %v6798_v44  ;;  %v6941_v32 = vsel %vm851_vm0, %v7772_v21, %v3021_v27  ;;  %v6946_v24 = vsel %vm851_vm0, %v7773_v51, %v6770_v23  ;;  %7775 = vst [vmem:[#allocation109_spill] sm:$0xff] %v6950_v50  ;;  %v7776_v23 = vld [vmem:[#allocation99_spill] sm:$0xff] }
 0x3a5   : > { %v4097_v44 = vcombine.low %v6950_v50, %v6926_v6  ;;  %v4041_v2 = vcombine.low %v3985_v18, %v4017_v22  ;;  %v6958_v21 = vrot.slane %v3521_v55, %v5182_v9  ;;  %v6961_v27 = vrot.slane %v3537_v16, %v5182_v9 }
 0x3a6   : > { %v6965_v51 = vsel %vm851_vm0, %v7776_v23, %v2999_v41  ;;  %v6975_v50 = vsel %vm851_vm0, %v7778_v43, %v6739_v42  ;;  %v3466_v41 = vcombine.high %v6806_v8, %v6778_v34  ;;  %v3498_v42 = vcombine.high %v6854_v58, %v6857_v28 }
 0x3a7   : > { %4301 = vrot.lane.b32.xlu0 %v3497_v53, %s4808_s4  ;;  %4271 = vrot.lane.b32.xlu1 %v3367_v13, %s4806_s2  ;;  %v6953_v53 = vrot.slane %v3553_v38, %v5182_v9  ;;  %v3911_v13 = vcombine.low %v3872_v20, %v3904_v36  ;;  %v6970_v38 = vsel %vm851_vm0, %v7777_v0, %v6728_v54  ;;  %vm7512_vm0 = vcmask 261120  }
 0x3a8   : > { %v4081_v55 = vcombine.low %v6965_v51, %v6941_v32  ;;  %v4065_v16 = vcombine.low %v6970_v38, %v6946_v24  ;;  %v4049_v54 = vcombine.low %v6975_v50, %v6937_v3  ;;  %v6990_v23 = vrot.slane %v3505_v11, %v5182_v9 }
 0x3a9   : > { %v3601_v0 = vcombine.low %v6961_v27, %v6953_v53  ;;  %v6995_v43 = vrot.slane %v4097_v44, %v5182_v9  ;;  %v3480_v11 = vrot.slane %v3466_v41, %v5209_v19  ;;  %v4042_v44 = vcombine.high %v3985_v18, %v4017_v22 }
 0x3aa   : > { %v3569_v34 = vcombine.low %v6990_v23, %v6958_v21  ;;  %v7002_v8 = vrot.slane %v4081_v55, %v5182_v9  ;;  %v7005_v58 = vrot.slane %v4065_v16, %v5182_v9  ;;  %v7011_v28 = vrot.slane %v4049_v54, %v5182_v9 }
 0x3ab   : > { %4275 = vrot.lane.b32.xlu1 %v3911_v13, %s4806_s2  ;;  %4305 = vrot.lane.b32.xlu0 %v4041_v2, %s4808_s4  ;;  %v3368_v13 = vcombine.high %v3328_v63, %v3360_v33  ;;  %v3434_v2 = vcombine.high %v6803_v57, %v6766_v17  ;;  %v3912_v33 = vcombine.high %v3872_v20, %v3904_v36  ;;  %s4728_s2 = scalar_lea.vmem %s7410_s30, 512 }
 0x3ac   : > { %v3609_v17 = vrot.slane %v3601_v0, %v5209_v19  ;;  %v4010_v57 = vcombine.high %v6843_v40, %v6838_v5  ;;  %v4145_v63 = vcombine.low %v7002_v8, %v6995_v43  ;;  %v3577_v16 = vrot.slane %v3569_v34, %v5209_v19  ;;  %p4729_p6 = scmp.ne.s32.totalorder %s7410_s30, %s4728_s2 }
 0x3ad   : > { %v3448_v55 = vrot.slane %v3434_v2, %v5209_v19  ;;  %v3978_v41 = vcombine.high %v6861_v52, %v6846_v25  ;;  %v4113_v54 = vcombine.low %v7011_v28, %v7005_v58  ;;  %v3418_v5 = vcombine.high %v6726_v62, %v6705_v60 }
 0x3ae   : > { %v4024_v40 = vrot.slane %v4010_v57, %v5209_v19  ;;  %v4153_v18 = vrot.slane %v4145_v63, %v5209_v19  ;;  %v3633_v36 = vcombine.low %v3577_v16, %v3609_v17  ;;  %v3386_v20 = vcombine.high %v6700_v30, %v6684_v15  ;;  %p4730_p12 = pnand %p4729_p6, %p7868_p11 }
 0x3af   : > { %4287 = vrot.lane.b32.xlu1 %v3368_v13, %s4807_s3  ;;  %4317 = vrot.lane.b32.xlu0 %v3498_v42, %s4809_s5  ;;  %v3499_v22 = vcombine.low %v3448_v55, %v3480_v11  ;;  %v3402_v25 = vcombine.high %v6753_v37, %v6733_v61  ;;  %v3992_v52 = vrot.slane %v3978_v41, %v5209_v19 }
 0x3b0   : > { %v4121_v42 = vrot.slane %v4113_v54, %v5209_v19  ;;  %v3370_v60 = vcombine.high %v6746_v47, %v6718_v29  ;;  %v7041_v62 = vrot.slane %v3418_v5, %v5182_v9  ;;  %v3962_v15 = vcombine.high %v6791_v46, %v6763_v56  ;;  %p4731_p13 = pneg %p4730_p12 }
 0x3b1   : > { %v4043_v30 = vcombine.low %v3992_v52, %v4024_v40  ;;  %v7046_v61 = vrot.slane %v3386_v20, %v5182_v9  ;;  %v7049_v37 = vrot.slane %v3402_v25, %v5182_v9  ;;  %v3946_v13 = vcombine.high %v6811_v45, %v6782_v49 }
 0x3b2   : > { %v4177_v0 = vcombine.low %v4121_v42, %v4153_v18  ;;  %v3930_v29 = vcombine.high %v6816_v10, %v6787_v31  ;;  %v7058_v47 = vrot.slane %v3370_v60, %v5182_v9  ;;  %v3914_v46 = vcombine.high %v6821_v35, %v6796_v59 }
 0x3b3   : > { %4291 = vrot.lane.b32.xlu1 %v3912_v33, %s4807_s3  ;;  %4321 = vrot.lane.b32.xlu0 %v4042_v44, %s4809_s5  ;;  %v3481_v56 = vcombine.low %v7049_v37, %v7041_v62  ;;  %v3602_v2 = vcombine.high %v6961_v27, %v6953_v53  ;;  %v7067_v49 = vrot.slane %v3962_v15, %v5182_v9  ;;  %s4817_s3 = smov [#allocation5]  }
 0x3b4   : > { %v3500_v31 = vcombine.high %v3448_v55, %v3480_v11  ;;  %v3634_v45 = vcombine.high %v3577_v16, %v3609_v17  ;;  %v3449_v10 = vcombine.low %v7058_v47, %v7046_v61  ;;  %v3570_v34 = vcombine.high %v6990_v23, %v6958_v21 }
 0x3b5   : > { %v7074_v33 = vrot.slane %v3946_v13, %v5182_v9  ;;  %v7077_v57 = vrot.slane %v3930_v29, %v5182_v9  ;;  %v3489_v59 = vrot.slane %v3481_v56, %v5209_v19  ;;  %v7083_v35 = vrot.slane %v3914_v46, %v5182_v9 }
 0x3b6   : > { %v3616_v53 = vrot.slane %v3602_v2, %v5209_v19  ;;  %v4146_v27 = vcombine.high %v7002_v8, %v6995_v43  ;;  %v4044_v23 = vcombine.high %v3992_v52, %v4024_v40  ;;  %v4178_v11 = vcombine.high %v4121_v42, %v4153_v18  ;;  %v7779_v18 = vld [vmem:[#allocation109_spill] sm:$0xff] }
 0x3b7   : > { %4303 = vrot.lane.b32.xlu1 %v3633_v36, %s4808_s4  ;;  %4333 = vrot.lane.b32.xlu0 %v3499_v22, %s4810_s11  ;;  %v4025_v21 = vcombine.low %v7074_v33, %v7067_v49  ;;  %v3457_v17 = vrot.slane %v3449_v10, %v5209_v19  ;;  %v3584_v63 = vrot.slane %v3570_v34, %v5209_v19 }
 0x3b8   : > { %v3993_v44 = vcombine.low %v7083_v35, %v7077_v57  ;;  %v4114_v55 = vcombine.high %v7011_v28, %v7005_v58  ;;  %v3554_v16 = vcombine.high %v6907_v26, %v6881_v39  ;;  %v4160_v8 = vrot.slane %v4146_v27, %v5209_v19 }
 0x3b9   : > { %v4033_v43 = vrot.slane %v4025_v21, %v5209_v19  ;;  %v3501_v41 = vcombine.low %v3457_v17, %v3489_v59  ;;  %v3635_v54 = vcombine.low %v3584_v63, %v3616_v53  ;;  %v3538_v5 = vcombine.high %v6902_v7, %v6886_v48 }
 0x3ba   : > { %v3522_v40 = vcombine.high %v6871_v14, %v6876_v4  ;;  %v4001_v58 = vrot.slane %v3993_v44, %v5209_v19  ;;  %v4128_v28 = vrot.slane %v4114_v55, %v5209_v19  ;;  %v3568_v39 = vrot.slane %v3554_v16, %v5182_v9 }
 0x3bb   : > { %4337 = vrot.lane.b32.xlu0 %v4043_v30, %s4810_s11  ;;  %4307 = vrot.lane.b32.xlu1 %v4177_v0, %s4808_s4  ;;  %v3506_v26 = vcombine.high %v6918_v12, %v6897_v1  ;;  %v4098_v36 = vcombine.high %v7779_v18, %v6926_v6  ;;  %v3552_v14 = vrot.slane %v3538_v5, %v5182_v9  ;;  %v7783_v5 = vld [vmem:[#allocation118_spill] sm:$0xff]  ;;  %v7787_v18 = vld [vmem:[#allocation105_spill] sm:$0xff]  ;;  %s4732_s4 = sshll.u32 %s4817_s3, 4  ;;  %s4733_s4 = int_to_ptr.vmem [resolvable:$false] %s4732_s4 }
 0x3bc   : > { %v4045_v48 = vcombine.low %v4001_v58, %v4033_v43  ;;  %v4179_v7 = vcombine.low %v4128_v28, %v4160_v8  ;;  %v3536_v4 = vrot.slane %v3522_v40, %v5182_v9  ;;  %v4082_v22 = vcombine.high %v6965_v51, %v6941_v32  ;;  %v7784_v40 = vld [vmem:[#allocation117_spill] sm:$0xff]  ;;  %p4735_p8 = scmp.lt.s32.totalorder %s7410_s30, %s4733_s4 }
 0x3bd   : > { %v4066_v20 = vcombine.high %v6970_v38, %v6946_v24  ;;  %v3482_v1 = vcombine.high %v7049_v37, %v7041_v62  ;;  %v4050_v12 = vcombine.high %v6975_v50, %v6937_v3  ;;  %v3617_v6 = vcombine.low %v3552_v14, %v3568_v39 }
 0x3be   : > { %v3520_v25 = vrot.slane %v3506_v26, %v5182_v9  ;;  %v4112_v52 = vrot.slane %v4098_v36, %v5182_v9  ;;  %v3502_v42 = vcombine.high %v3457_v17, %v3489_v59  ;;  %v3636_v32 = vcombine.high %v3584_v63, %v3616_v53  ;;  %v4190_v17 = vpop.permute.xlu0 %4189  ;;  %v7786_v26 = vld [vmem:[#allocation104_spill] sm:$0xff] }
 0x3bf   : > { %4349 = vrot.lane.b32.xlu0 %v3500_v31, %s4811_s13  ;;  %4319 = vrot.lane.b32.xlu1 %v3634_v45, %s4809_s5  ;;  %v3450_v24 = vcombine.high %v7058_v47, %v7046_v61  ;;  %v4096_v38 = vrot.slane %v4082_v22, %v5182_v9  ;;  %v4080_v60 = vrot.slane %v4066_v20, %v5182_v9  ;;  %v7780_v31 = vld [vmem:[#allocation116_spill] sm:$0xff]  ;;  %v7781_v45 = vld [vmem:[#allocation115_spill] sm:$0xff] }
 0x3c0   : > { %v3585_v51 = vcombine.low %v3520_v25, %v3536_v4  ;;  %v3496_v3 = vrot.slane %v3482_v1, %v5209_v19  ;;  %v4064_v50 = vrot.slane %v4050_v12, %v5182_v9  ;;  %v3625_v62 = vrot.slane %v3617_v6, %v5209_v19 }
 0x3c1   : > { %v4026_v15 = vcombine.high %v7074_v33, %v7067_v49  ;;  %v4161_v30 = vcombine.low %v4096_v38, %v4112_v52  ;;  %v4046_v0 = vcombine.high %v4001_v58, %v4033_v43  ;;  %v4180_v61 = vcombine.high %v4128_v28, %v4160_v8 }
 0x3c2   : > { %v3464_v37 = vrot.slane %v3450_v24, %v5209_v19  ;;  %v3593_v13 = vrot.slane %v3585_v51, %v5209_v19  ;;  %v3994_v29 = vcombine.high %v7083_v35, %v7077_v57  ;;  %v4129_v47 = vcombine.low %v4064_v50, %v4080_v60 }
 0x3c3   : > { %4353 = vrot.lane.b32.xlu0 %v4044_v23, %s4811_s13  ;;  %4323 = vrot.lane.b32.xlu1 %v4178_v11, %s4809_s5  ;;  %v4040_v9 = vrot.slane %v4026_v15, %v5209_v19  ;;  %v4169_v56 = vrot.slane %v4161_v30, %v5209_v19  ;;  %v7782_v10 = vcombine.low %v7780_v31, %v7781_v45  ;;  %s4734_s5 = scalar_lea.vmem %s4733_s4, 1024 }
 0x3c4   : > { %v3503_v2 = vcombine.low %v3464_v37, %v3496_v3  ;;  %v3637_v49 = vcombine.low %v3593_v13, %v3625_v62  ;;  %v4008_v33 = vrot.slane %v3994_v29, %v5209_v19  ;;  %v4137_v57 = vrot.slane %v4129_v47, %v5209_v19  ;;  %p4736_p10 = scmp.lt.s32.totalorder %s4734_s5, %s4728_s2 }
 0x3c5   : > { %v3618_v53 = vcombine.high %v3552_v14, %v3568_v39  ;;  %v3504_v21 = vcombine.high %v3464_v37, %v3496_v3  ;;  %v3638_v27 = vcombine.high %v3593_v13, %v3625_v62  ;;  %v3586_v23 = vcombine.high %v3520_v25, %v3536_v4 }
 0x3c6   : > { %v4047_v59 = vcombine.low %v4008_v33, %v4040_v9  ;;  %v4181_v35 = vcombine.low %v4137_v57, %v4169_v56  ;;  %v4162_v63 = vcombine.high %v4096_v38, %v4112_v52  ;;  %v4048_v44 = vcombine.high %v4008_v33, %v4040_v9  ;;  %p4737_p0 = por %p4736_p10, %p4735_p8 }
 0x3c7   : > { %4365 = vrot.lane.b32.xlu0 %v3501_v41, %s4812_s14  ;;  %4335 = vrot.lane.b32.xlu1 %v3635_v54, %s4810_s11  ;;  %v3632_v11 = vrot.slane %v3618_v53, %v5209_v19  ;;  %v4182_v55 = vcombine.high %v4137_v57, %v4169_v56  ;;  %v3600_v16 = vrot.slane %v3586_v23, %v5209_v19 }
 0x3c8   : > { %v4130_v43 = vcombine.high %v4064_v50, %v4080_v60  ;;  %v4176_v8 = vrot.slane %v4162_v63, %v5209_v19  ;;  %v7785_v58 = vcombine.low %v7783_v5, %v7784_v40  ;;  %v7788_v36 = vcombine.low %v7786_v26, %v7787_v18  ;;  %p4738_p2 = pnand %p4737_p0, %p4731_p13 }
 0x3c9   : > { %v3639_v54 = vcombine.low %v3600_v16, %v3632_v11  ;;  %v3640_v20 = vcombine.high %v3600_v16, %v3632_v11 }
 0x3ca   : > { %v4144_v39 = vrot.slane %v4130_v43, %v5209_v19 }
 0x3cb   : > { %4369 = vrot.lane.b32.xlu0 %v4045_v48, %s4812_s14  ;;  %4339 = vrot.lane.b32.xlu1 %v4179_v7, %s4810_s11  ;;  %v4425_v48 = vsel %vm2244_vm1, %v7788_v36, %v4190_v17 }
 0x3cc   : > { %v4183_v14 = vcombine.low %v4144_v39, %v4176_v8  ;;  %v4184_v12 = vcombine.high %v4144_v39, %v4176_v8 }
 0x3cf   : > { %4381 = vrot.lane.b32.xlu0 %v3502_v42, %s4813_s16  ;;  %4351 = vrot.lane.b32.xlu1 %v3636_v32, %s4811_s13  ;;  %v7789_v42 = vld [vmem:[#allocation120_spill] sm:$0xff]  ;;  %v7790_v32 = vld [vmem:[#allocation119_spill] sm:$0xff] }
 0x3d0   : > { %v7791_v24 = vcombine.low %v7789_v42, %v7790_v32 }
 0x3d3   : > { %4385 = vrot.lane.b32.xlu0 %v4046_v0, %s4813_s16  ;;  %4355 = vrot.lane.b32.xlu1 %v4180_v61, %s4811_s13 }
 0x3d5   : > { %v4192_v46 = vpop.permute.xlu1 %4191 }
 0x3d6   : > { %v4426_v34 = vsel %vm2244_vm1, %v7782_v10, %v4192_v46 }
 0x3d7   : > { %4397 = vrot.lane.b32.xlu0 %v3503_v2, %s4814_s20  ;;  %4367 = vrot.lane.b32.xlu1 %v3637_v49, %s4812_s14 }
 0x3db   : > { %4401 = vrot.lane.b32.xlu0 %v4047_v59, %s4814_s20  ;;  %4371 = vrot.lane.b32.xlu1 %v4181_v35, %s4812_s14 }
 0x3df   : > { %4413 = vrot.lane.b32.xlu0 %v3504_v21, %s4815_s21  ;;  %4383 = vrot.lane.b32.xlu1 %v3638_v27, %s4813_s16 }
 0x3e3   : > { %4417 = vrot.lane.b32.xlu0 %v4048_v44, %s4815_s21  ;;  %4387 = vrot.lane.b32.xlu1 %v4182_v55, %s4813_s16 }
 0x3e5   : > { %v4194_v41 = vpop.permute.xlu0 %4193 }
 0x3e6   : > { %v4427_v28 = vsel %vm2244_vm1, %v7785_v58, %v4194_v41 }
 0x3e7   : > { %4399 = vrot.lane.b32.xlu1 %v3639_v54, %s4814_s20 }
 0x3e9   : > { %v4206_v7 = vpop.permute.xlu0 %4205 }
 0x3ea   : > { %v4429_v4 = vsel %vm2249_vm2, %v4425_v48, %v4206_v7 }
 0x3eb   : > { %4403 = vrot.lane.b32.xlu1 %v4183_v14, %s4814_s20 }
 0x3ed   : > { %v4210_v22 = vpop.permute.xlu0 %4209 }
 0x3ee   : > { %v4431_v1 = vsel %vm2249_vm2, %v4427_v28, %v4210_v22 }
 0x3ef   : > { %4415 = vrot.lane.b32.xlu1 %v3640_v20, %s4815_s21 }
 0x3f1   : > { %v4222_v19 = vpop.permute.xlu0 %4221 }
 0x3f2   : > { %v4433_v6 = vsel %vm2254_vm3, %v4429_v4, %v4222_v19 }
 0x3f3   : > { %4419 = vrot.lane.b32.xlu1 %v4184_v12, %s4815_s21 }
 0x3f5   : > { %v4196_v25 = vpop.permute.xlu1 %4195  ;;  %v4226_v52 = vpop.permute.xlu0 %4225 }
 0x3f6   : > { %v4428_v51 = vsel %vm2244_vm1, %v7791_v24, %v4196_v25  ;;  %v4435_v38 = vsel %vm2254_vm3, %v4431_v1, %v4226_v52 }
 0x3f9   : > { %v4208_v60 = vpop.permute.xlu1 %4207  ;;  %v4238_v3 = vpop.permute.xlu0 %4237 }
 0x3fa   : > { %v4430_v50 = vsel %vm2249_vm2, %v4426_v34, %v4208_v60  ;;  %v4437_v62 = vsel %vm2259_vm4, %v4433_v6, %v4238_v3 }
 0x3fd   : > { %v4212_v15 = vpop.permute.xlu1 %4211  ;;  %v4242_v30 = vpop.permute.xlu0 %4241 }
 0x3fe   : > { %v4432_v0 = vsel %vm2249_vm2, %v4428_v51, %v4212_v15  ;;  %v4439_v61 = vsel %vm2259_vm4, %v4435_v38, %v4242_v30 }
 0x401   : > { %v4224_v37 = vpop.permute.xlu1 %4223  ;;  %v4254_v13 = vpop.permute.xlu0 %4253 }
 0x402   : > { %v4434_v29 = vsel %vm2254_vm3, %v4430_v50, %v4224_v37  ;;  %v4441_v47 = vsel %vm2264_vm5, %v4437_v62, %v4254_v13 }
 0x405   : > { %v4228_v9 = vpop.permute.xlu1 %4227  ;;  %v4258_v56 = vpop.permute.xlu0 %4257 }
 0x406   : > { %v4436_v46 = vsel %vm2254_vm3, %v4432_v0, %v4228_v9  ;;  %v4443_v2 = vsel %vm2264_vm5, %v4439_v61, %v4258_v56 }
 0x409   : > { %v4240_v49 = vpop.permute.xlu1 %4239  ;;  %v4270_v31 = vpop.permute.xlu0 %4269 }
 0x40a   : > { %v4438_v45 = vsel %vm2259_vm4, %v4434_v29, %v4240_v49  ;;  %v4445_v20 = vsel %vm2269_vm6, %v4441_v47, %v4270_v31 }
 0x40d   : > { %v4244_v10 = vpop.permute.xlu1 %4243  ;;  %v4274_v34 = vpop.permute.xlu0 %4273 }
 0x40e   : > { %v4440_v33 = vsel %vm2259_vm4, %v4436_v46, %v4244_v10  ;;  %v4447_v52 = vsel %vm2269_vm6, %v4443_v2, %v4274_v34 }
 0x411   : > { %v4256_v57 = vpop.permute.xlu1 %4255  ;;  %v4286_v59 = vpop.permute.xlu0 %4285 }
 0x412   : > { %v7197_v35 = vsel %vm2264_vm5, %v4438_v45, %v4256_v57  ;;  %v4449_v12 = vsel %vm7511_vm7, %v4445_v20, %v4286_v59  ;;  %v7800_v20 = vld [vmem:[#allocation58_spill] sm:$0xff] }
 0x415   : > { %v4260_v53 = vpop.permute.xlu1 %4259  ;;  %v4290_v21 = vpop.permute.xlu0 %4289 }
 0x416   : > { %v7200_v27 = vsel %vm2264_vm5, %v4440_v33, %v4260_v53  ;;  %v4451_v51 = vsel %vm7511_vm7, %v4447_v52, %v4290_v21  ;;  %v7804_v52 = vld [vmem:[#allocation33_spill] sm:$0xff] }
 0x419   : > { %v7202_v23 = vpop.permute.xlu1 %4271  ;;  %v4302_v11 = vpop.permute.xlu0 %4301 }
 0x41a   : > { %v4453_v6 = vsel %vm2279_vm8, %v4449_v12, %v4302_v11  ;;  %v4446_v49 = vsel %vm2269_vm6, %v7197_v35, %v7202_v23 }
 0x41d   : > { %v7204_v17 = vpop.permute.xlu1 %4275  ;;  %v4306_v63 = vpop.permute.xlu0 %4305 }
 0x41e   : > { %v4455_v60 = vsel %vm2279_vm8, %v4451_v51, %v4306_v63  ;;  %v4448_v33 = vsel %vm2269_vm6, %v7200_v27, %v7204_v17  ;;  %v7806_v51 = vld [vmem:[#allocation32_spill] sm:$0xff] }
 0x421   : > { %v7206_v44 = vpop.permute.xlu1 %4287  ;;  %v4318_v55 = vpop.permute.xlu0 %4317 }
 0x422   : > { %v4457_v25 = vsel %vm2284_vm9, %v4453_v6, %v4318_v55  ;;  %v4450_v45 = vsel %vm7511_vm7, %v4446_v49, %v7206_v44  ;;  %v7803_v6 = vld [vmem:[#allocation26_spill] sm:$0xff]  ;;  %v7815_v49 = vld [vmem:[#allocation40_spill] sm:$0xff] }
 0x425   : > { %v7208_v16 = vpop.permute.xlu1 %4291  ;;  %v4322_v43 = vpop.permute.xlu0 %4321 }
 0x426   : > { %v4459_v50 = vsel %vm2284_vm9, %v4455_v60, %v4322_v43  ;;  %v4452_v53 = vsel %vm7511_vm7, %v4448_v33, %v7208_v16  ;;  %v7807_v60 = vld [vmem:[#allocation18_spill] sm:$0xff] }
 0x429   : > { %v4304_v8 = vpop.permute.xlu1 %4303  ;;  %v4334_v41 = vpop.permute.xlu0 %4333 }
 0x42a   : > { %v4461_v42 = vsel %vm2289_vm10, %v4457_v25, %v4334_v41  ;;  %v4454_v10 = vsel %vm2279_vm8, %v4450_v45, %v4304_v8  ;;  %v7816_v45 = vld [vmem:[#allocation23_spill] sm:$0xff] }
 0x42d   : > { %v7210_v54 = vpop.permute.xlu1 %4307  ;;  %v4338_v5 = vpop.permute.xlu0 %4337 }
 0x42e   : > { %v4463_v15 = vsel %vm2289_vm10, %v4459_v50, %v4338_v5  ;;  %v4456_v21 = vsel %vm2279_vm8, %v4452_v53, %v7210_v54  ;;  %v7808_v50 = vld [vmem:[#allocation29_spill] sm:$0xff]  ;;  %v7819_v53 = vld [vmem:[#allocation11_spill] sm:$0xff] }
 0x431   : > { %v4320_v40 = vpop.permute.xlu1 %4319  ;;  %v4350_v58 = vpop.permute.xlu0 %4349 }
 0x432   : > { %v4465_v38 = vsel %vm2294_vm11, %v4461_v42, %v4350_v58  ;;  %v4458_v34 = vsel %vm2284_vm9, %v4454_v10, %v4320_v40  ;;  %v7792_v40 = vld [vmem:[#allocation16_spill] sm:$0xff] }
 0x433   : > { %v7793_v58 = vld [vmem:[#allocation44_spill] sm:$0xff] }
 0x435   : > { %v7212_v28 = vpop.permute.xlu1 %4323  ;;  %v4354_v39 = vpop.permute.xlu0 %4353 }
 0x436   : > { %v4467_v37 = vsel %vm2294_vm11, %v4463_v15, %v4354_v39  ;;  %v4460_v11 = vsel %vm2284_vm9, %v4456_v21, %v7212_v28  ;;  %v7794_v28 = vld [vmem:[#allocation45_spill] sm:$0xff] }
 0x437   : > { %v7795_v39 = vcombine.low %v7793_v58, %v7794_v28  ;;  %v7809_v15 = vld [vmem:[#allocation25_spill] sm:$0xff] }
 0x438   : > { %v7820_v21 = vld [vmem:[#allocation37_spill] sm:$0xff] }
 0x439   : > { %v4336_v26 = vpop.permute.xlu1 %4335  ;;  %v4366_v18 = vpop.permute.xlu0 %4365 }
 0x43a   : > { %v4469_v3 = vsel %vm2299_vm12, %v4465_v38, %v4366_v18  ;;  %v4462_v57 = vsel %vm2289_vm10, %v4458_v34, %v4336_v26  ;;  %v2245_v26 = vsel %vm2244_vm1, %v7795_v39, %v7792_v40  ;;  %v7796_v18 = vld [vmem:[#allocation17_spill] sm:$0xff]  ;;  %v7817_v34 = vld [vmem:[#allocation34_spill] sm:$0xff] }
 0x43b   : > { %v7827_v40 = vld [vmem:[#allocation53_spill] sm:$0xff] }
 0x43c   : > { %v7829_v39 = vld [vmem:[#allocation13_spill] sm:$0xff] }
 0x43d   : > { %v4340_v36 = vpop.permute.xlu1 %4339  ;;  %v4370_v48 = vpop.permute.xlu0 %4369 }
 0x43e   : > { %v4471_v29 = vsel %vm2299_vm12, %v4467_v37, %v4370_v48  ;;  %v4464_v27 = vsel %vm2289_vm10, %v4460_v11, %v4340_v36  ;;  %v2250_v36 = vsel %vm2249_vm2, %v2245_v26, %v7796_v18  ;;  %v7797_v48 = vld [vmem:[#allocation31_spill] sm:$0xff]  ;;  %v7811_v37 = vld [vmem:[#allocation24_spill] sm:$0xff] }
 0x43f   : > { %v7821_v11 = vld [vmem:[#allocation15_spill] sm:$0xff] }
 0x440   : > { %v7830_v18 = vld [vmem:[#allocation47_spill] sm:$0xff] }
 0x441   : > { %v4352_v7 = vpop.permute.xlu1 %4351  ;;  %v4382_v14 = vpop.permute.xlu0 %4381 }
 0x442   : > { %v4473_v62 = vsel %vm2304_vm13, %v4469_v3, %v4382_v14  ;;  %v4466_v35 = vsel %vm2294_vm11, %v4462_v57, %v4352_v7  ;;  %v2255_v7 = vsel %vm2254_vm3, %v2250_v36, %v7797_v48  ;;  %v7798_v14 = vld [vmem:[#allocation28_spill] sm:$0xff]  ;;  %v7818_v57 = vld [vmem:[#allocation22_spill] sm:$0xff]  ;;  %v7831_v48 = vld [vmem:[#allocation63_spill] sm:$0xff] }
 0x445   : > { %v4356_v4 = vpop.permute.xlu1 %4355  ;;  %v4386_v22 = vpop.permute.xlu0 %4385 }
 0x446   : > { %v4475_v47 = vsel %vm2304_vm13, %v4471_v29, %v4386_v22  ;;  %v4468_v55 = vsel %vm2294_vm11, %v4464_v27, %v4356_v4  ;;  %v2260_v4 = vsel %vm2259_vm4, %v2255_v7, %v7798_v14  ;;  %v7799_v22 = vld [vmem:[#allocation42_spill] sm:$0xff]  ;;  %v7812_v29 = vld [vmem:[#allocation21_spill] sm:$0xff]  ;;  %v7822_v27 = vld [vmem:[#allocation36_spill] sm:$0xff] }
 0x447   : > { %v2265_v25 = vsel %vm2264_vm5, %v2260_v4, %v7803_v6  ;;  %v7832_v14 = vld [vmem:[#allocation43_spill] sm:$0xff] }
 0x449   : > { %v4368_v1 = vpop.permute.xlu1 %4367  ;;  %v4398_v19 = vpop.permute.xlu0 %4397 }
 0x44a   : > { %v4477_v30 = vsel %vm2309_vm14, %v4473_v62, %v4398_v19  ;;  %v4470_v23 = vsel %vm2299_vm12, %v4466_v35, %v4368_v1  ;;  %v7801_v1 = vld [vmem:[#allocation59_spill] sm:$0xff] }
 0x44b   : > { %v7802_v19 = vcombine.low %v7800_v20, %v7801_v1 }
 0x44d   : > { %v4372_v32 = vpop.permute.xlu1 %4371  ;;  %v4402_v24 = vpop.permute.xlu0 %4401  ;;  %v2247_v12 = vsel %vm2244_vm1, %v7802_v19, %v7799_v22  ;;  %v7833_v22 = vld [vmem:[#allocation67_spill] sm:$0xff]  ;;  %v7834_v19 = vld [vmem:[#allocation57_spill] sm:$0xff] }
 0x44e   : > { %v4479_v9 = vsel %vm2309_vm14, %v4475_v47, %v4402_v24  ;;  %v4472_v43 = vsel %vm2299_vm12, %v4468_v55, %v4372_v32  ;;  %v2252_v42 = vsel %vm2249_vm2, %v2247_v12, %v7804_v52  ;;  %v7805_v32 = vld [vmem:[#allocation20_spill] sm:$0xff] }
 0x44f   : > { %v2270_v24 = vsel %vm2269_vm6, %v2265_v25, %v7805_v32  ;;  %v2257_v38 = vsel %vm2254_vm3, %v2252_v42, %v7806_v51  ;;  %v7835_v25 = vld [vmem:[#allocation27_spill] sm:$0xff]  ;;  %v7836_v52 = vld [vmem:[#allocation60_spill] sm:$0xff]  ;;  %v7837_v42 = vld [vmem:[#allocation61_spill] sm:$0xff] }
 0x450   : > { %v2275_v3 = vsel %vm7511_vm7, %v2270_v24, %v7807_v60  ;;  %v2262_v62 = vsel %vm2259_vm4, %v2257_v38, %v7808_v50  ;;  %v7838_v32 = vcombine.low %v7836_v52, %v7837_v42  ;;  %v7839_v51 = vld [vmem:[#allocation51_spill] sm:$0xff]  ;;  %v7840_v60 = vld [vmem:[#allocation48_spill] sm:$0xff]  ;;  %v7841_v50 = vld [vmem:[#allocation41_spill] sm:$0xff] }
 0x451   : > { %v4384_v0 = vpop.permute.xlu1 %4383  ;;  %v4414_v61 = vpop.permute.xlu0 %4413 }
 0x452   : > { %v4481_v13 = vsel %vm2314_vm15, %v4477_v30, %v4414_v61  ;;  %v4474_v63 = vsel %vm2304_vm13, %v4470_v23, %v4384_v0  ;;  %v2280_v30 = vsel %vm2279_vm8, %v2275_v3, %v7809_v15  ;;  %v7810_v0 = vld [vmem:[#allocation54_spill] sm:$0xff]  ;;  %v2248_v24 = vsel %vm2244_vm1, %v7838_v32, %v7835_v25 }
 0x453   : > { %4489 = vrot.lane.b32.xlu0 %v4481_v13, %s4816_s22  ;;  %v2267_v61 = vsel %vm2264_vm5, %v2262_v62, %v7810_v0  ;;  %v2285_v13 = vsel %vm2284_vm9, %v2280_v30, %v7811_v37  ;;  %v2253_v3 = vsel %vm2249_vm2, %v2248_v24, %v7840_v60  ;;  %v7842_v15 = vld [vmem:[#allocation46_spill] sm:$0xff]  ;;  %v7843_v0 = vld [vmem:[#allocation39_spill] sm:$0xff] }
 0x454   : > { %v2272_v47 = vsel %vm2269_vm6, %v2267_v61, %v7812_v29  ;;  %v2258_v30 = vsel %vm2254_vm3, %v2253_v3, %v7842_v15  ;;  %v7845_v37 = vld [vmem:[#allocation50_spill] sm:$0xff] }
 0x455   : > { %v4388_v56 = vpop.permute.xlu1 %4387  ;;  %v4418_v46 = vpop.permute.xlu0 %4417  ;;  %v7846_v29 = vld [vmem:[#allocation38_spill] sm:$0xff] }
 0x456   : > { %v4483_v2 = vsel %vm2314_vm15, %v4479_v9, %v4418_v46  ;;  %v4476_v8 = vsel %vm2304_vm13, %v4472_v43, %v4388_v56  ;;  %v7813_v9 = vld [vmem:[#allocation56_spill] sm:$0xff]  ;;  %v7814_v46 = vld [vmem:[#allocation19_spill] sm:$0xff] }
 0x457   : > { %4493 = vrot.lane.b32.xlu0 %v4483_v2, %s4816_s22  ;;  %v2290_v56 = vsel %vm2289_vm10, %v2285_v13, %v7813_v9  ;;  %v2277_v2 = vsel %vm7511_vm7, %v2272_v47, %v7814_v46  ;;  %vm4506_vm7 = vcmask 523264   ;;  %v7824_v43 = vld [vmem:[#allocation8_spill] sm:$0xff]  ;;  %v2263_v13 = vsel %vm2259_vm4, %v2258_v30, %v7845_v37  ;;  %v7847_v9 = vld [vmem:[#allocation49_spill] sm:$0xff]  ;;  %v7848_v46 = vld [vmem:[#allocation10_spill] sm:$0xff] }
 0x458   : > { %v2282_v10 = vsel %vm2279_vm8, %v2277_v2, %v7816_v45  ;;  %v7850_v45 = vld [vmem:[#allocation14_spill] sm:$0xff] }
 0x459   : > { %v4400_v31 = vpop.permute.xlu1 %4399 }
 0x45a   : > { %v4478_v17 = vsel %vm2309_vm14, %v4474_v63, %v4400_v31  ;;  %v2295_v31 = vsel %vm2294_vm11, %v2290_v56, %v7815_v49  ;;  %v2268_v56 = vsel %vm2264_vm5, %v2263_v13, %v7847_v9  ;;  %v7849_v49 = vld [vmem:[#allocation55_spill] sm:$0xff] }
 0x45b   : > { %v2300_v33 = vsel %vm2299_vm12, %v2295_v31, %v7817_v34  ;;  %v2273_v31 = vsel %vm2269_vm6, %v2268_v56, %v7849_v49  ;;  %v7851_v34 = vld [vmem:[#allocation35_spill] sm:$0xff] }
 0x45c   : > { %v2305_v35 = vsel %vm2304_vm13, %v2300_v33, %v7819_v53  ;;  %v7854_v53 = vld [vmem:[#allocation9_spill] sm:$0xff] }
 0x45d   : > { %v4404_v59 = vpop.permute.xlu1 %4403  ;;  %v2310_v63 = vsel %vm2309_vm14, %v2305_v35, %v7821_v11  ;;  %v7856_v11 = vld [vmem:[#allocation12_spill] sm:$0xff] }
 0x45e   : > { %v4480_v41 = vsel %vm2309_vm14, %v4476_v8, %v4404_v59  ;;  %v2287_v59 = vsel %vm2284_vm9, %v2282_v10, %v7818_v57  ;;  %v7853_v57 = vld [vmem:[#allocation64_spill] sm:$0xff] }
 0x45f   : > { %v2292_v23 = vsel %vm2289_vm10, %v2287_v59, %v7820_v21  ;;  %v7855_v21 = vld [vmem:[#allocation68_spill] sm:$0xff] }
 0x461   : > { %v4416_v44 = vpop.permute.xlu1 %4415 }
 0x462   : > { %v4482_v16 = vsel %vm2314_vm15, %v4478_v17, %v4416_v44  ;;  %v2297_v17 = vsel %vm2294_vm11, %v2292_v23, %v7822_v27  ;;  %v7823_v44 = vld [vmem:[#allocation65_spill] sm:$0xff]  ;;  %v7857_v27 = vld [vmem:[#allocation70_spill] sm:$0xff] }
 0x463   : > { %4491 = vrot.lane.b32.xlu1 %v4482_v16, %s4816_s22  ;;  %v2315_v55 = vsel %vm2314_vm15, %v2310_v63, %v7823_v44  ;;  %v2302_v8 = vsel %vm2299_vm12, %v2297_v17, %v7824_v43  ;;  %v7858_v44 = vld [vmem:[#allocation62_spill] sm:$0xff] }
 0x464   : > { %v2307_v26 = vsel %vm2304_vm13, %v2302_v8, %v7829_v39  ;;  %v7860_v8 = vld [vmem:[#allocation66_spill] sm:$0xff] }
 0x465   : > { %v4420_v54 = vpop.permute.xlu1 %4419  ;;  %v2312_v7 = vsel %vm2309_vm14, %v2307_v26, %v7831_v48  ;;  %v7864_v26 = vld [vmem:[#allocation71_spill] sm:$0xff] }
 0x466   : > { %v4484_v5 = vsel %vm2314_vm15, %v4480_v41, %v4420_v54  ;;  %v7825_v54 = vld [vmem:[#allocation30_spill] sm:$0xff]  ;;  %v2317_v20 = vsel %vm2314_vm15, %v2312_v7, %v7833_v22  ;;  %v7866_v7 = vld [vmem:[#allocation75_spill] sm:$0xff] }
 0x467   : > { %4495 = vrot.lane.b32.xlu1 %v4484_v5, %s4816_s22  ;;  %v7826_v5 = vld [vmem:[#allocation52_spill] sm:$0xff] }
 0x468   : > { %v7828_v58 = vcombine.low %v7826_v5, %v7827_v40 }
 0x46a   : > { %v2246_v28 = vsel %vm2244_vm1, %v7828_v58, %v7825_v54  ;;  %v7861_v54 = vld [vmem:[#allocation74_spill] sm:$0xff]  ;;  %v7862_v58 = vld [vmem:[#allocation69_spill] sm:$0xff] }
 0x46b   : > { %v2251_v36 = vsel %vm2249_vm2, %v2246_v28, %v7830_v18  ;;  %vm7863_vm2 = vcmask 261120  }
 0x46c   : > { %v2256_v4 = vsel %vm2254_vm3, %v2251_v36, %v7832_v14  ;;  %v7865_v36 = vld [vmem:[#allocation73_spill] sm:$0xff]  ;;  %vm7867_vm3 = vmmov %vm7863_vm2 }
 0x46d   : > { %v2261_v12 = vsel %vm2259_vm4, %v2256_v4, %v7834_v19 }
 0x46e   : > { %v2266_v38 = vsel %vm2264_vm5, %v2261_v12, %v7839_v51 }
 0x46f   : > { %v2271_v62 = vsel %vm2269_vm6, %v2266_v38, %v7841_v50 }
 0x4c5   : > { %v4490_v16 = vpop.permute.xlu0 %4489 }
 0x4c6   : > { %v4502_v41 = vsel %vm7512_vm0, %v2315_v55, %v4490_v16  ;;  %v7859_v16 = vld [vmem:[#allocation72_spill] sm:$0xff] }
 0x4c7   : > { %4507 = vst.msk [vmem:[%s7335_s26] sm:$0xff] %vm4506_vm7, %v4502_v41 }
 0x4c9   : > { %v4494_v1 = vpop.permute.xlu0 %4493 }
 0x4ca   : > { %v4504_v6 = vsel %vm7512_vm0, %v2317_v20, %v4494_v1  ;;  %vm7844_vm0 = vcmask 113664  }
 0x4cb   : > { %4509 = vst.msk [vmem:[%s7335_s26 + $0x10] sm:$0xff] %vm4506_vm7, %v4504_v6  ;;  %v2276_v61 = vsel %vm7844_vm0, %v2271_v62, %v7843_v0  ;;  %vm7852_vm1 = vmmov %vm7844_vm0 }
 0x4cc   : > { %v2281_v47 = vsel %vm2279_vm8, %v2276_v61, %v7846_v29  ;;  %v2278_v33 = vsel %vm7852_vm1, %v2273_v31, %v7851_v34 }
 0x4cd   : > { %v2286_v2 = vsel %vm2284_vm9, %v2281_v47, %v7848_v46  ;;  %v2283_v35 = vsel %vm2279_vm8, %v2278_v33, %v7854_v53 }
 0x4ce   : > { %v2291_v10 = vsel %vm2289_vm10, %v2286_v2, %v7850_v45  ;;  %v2288_v63 = vsel %vm2284_vm9, %v2283_v35, %v7856_v11 }
 0x4cf   : > { %v2296_v59 = vsel %vm2294_vm11, %v2291_v10, %v7853_v57  ;;  %v2293_v55 = vsel %vm2289_vm10, %v2288_v63, %v7858_v44 }
 0x4d0   : > { %v2301_v23 = vsel %vm2299_vm12, %v2296_v59, %v7855_v21  ;;  %v2298_v41 = vsel %vm2294_vm11, %v2293_v55, %v7860_v8 }
 0x4d1   : > { %v2306_v17 = vsel %vm2304_vm13, %v2301_v23, %v7857_v27  ;;  %v2303_v28 = vsel %vm2299_vm12, %v2298_v41, %v7862_v58 }
 0x4d2   : > { %v2311_v43 = vsel %vm2309_vm14, %v2306_v17, %v7859_v16  ;;  %v2308_v18 = vsel %vm2304_vm13, %v2303_v28, %v7864_v26 }
 0x4d3   : > { %v2316_v5 = vsel %vm2314_vm15, %v2311_v43, %v7861_v54  ;;  %v2313_v48 = vsel %vm2309_vm14, %v2308_v18, %v7865_v36 }
 0x4d4   : > { %v2318_v14 = vsel %vm2314_vm15, %v2313_v48, %v7866_v7 }
 0x4d5   : > { %v4492_v40 = vpop.permute.xlu1 %4491 }
 0x4d6   : > { %v4503_v39 = vsel %vm7863_vm2, %v2316_v5, %v4492_v40 }
 0x4d7   : > { %4508 = vst.msk [vmem:[%s7335_s26 + $0x8] sm:$0xff] %vm4506_vm7, %v4503_v39 }
 0x4d9   : > { %v4496_v4 = vpop.permute.xlu1 %4495 }
 0x4da   : > { %v4505_v22 = vsel %vm7867_vm3, %v2318_v14, %v4496_v4 }
 0x4db   : > { %4510 = vst.msk [vmem:[%s7335_s26 + $0x18] sm:$0xff] %vm4506_vm7, %v4505_v22 }
 0x4dc   : > { %4741 = shalt.err (!%p4738_p2)
}
 0x4dd   : > { %s4742_s11 = scalar_lea.hbm %s7417_s10, 512  ;;  %s4746_s16 = scalar_lea.hbm %s7466_s1, 1024 }
 0x4de   : > { %p4743_p4 = scmp.ne.s32.totalorder %s7417_s10, %s4742_s11  ;;  %p4747_p9 = scmp.lt.u32.totalorder %s7417_s10, %s7466_s1 }
 0x4df   : > { %p4748_p1 = scmp.lt.u32.totalorder %s4746_s16, %s4742_s11  ;;  %p4750_p6 = scmp.lt.u32.totalorder %s4742_s11, %s7417_s10 }
 0x4e0   : > { %p4744_p5 = pnand %p4743_p4, %p7868_p11 }
 0x4e1   : > { %p4749_p3 = por %p4748_p1, %p4747_p9 }
 0x4e2   : > { %p4745_p7 = pneg %p4744_p5 }
 0x4e3   : > { %p4751_p12 = por %p4750_p6, %p4749_p3 }
 0x4e5   : > { %p4752_p13 = pnand %p4751_p12, %p4745_p7 }
 0x4e7   : > { %4755 = shalt.err (!%p4752_p13)
}
 0x4e8   : > { %s4818_s22 = smov 128  }
 0x4e9   : > { %4633 = dma.vmem_to_hbm [thread:$0]  (%p7868_p11), %s7410_s30, 512, %s7417_s10, %s4512_s29, %s4818_s22, %s4818_s22, %s4804_s28  }
 0x4ea PF: > { %s4541_s24 = sand.u32 1, %s4782_s6   ;;  %p7869_p8 = scmp.ne.s32.totalorder %s7516_s19, 0 }
 0x4eb   : > { %p7870_p10 = scmp.ge.s32.totalorder %s4794_s9, 2  ;;  %s4542_s26 = scalar_lea.sflag [#allocation4], %s4541_s24 }
 0x4ed   : > { %p4640_p0 = pnand %p7870_p10, %p7869_p8 }
 0x4ef   : > { %4777 = dma.done.wait (!%p4640_p0), %s4542_s26, 512  }
 0x4f0   : > { %4779 = vsyncadd (!%p4640_p0), %s4542_s26, 4294966784  ;;  %p14_p2 = scmp.ge.s32.totalorder %s4854_s12, 4   ;;  %s7871_s6 = smov %s4786_s7 }
 0x4f1   : > { %s7872_s7 = smov %s4790_s8  ;;  %s7873_s8 = smov %s4866_s15 }
 0x4f2   : > { %s7874_s9 = smov %s4854_s12  ;;  %16 = sbr.rel (!%p14_p2) target bundleno = 5 (0x5), region = 72 }
 0x4f9   :  { %4547 = vsyncpa [#allocation3], 1 }
 0x4fa   :  { %4549 = vsyncpa [#allocation3 + $0x1], 1 }
 0x4fb   :  { %4550 = vsyncpa [#allocation4], 1 }
 0x4fc   :  { %4552 = vsyncpa [#allocation4 + $0x1], 1 }

// kernel: tpu_custom_call.1
= control target key start
LH: loop header
LB: loop body
LE: loop exit
PB: predicated region body
PF: predicated region fallthrough
CT: control target
= control target key end

     0   :  { %6 = vsyncpa [#allocation3], 0  ;;  %s2913_s0 = inlined_call_operand.hbm [shape: f32[4,4,16,16], index: 0, kind: input, shape index: {}]   ;;  %s2914_s1 = inlined_call_operand.hbm [shape: f32[4,16,64], index: 1, kind: output, shape index: {}]  }
   0x1   :  { %8 = vsyncpa [#allocation3 + $0x1], 0 }
   0x2   :  { %9 = vsyncpa [#allocation4], 0 }
   0x3   :  { %11 = vsyncpa [#allocation4 + $0x1], 0  ;;  %s1537_s6 = smov 0   ;;  %s1539_s7 = smov 0  }
   0x4   :  { %s1541_s8 = smov 0   ;;  %s1543_s9 = smov 0  }
   0x5 LB: > { %s1558_s10 = sadd.s32 4294967295, %s1502_s9   ;;  %s1303_s11 = sadd.s32 4294967294, %s1502_s9   ;;  %s1502_s9 = sphi %s1543_s9, %s3102_s9   ;;  %s1498_s8 = sphi %s1541_s8, %s3101_s8   ;;  %s1494_s7 = sphi %s1539_s7, %s3100_s7   ;;  %s1490_s6 = sphi %s1537_s6, %s3099_s6  }
   0x6   : > { %s1562_s12 = sadd.s32 1, %s1502_s9   ;;  %s24_s13 = sadd.s32 1, %s1498_s8 }
   0x7   : > { %s21_s14 = ssub.s32 %s1502_s9, %s1562_s12  ;;  %p31_p0 = scmp.ne.s32.totalorder %s1498_s8, %s1494_s7 }
   0x8   : > { %p22_p1 = scmp.eq.s32.totalorder %s21_s14, 0  ;;  %p32_p2 = scmp.eq.s32.totalorder %s1502_s9, 0 }
   0x9   : > { %p37_p3 = scmp.ne.s32.totalorder %s1494_s7, %s1490_s6  ;;  %p38_p4 = scmp.eq.s32.totalorder %s1558_s10, 0 }
   0xa   : > { %s1574_s15 = scalar_select %p22_p1, %s1498_s8, %s24_s13  }
   0xb   : > { %p1576_p5 = por %p32_p2, %p31_p0  ;;  %p1580_p6 = por %p38_p4, %p37_p3 }
   0xc   : > { %p61_p7 = scmp.eq.s32.totalorder %s1558_s10, 1  ;;  %p67_p8 = scmp.eq.s32.totalorder %s1303_s11, 1 }
   0xd   : > { %p1347_p10 = scmp.lt.s32.totalorder %s1502_s9, 2  ;;  %s87_s20 = sand.u32 1, %s1498_s8  }
   0xe   : > { %p1587_p11 = por %p61_p7, %p31_p0  ;;  %p1591_p12 = por %p67_p8, %p37_p3 }
   0xf   : > { %s1332_s21 = sshll.u32 %s1502_s9, 11  ;;  %s1306_s22 = sshll.u32 %s87_s20, 7 }
  0x10   : > { %s2919_s18 = scalar_select %p1587_p11, 1, 0 }
  0x11   : > { %s2920_s19 = scalar_select %p1591_p12, 1, 0 }
  0x12   : > { %s1600_s25 = scalar_lea.hbm %s2913_s0, %s1332_s21  ;;  %s91_s26 = scalar_lea.vmem [#allocation2], %s1306_s22 }
  0x13   : > { %s99_s27 = sshll.u32 %s91_s26, 4  ;;  %p1604_p13 = pnand %p1347_p10, %p1576_p5  ;;  %s1608_s27 = int_to_ptr.vmem [resolvable:$true] %s99_s27 }
  0x14   : > { %s1610_s29 = scalar_lea.sflag [#allocation3], %s87_s20  ;;  %s1406_s30 = scalar_lea.hbm %s1600_s25, 2048 }
  0x15   : > { %p1407_p0 = scmp.ne.s32.totalorder %s1600_s25, %s1406_s30  ;;  %p1408_p1 = pneg %p1604_p13 }
  0x16   : > { %s1411_s4 = scalar_lea.hbm %s2913_s0, 4096  ;;  %p1412_p4 = scmp.lt.u32.totalorder %s1600_s25, %s2913_s0 }
  0x17   : > { %p1409_p2 = pnand %p1408_p1, %p1407_p0  ;;  %p1413_p5 = scmp.lt.u32.totalorder %s1411_s4, %s1406_s30 }
  0x18   : > { %p1415_p8 = scmp.lt.u32.totalorder %s1406_s30, %s1600_s25 }
  0x19   : > { %p1410_p3 = pneg %p1409_p2  ;;  %p1414_p7 = por %p1413_p5, %p1412_p4 }
  0x1b   : > { %p1416_p10 = por %p1415_p8, %p1414_p7 }
  0x1d   : > { %p1417_p9 = pnand %p1416_p10, %p1410_p3 }
  0x1f   : > { %1420 = shalt.err (!%p1417_p9)
}
  0x20   : > { %s1421_s13 = scalar_lea.vmem %s1608_s27, 2048  ;;  %s1504_s14 = smov [#allocation2]  }
  0x21   : > { %p1422_p0 = scmp.ne.s32.totalorder %s1608_s27, %s1421_s13  ;;  %s1426_s16 = sshll.u32 %s1504_s14, 4  ;;  %s1427_s16 = int_to_ptr.vmem [resolvable:$false] %s1426_s16 }
  0x22   : > { %s1428_s20 = scalar_lea.vmem %s1427_s16, 4096  ;;  %p1429_p11 = scmp.lt.s32.totalorder %s1608_s27, %s1427_s16 }
  0x23   : > { %p1424_p2 = pnand %p1422_p0, %p1408_p1  ;;  %p1430_p4 = scmp.lt.s32.totalorder %s1428_s20, %s1421_s13 }
  0x25   : > { %p1425_p12 = pneg %p1424_p2  ;;  %p1431_p5 = por %p1430_p4, %p1429_p11 }
  0x27   : > { %p1432_p7 = pnand %p1431_p5, %p1425_p12 }
  0x29   : > { %1435 = shalt.err (!%p1432_p7)
}
  0x2a   : > { %s1505_s21 = smov 128   ;;  %s1506_s22 = smov 8  }
  0x2b   : > { %1342 = dma.hbm_to_vmem [thread:$0]  (!%p1604_p13), %s1600_s25, 2048, %s1608_s27, %s1610_s29, %s1505_s21, %s1505_s21, %s1506_s22  }
  0x2c   : > { %p1310_p9 = scmp.ge.s32.totalorder %s1502_s9, 1  ;;  %p107_p1 = scmp.lt.s32.totalorder %s1502_s9, 3 }
  0x2e   : > { %p108_p3 = pnand %p1310_p9, %p107_p1 }
  0x30   : > { %111 = sbr.rel (%p108_p3) target bundleno = 962 (0x3c2), region = 24 }
  0x37   : > { %s1641_s23 = sand.u32 1, %s1494_s7  }
  0x38   : > { %s1311_s24 = sshll.u32 %s1641_s23, 7  ;;  %s114_s26 = scalar_lea.sflag [#allocation3], %s1641_s23 }
  0x39   : > { %s1645_s30 = scalar_lea.vmem [#allocation2], %s1311_s24 }
  0x3a   : > { %1481 = dma.done.wait (%p1580_p6), %s114_s26, 2048  }
  0x3b   : > { %1483 = vsyncadd (%p1580_p6), %s114_s26, 4294965248  ;;  %v1652_v0 = vld [vmem:[%s1645_s30 + $0x50] sm:$0xff]  ;;  %s1507_s25 = smov 1   ;;  %v1662_v2 = vld [vmem:[%s1645_s30 + $0x58] sm:$0xff]  ;;  %s1508_s17 = smov 2   ;;  %vm335_vm0 = vcmask 7168  }
  0x3c   : > { %v1655_v1 = vld [vmem:[%s1645_s30 + $0x10] sm:$0xff]  ;;  %155 = vrot.lane.b32.xlu1 %v1652_v0, %s1507_s25  ;;  %v1665_v3 = vld [vmem:[%s1645_s30 + $0x18] sm:$0xff]  ;;  %v1672_v4 = vld [vmem:[%s1645_s30 + $0x8] sm:$0xff]  ;;  %s1509_s27 = smov 3   ;;  %s1510_s28 = smov 4   ;;  %vm340_vm1 = vcmask 15360  }
  0x3d   : > { %151 = vrot.lane.b32.xlu0 %v1655_v1, %s1507_s25  ;;  %v1675_v5 = vld [vmem:[%s1645_s30] sm:$0xff]  ;;  %v1682_v6 = vld [vmem:[%s1645_s30 + $0x48] sm:$0xff]  ;;  %s1511_s29 = smov 5   ;;  %s1512_s2 = smov 6   ;;  %vm345_vm2 = vcmask 23552   ;;  %vm350_vm3 = vcmask 31744  }
  0x3e   : > { %v1685_v7 = vld [vmem:[%s1645_s30 + $0x40] sm:$0xff]  ;;  %s1513_s3 = smov 7   ;;  %s1514_s4 = smov 8   ;;  %vm355_vm4 = vcmask 39936   ;;  %vm360_vm5 = vcmask 48128   ;;  %vm365_vm6 = vcmask 56320  }
  0x3f   : > { %s1515_s5 = smov 120   ;;  %s1516_s11 = smov 121   ;;  %vm370_vm7 = vcmask 64512   ;;  %vm375_vm8 = vcmask 72704   ;;  %vm380_vm9 = vcmask 80896   ;;  %vm385_vm10 = vcmask 89088  }
  0x40   : > { %157 = vrot.lane.b32.xlu1 %v1662_v2, %s1507_s25  ;;  %s1517_s13 = smov 122   ;;  %s1518_s14 = smov 123   ;;  %vm390_vm11 = vcmask 97280   ;;  %vm395_vm12 = vcmask 105472   ;;  %vm400_vm13 = vcmask 113664   ;;  %vm405_vm14 = vcmask 121856  }
  0x41   : > { %153 = vrot.lane.b32.xlu0 %v1665_v3, %s1507_s25  ;;  %s1519_s16 = smov 124   ;;  %s1520_s20 = smov 125   ;;  %vm666_vm15 = vcmask 130048  }
  0x42   : > { %s1521_s21 = smov 126   ;;  %s1522_s22 = smov 127  }
  0x43   : > { %s1523_s24 = smov 16   ;;  %s1524_s26 = smov 32  }
  0x44   : > { %169 = vrot.lane.b32.xlu1 %v1672_v4, %s1507_s25  ;;  %p3096_p11 = scmp.ne.s32.totalorder %s2919_s18, 0 }
  0x45   : > { %167 = vrot.lane.b32.xlu0 %v1675_v5, %s1507_s25 }
  0x48   : > { %173 = vrot.lane.b32.xlu1 %v1682_v6, %s1507_s25 }
  0x49   : > { %171 = vrot.lane.b32.xlu0 %v1685_v7, %s1507_s25 }
  0x4c   : > { %181 = vrot.lane.b32.xlu1 %v1665_v3, %s1508_s17 }
  0x4d   : > { %179 = vrot.lane.b32.xlu0 %v1655_v1, %s1508_s17 }
  0x50   : > { %185 = vrot.lane.b32.xlu1 %v1662_v2, %s1508_s17 }
  0x51   : > { %183 = vrot.lane.b32.xlu0 %v1652_v0, %s1508_s17 }
  0x54   : > { %193 = vrot.lane.b32.xlu1 %v1672_v4, %s1508_s17 }
  0x55   : > { %191 = vrot.lane.b32.xlu0 %v1675_v5, %s1508_s17 }
  0x58   : > { %197 = vrot.lane.b32.xlu1 %v1682_v6, %s1508_s17 }
  0x59   : > { %195 = vrot.lane.b32.xlu0 %v1685_v7, %s1508_s17 }
  0x5c   : > { %205 = vrot.lane.b32.xlu1 %v1665_v3, %s1509_s27 }
  0x5d   : > { %203 = vrot.lane.b32.xlu0 %v1655_v1, %s1509_s27 }
  0x60   : > { %209 = vrot.lane.b32.xlu1 %v1662_v2, %s1509_s27 }
  0x61   : > { %207 = vrot.lane.b32.xlu0 %v1652_v0, %s1509_s27 }
  0x64   : > { %217 = vrot.lane.b32.xlu1 %v1672_v4, %s1509_s27 }
  0x65   : > { %215 = vrot.lane.b32.xlu0 %v1675_v5, %s1509_s27 }
  0x68   : > { %221 = vrot.lane.b32.xlu1 %v1682_v6, %s1509_s27 }
  0x69   : > { %219 = vrot.lane.b32.xlu0 %v1685_v7, %s1509_s27 }
  0x6c   : > { %229 = vrot.lane.b32.xlu1 %v1665_v3, %s1510_s28 }
  0x6d   : > { %227 = vrot.lane.b32.xlu0 %v1655_v1, %s1510_s28 }
  0x70   : > { %233 = vrot.lane.b32.xlu1 %v1662_v2, %s1510_s28 }
  0x71   : > { %231 = vrot.lane.b32.xlu0 %v1652_v0, %s1510_s28 }
  0x74   : > { %241 = vrot.lane.b32.xlu1 %v1672_v4, %s1510_s28 }
  0x75   : > { %239 = vrot.lane.b32.xlu0 %v1675_v5, %s1510_s28 }
  0x78   : > { %245 = vrot.lane.b32.xlu1 %v1682_v6, %s1510_s28 }
  0x79   : > { %243 = vrot.lane.b32.xlu0 %v1685_v7, %s1510_s28 }
  0x7c   : > { %253 = vrot.lane.b32.xlu1 %v1665_v3, %s1511_s29 }
  0x7d   : > { %251 = vrot.lane.b32.xlu0 %v1655_v1, %s1511_s29 }
  0x80   : > { %257 = vrot.lane.b32.xlu1 %v1662_v2, %s1511_s29 }
  0x81   : > { %255 = vrot.lane.b32.xlu0 %v1652_v0, %s1511_s29 }
  0x84   : > { %265 = vrot.lane.b32.xlu1 %v1672_v4, %s1511_s29 }
  0x85   : > { %263 = vrot.lane.b32.xlu0 %v1675_v5, %s1511_s29 }
  0x88   : > { %269 = vrot.lane.b32.xlu1 %v1682_v6, %s1511_s29 }
  0x89   : > { %267 = vrot.lane.b32.xlu0 %v1685_v7, %s1511_s29 }
  0x8c   : > { %277 = vrot.lane.b32.xlu1 %v1665_v3, %s1512_s2 }
  0x8d   : > { %275 = vrot.lane.b32.xlu0 %v1655_v1, %s1512_s2 }
  0x90   : > { %281 = vrot.lane.b32.xlu1 %v1662_v2, %s1512_s2 }
  0x91   : > { %279 = vrot.lane.b32.xlu0 %v1652_v0, %s1512_s2 }
  0x94   : > { %289 = vrot.lane.b32.xlu1 %v1672_v4, %s1512_s2 }
  0x95   : > { %287 = vrot.lane.b32.xlu0 %v1675_v5, %s1512_s2 }
  0x98   : > { %293 = vrot.lane.b32.xlu1 %v1682_v6, %s1512_s2 }
  0x99   : > { %291 = vrot.lane.b32.xlu0 %v1685_v7, %s1512_s2 }
  0x9c   : > { %301 = vrot.lane.b32.xlu1 %v1665_v3, %s1513_s3 }
  0x9d   : > { %299 = vrot.lane.b32.xlu0 %v1655_v1, %s1513_s3 }
  0xa0   : > { %305 = vrot.lane.b32.xlu1 %v1662_v2, %s1513_s3 }
  0xa1   : > { %303 = vrot.lane.b32.xlu0 %v1652_v0, %s1513_s3 }
  0xa4   : > { %313 = vrot.lane.b32.xlu1 %v1672_v4, %s1513_s3 }
  0xa5   : > { %311 = vrot.lane.b32.xlu0 %v1675_v5, %s1513_s3 }
  0xa8   : > { %317 = vrot.lane.b32.xlu1 %v1682_v6, %s1513_s3 }
  0xa9   : > { %315 = vrot.lane.b32.xlu0 %v1685_v7, %s1513_s3 }
  0xac   : > { %325 = vrot.lane.b32.xlu1 %v1665_v3, %s1514_s4 }
  0xad   : > { %323 = vrot.lane.b32.xlu0 %v1655_v1, %s1514_s4 }
  0xae   : > { %v1791_v8 = vpop.permute.xlu1 %155 }
  0xaf   : > { %2922 = vst [vmem:[#allocation8_spill] sm:$0xff] %v1791_v8  ;;  %v1793_v9 = vpop.permute.xlu0 %151 }
  0xb0   : > { %2923 = vst [vmem:[#allocation9_spill] sm:$0xff] %v1793_v9  ;;  %329 = vrot.lane.b32.xlu1 %v1662_v2, %s1514_s4 }
  0xb1   : > { %327 = vrot.lane.b32.xlu0 %v1652_v0, %s1514_s4 }
  0xb2   : > { %v1799_v10 = vpop.permute.xlu1 %157 }
  0xb3   : > { %2924 = vst [vmem:[#allocation10_spill] sm:$0xff] %v1799_v10  ;;  %v1801_v11 = vpop.permute.xlu0 %153 }
  0xb4   : > { %2925 = vst [vmem:[#allocation11_spill] sm:$0xff] %v1801_v11  ;;  %412 = vrot.lane.b32.xlu1 %v1672_v4, %s1515_s5 }
  0xb5   : > { %410 = vrot.lane.b32.xlu0 %v1675_v5, %s1515_s5 }
  0xb6   : > { %v1807_v12 = vpop.permute.xlu1 %169 }
  0xb7   : > { %2926 = vst [vmem:[#allocation12_spill] sm:$0xff] %v1807_v12  ;;  %v1809_v13 = vpop.permute.xlu0 %167 }
  0xb8   : > { %2927 = vst [vmem:[#allocation13_spill] sm:$0xff] %v1809_v13  ;;  %416 = vrot.lane.b32.xlu1 %v1682_v6, %s1515_s5 }
  0xb9   : > { %414 = vrot.lane.b32.xlu0 %v1685_v7, %s1515_s5 }
  0xba   : > { %v1815_v14 = vpop.permute.xlu1 %173 }
  0xbb   : > { %2928 = vst [vmem:[#allocation14_spill] sm:$0xff] %v1815_v14  ;;  %v1817_v15 = vpop.permute.xlu0 %171 }
  0xbc   : > { %2929 = vst [vmem:[#allocation15_spill] sm:$0xff] %v1817_v15  ;;  %424 = vrot.lane.b32.xlu1 %v1665_v3, %s1516_s11 }
  0xbd   : > { %422 = vrot.lane.b32.xlu0 %v1655_v1, %s1516_s11 }
  0xbe   : > { %v1823_v16 = vpop.permute.xlu1 %181 }
  0xbf   : > { %2930 = vst [vmem:[#allocation16_spill] sm:$0xff] %v1823_v16  ;;  %v1825_v17 = vpop.permute.xlu0 %179 }
  0xc0   : > { %2931 = vst [vmem:[#allocation17_spill] sm:$0xff] %v1825_v17  ;;  %428 = vrot.lane.b32.xlu1 %v1662_v2, %s1516_s11 }
  0xc1   : > { %426 = vrot.lane.b32.xlu0 %v1652_v0, %s1516_s11 }
  0xc2   : > { %v1831_v18 = vpop.permute.xlu1 %185 }
  0xc3   : > { %2932 = vst [vmem:[#allocation18_spill] sm:$0xff] %v1831_v18  ;;  %v1833_v19 = vpop.permute.xlu0 %183 }
  0xc4   : > { %2933 = vst [vmem:[#allocation19_spill] sm:$0xff] %v1833_v19  ;;  %436 = vrot.lane.b32.xlu1 %v1672_v4, %s1516_s11 }
  0xc5   : > { %434 = vrot.lane.b32.xlu0 %v1675_v5, %s1516_s11 }
  0xc6   : > { %v1839_v20 = vpop.permute.xlu1 %193 }
  0xc7   : > { %2934 = vst [vmem:[#allocation20_spill] sm:$0xff] %v1839_v20  ;;  %v1841_v21 = vpop.permute.xlu0 %191 }
  0xc8   : > { %2935 = vst [vmem:[#allocation21_spill] sm:$0xff] %v1841_v21  ;;  %440 = vrot.lane.b32.xlu1 %v1682_v6, %s1516_s11 }
  0xc9   : > { %438 = vrot.lane.b32.xlu0 %v1685_v7, %s1516_s11 }
  0xca   : > { %v1847_v22 = vpop.permute.xlu1 %197 }
  0xcb   : > { %2936 = vst [vmem:[#allocation22_spill] sm:$0xff] %v1847_v22  ;;  %v1849_v23 = vpop.permute.xlu0 %195 }
  0xcc   : > { %2937 = vst [vmem:[#allocation23_spill] sm:$0xff] %v1849_v23  ;;  %448 = vrot.lane.b32.xlu1 %v1665_v3, %s1517_s13 }
  0xcd   : > { %446 = vrot.lane.b32.xlu0 %v1655_v1, %s1517_s13 }
  0xce   : > { %v1855_v24 = vpop.permute.xlu1 %205 }
  0xcf   : > { %2938 = vst [vmem:[#allocation24_spill] sm:$0xff] %v1855_v24  ;;  %v1857_v25 = vpop.permute.xlu0 %203 }
  0xd0   : > { %2939 = vst [vmem:[#allocation25_spill] sm:$0xff] %v1857_v25  ;;  %452 = vrot.lane.b32.xlu1 %v1662_v2, %s1517_s13 }
  0xd1   : > { %450 = vrot.lane.b32.xlu0 %v1652_v0, %s1517_s13 }
  0xd2   : > { %v1863_v26 = vpop.permute.xlu1 %209 }
  0xd3   : > { %2940 = vst [vmem:[#allocation26_spill] sm:$0xff] %v1863_v26  ;;  %v1865_v27 = vpop.permute.xlu0 %207 }
  0xd4   : > { %2941 = vst [vmem:[#allocation27_spill] sm:$0xff] %v1865_v27  ;;  %460 = vrot.lane.b32.xlu1 %v1672_v4, %s1517_s13 }
  0xd5   : > { %458 = vrot.lane.b32.xlu0 %v1675_v5, %s1517_s13 }
  0xd6   : > { %v1871_v28 = vpop.permute.xlu1 %217 }
  0xd7   : > { %2942 = vst [vmem:[#allocation28_spill] sm:$0xff] %v1871_v28  ;;  %v1873_v29 = vpop.permute.xlu0 %215 }
  0xd8   : > { %2943 = vst [vmem:[#allocation29_spill] sm:$0xff] %v1873_v29  ;;  %464 = vrot.lane.b32.xlu1 %v1682_v6, %s1517_s13 }
  0xd9   : > { %462 = vrot.lane.b32.xlu0 %v1685_v7, %s1517_s13 }
  0xda   : > { %v1879_v30 = vpop.permute.xlu1 %221 }
  0xdb   : > { %2944 = vst [vmem:[#allocation30_spill] sm:$0xff] %v1879_v30  ;;  %v1881_v31 = vpop.permute.xlu0 %219 }
  0xdc   : > { %2945 = vst [vmem:[#allocation31_spill] sm:$0xff] %v1881_v31  ;;  %472 = vrot.lane.b32.xlu1 %v1665_v3, %s1518_s14 }
  0xdd   : > { %470 = vrot.lane.b32.xlu0 %v1655_v1, %s1518_s14 }
  0xde   : > { %v1887_v32 = vpop.permute.xlu1 %229 }
  0xdf   : > { %2946 = vst [vmem:[#allocation32_spill] sm:$0xff] %v1887_v32  ;;  %v1889_v33 = vpop.permute.xlu0 %227 }
  0xe0   : > { %2947 = vst [vmem:[#allocation33_spill] sm:$0xff] %v1889_v33  ;;  %476 = vrot.lane.b32.xlu1 %v1662_v2, %s1518_s14 }
  0xe1   : > { %474 = vrot.lane.b32.xlu0 %v1652_v0, %s1518_s14 }
  0xe2   : > { %v1895_v34 = vpop.permute.xlu1 %233 }
  0xe3   : > { %2948 = vst [vmem:[#allocation34_spill] sm:$0xff] %v1895_v34  ;;  %v1897_v35 = vpop.permute.xlu0 %231 }
  0xe4   : > { %2949 = vst [vmem:[#allocation35_spill] sm:$0xff] %v1897_v35  ;;  %484 = vrot.lane.b32.xlu1 %v1672_v4, %s1518_s14 }
  0xe5   : > { %482 = vrot.lane.b32.xlu0 %v1675_v5, %s1518_s14 }
  0xe6   : > { %v1903_v36 = vpop.permute.xlu1 %241 }
  0xe7   : > { %2950 = vst [vmem:[#allocation36_spill] sm:$0xff] %v1903_v36  ;;  %v1905_v37 = vpop.permute.xlu0 %239 }
  0xe8   : > { %2951 = vst [vmem:[#allocation37_spill] sm:$0xff] %v1905_v37  ;;  %488 = vrot.lane.b32.xlu1 %v1682_v6, %s1518_s14 }
  0xe9   : > { %486 = vrot.lane.b32.xlu0 %v1685_v7, %s1518_s14 }
  0xea   : > { %v1911_v38 = vpop.permute.xlu1 %245 }
  0xeb   : > { %2952 = vst [vmem:[#allocation38_spill] sm:$0xff] %v1911_v38  ;;  %v1913_v39 = vpop.permute.xlu0 %243 }
  0xec   : > { %2953 = vst [vmem:[#allocation39_spill] sm:$0xff] %v1913_v39  ;;  %496 = vrot.lane.b32.xlu1 %v1665_v3, %s1519_s16 }
  0xed   : > { %494 = vrot.lane.b32.xlu0 %v1655_v1, %s1519_s16 }
  0xee   : > { %v1919_v40 = vpop.permute.xlu1 %253 }
  0xef   : > { %2954 = vst [vmem:[#allocation40_spill] sm:$0xff] %v1919_v40  ;;  %v1921_v41 = vpop.permute.xlu0 %251 }
  0xf0   : > { %2955 = vst [vmem:[#allocation41_spill] sm:$0xff] %v1921_v41  ;;  %500 = vrot.lane.b32.xlu1 %v1662_v2, %s1519_s16 }
  0xf1   : > { %498 = vrot.lane.b32.xlu0 %v1652_v0, %s1519_s16 }
  0xf2   : > { %v1927_v42 = vpop.permute.xlu1 %257 }
  0xf3   : > { %2956 = vst [vmem:[#allocation42_spill] sm:$0xff] %v1927_v42  ;;  %v1929_v43 = vpop.permute.xlu0 %255 }
  0xf4   : > { %2957 = vst [vmem:[#allocation43_spill] sm:$0xff] %v1929_v43  ;;  %508 = vrot.lane.b32.xlu1 %v1672_v4, %s1519_s16 }
  0xf5   : > { %506 = vrot.lane.b32.xlu0 %v1675_v5, %s1519_s16 }
  0xf6   : > { %v1935_v44 = vpop.permute.xlu1 %265 }
  0xf7   : > { %2958 = vst [vmem:[#allocation44_spill] sm:$0xff] %v1935_v44  ;;  %v1937_v45 = vpop.permute.xlu0 %263 }
  0xf8   : > { %2959 = vst [vmem:[#allocation45_spill] sm:$0xff] %v1937_v45  ;;  %512 = vrot.lane.b32.xlu1 %v1682_v6, %s1519_s16 }
  0xf9   : > { %510 = vrot.lane.b32.xlu0 %v1685_v7, %s1519_s16 }
  0xfa   : > { %v1943_v46 = vpop.permute.xlu1 %269 }
  0xfb   : > { %2960 = vst [vmem:[#allocation46_spill] sm:$0xff] %v1943_v46  ;;  %v1945_v47 = vpop.permute.xlu0 %267 }
  0xfc   : > { %2961 = vst [vmem:[#allocation47_spill] sm:$0xff] %v1945_v47  ;;  %520 = vrot.lane.b32.xlu1 %v1665_v3, %s1520_s20 }
  0xfd   : > { %518 = vrot.lane.b32.xlu0 %v1655_v1, %s1520_s20 }
  0xfe   : > { %v1951_v48 = vpop.permute.xlu1 %277 }
  0xff   : > { %2962 = vst [vmem:[#allocation48_spill] sm:$0xff] %v1951_v48  ;;  %v1953_v49 = vpop.permute.xlu0 %275 }
 0x100   : > { %2963 = vst [vmem:[#allocation49_spill] sm:$0xff] %v1953_v49  ;;  %524 = vrot.lane.b32.xlu1 %v1662_v2, %s1520_s20 }
 0x101   : > { %522 = vrot.lane.b32.xlu0 %v1652_v0, %s1520_s20 }
 0x102   : > { %v1959_v50 = vpop.permute.xlu1 %281 }
 0x103   : > { %2964 = vst [vmem:[#allocation50_spill] sm:$0xff] %v1959_v50  ;;  %v1961_v51 = vpop.permute.xlu0 %279 }
 0x104   : > { %2965 = vst [vmem:[#allocation51_spill] sm:$0xff] %v1961_v51  ;;  %532 = vrot.lane.b32.xlu1 %v1672_v4, %s1520_s20 }
 0x105   : > { %530 = vrot.lane.b32.xlu0 %v1675_v5, %s1520_s20 }
 0x106   : > { %v1967_v52 = vpop.permute.xlu1 %289 }
 0x107   : > { %2966 = vst [vmem:[#allocation52_spill] sm:$0xff] %v1967_v52  ;;  %v1969_v53 = vpop.permute.xlu0 %287 }
 0x108   : > { %2967 = vst [vmem:[#allocation53_spill] sm:$0xff] %v1969_v53  ;;  %536 = vrot.lane.b32.xlu1 %v1682_v6, %s1520_s20 }
 0x109   : > { %534 = vrot.lane.b32.xlu0 %v1685_v7, %s1520_s20 }
 0x10a   : > { %v1975_v54 = vpop.permute.xlu1 %293 }
 0x10b   : > { %2968 = vst [vmem:[#allocation54_spill] sm:$0xff] %v1975_v54  ;;  %v1977_v55 = vpop.permute.xlu0 %291 }
 0x10c   : > { %2969 = vst [vmem:[#allocation55_spill] sm:$0xff] %v1977_v55  ;;  %544 = vrot.lane.b32.xlu1 %v1665_v3, %s1521_s21 }
 0x10d   : > { %542 = vrot.lane.b32.xlu0 %v1655_v1, %s1521_s21 }
 0x10e   : > { %v1983_v56 = vpop.permute.xlu1 %301 }
 0x10f   : > { %2970 = vst [vmem:[#allocation56_spill] sm:$0xff] %v1983_v56  ;;  %v1985_v57 = vpop.permute.xlu0 %299 }
 0x110   : > { %2971 = vst [vmem:[#allocation57_spill] sm:$0xff] %v1985_v57  ;;  %548 = vrot.lane.b32.xlu1 %v1662_v2, %s1521_s21 }
 0x111   : > { %546 = vrot.lane.b32.xlu0 %v1652_v0, %s1521_s21 }
 0x112   : > { %v1991_v58 = vpop.permute.xlu1 %305 }
 0x113   : > { %2972 = vst [vmem:[#allocation58_spill] sm:$0xff] %v1991_v58  ;;  %v1993_v59 = vpop.permute.xlu0 %303 }
 0x114   : > { %2973 = vst [vmem:[#allocation59_spill] sm:$0xff] %v1993_v59  ;;  %556 = vrot.lane.b32.xlu1 %v1672_v4, %s1521_s21 }
 0x115   : > { %554 = vrot.lane.b32.xlu0 %v1675_v5, %s1521_s21 }
 0x116   : > { %v1999_v60 = vpop.permute.xlu1 %313 }
 0x117   : > { %2974 = vst [vmem:[#allocation60_spill] sm:$0xff] %v1999_v60  ;;  %v2001_v61 = vpop.permute.xlu0 %311 }
 0x118   : > { %2975 = vst [vmem:[#allocation61_spill] sm:$0xff] %v2001_v61  ;;  %560 = vrot.lane.b32.xlu1 %v1682_v6, %s1521_s21 }
 0x119   : > { %558 = vrot.lane.b32.xlu0 %v1685_v7, %s1521_s21 }
 0x11a   : > { %v2007_v62 = vpop.permute.xlu1 %317 }
 0x11b   : > { %2976 = vst [vmem:[#allocation62_spill] sm:$0xff] %v2007_v62  ;;  %v2009_v63 = vpop.permute.xlu0 %315 }
 0x11c   : > { %2977 = vst [vmem:[#allocation63_spill] sm:$0xff] %v2009_v63  ;;  %568 = vrot.lane.b32.xlu1 %v1665_v3, %s1522_s22 }
 0x11d   : > { %566 = vrot.lane.b32.xlu0 %v1655_v1, %s1522_s22 }
 0x11e   : > { %v2015_v59 = vpop.permute.xlu1 %325 }
 0x11f   : > { %2978 = vst [vmem:[#allocation64_spill] sm:$0xff] %v2015_v59  ;;  %v2017_v58 = vpop.permute.xlu0 %323 }
 0x120   : > { %2979 = vst [vmem:[#allocation65_spill] sm:$0xff] %v2017_v58  ;;  %572 = vrot.lane.b32.xlu1 %v1662_v2, %s1522_s22 }
 0x121   : > { %570 = vrot.lane.b32.xlu0 %v1652_v0, %s1522_s22 }
 0x122   : > { %v2023_v62 = vpop.permute.xlu1 %329 }
 0x123   : > { %2980 = vst [vmem:[#allocation66_spill] sm:$0xff] %v2023_v62  ;;  %v2025_v63 = vpop.permute.xlu0 %327 }
 0x124   : > { %2981 = vst [vmem:[#allocation67_spill] sm:$0xff] %v2025_v63  ;;  %580 = vrot.lane.b32.xlu1 %v1672_v4, %s1522_s22 }
 0x125   : > { %578 = vrot.lane.b32.xlu0 %v1675_v5, %s1522_s22 }
 0x126   : > { %v413_v55 = vpop.permute.xlu1 %412 }
 0x127   : > { %v411_v54 = vpop.permute.xlu0 %410 }
 0x128   : > { %584 = vrot.lane.b32.xlu1 %v1682_v6, %s1522_s22 }
 0x129   : > { %582 = vrot.lane.b32.xlu0 %v1685_v7, %s1522_s22 }
 0x12a   : > { %v2035_v58 = vpop.permute.xlu1 %416 }
 0x12b   : > { %v2037_v59 = vpop.permute.xlu0 %414 }
 0x12e   : > { %v425_v62 = vpop.permute.xlu1 %424 }
 0x12f   : > { %v423_v63 = vpop.permute.xlu0 %422  ;;  %v591_v21 = vsel %vm335_vm0, %v413_v55, %v425_v62 }
 0x130   : > { %v590_v20 = vsel %vm335_vm0, %v411_v54, %v423_v63 }
 0x132   : > { %v2039_v51 = vpop.permute.xlu1 %428 }
 0x133   : > { %v2041_v4 = vpop.permute.xlu0 %426  ;;  %v593_v62 = vsel %vm335_vm0, %v2035_v58, %v2039_v51 }
 0x136   : > { %v437_v61 = vpop.permute.xlu1 %436 }
 0x137   : > { %v435_v5 = vpop.permute.xlu0 %434  ;;  %v595_v17 = vsel %vm340_vm1, %v591_v21, %v437_v61 }
 0x138   : > { %v594_v16 = vsel %vm340_vm1, %v590_v20, %v435_v5  ;;  %v592_v20 = vsel %vm335_vm0, %v2037_v59, %v2041_v4 }
 0x13a   : > { %v2043_v60 = vpop.permute.xlu1 %440 }
 0x13b   : > { %v2045_v50 = vpop.permute.xlu0 %438 }
 0x13e   : > { %v449_v6 = vpop.permute.xlu1 %448 }
 0x13f   : > { %v447_v57 = vpop.permute.xlu0 %446  ;;  %v599_v13 = vsel %vm345_vm2, %v595_v17, %v449_v6 }
 0x140   : > { %v598_v12 = vsel %vm345_vm2, %v594_v16, %v447_v57 }
 0x142   : > { %v2047_v56 = vpop.permute.xlu1 %452 }
 0x143   : > { %v2049_v7 = vpop.permute.xlu0 %450 }
 0x146   : > { %v461_v47 = vpop.permute.xlu1 %460 }
 0x147   : > { %v459_v46 = vpop.permute.xlu0 %458  ;;  %v603_v54 = vsel %vm350_vm3, %v599_v13, %v461_v47  ;;  %v597_v13 = vsel %vm340_vm1, %v593_v62, %v2043_v60  ;;  %v2182_v62 = vld [vmem:[%s1645_s30 + $0x38] sm:$0xff] }
 0x148   : > { %v602_v55 = vsel %vm350_vm3, %v598_v12, %v459_v46  ;;  %v596_v12 = vsel %vm340_vm1, %v592_v20, %v2045_v50  ;;  %v601_v51 = vsel %vm345_vm2, %v597_v13, %v2047_v56  ;;  %v2185_v20 = vld [vmem:[%s1645_s30 + $0x30] sm:$0xff] }
 0x14a   : > { %v2051_v53 = vpop.permute.xlu1 %464 }
 0x14b   : > { %v2053_v52 = vpop.permute.xlu0 %462  ;;  %v605_v59 = vsel %vm350_vm3, %v601_v51, %v2051_v53 }
 0x14e   : > { %v473_v43 = vpop.permute.xlu1 %472 }
 0x14f   : > { %v471_v42 = vpop.permute.xlu0 %470  ;;  %v607_v21 = vsel %vm355_vm4, %v603_v54, %v473_v43  ;;  %v600_v43 = vsel %vm345_vm2, %v596_v12, %v2049_v7 }
 0x150   : > { %v606_v17 = vsel %vm355_vm4, %v602_v55, %v471_v42  ;;  %v604_v50 = vsel %vm350_vm3, %v600_v43, %v2053_v52 }
 0x152   : > { %v2055_v49 = vpop.permute.xlu1 %476 }
 0x153   : > { %v2057_v48 = vpop.permute.xlu0 %474  ;;  %v609_v56 = vsel %vm355_vm4, %v605_v59, %v2055_v49 }
 0x154   : > { %v608_v60 = vsel %vm355_vm4, %v604_v50, %v2057_v48 }
 0x156   : > { %v485_v39 = vpop.permute.xlu1 %484 }
 0x157   : > { %v483_v38 = vpop.permute.xlu0 %482  ;;  %v611_v46 = vsel %vm360_vm5, %v607_v21, %v485_v39  ;;  %v2195_v21 = vld [vmem:[%s1645_s30 + $0x70] sm:$0xff] }
 0x158   : > { %v610_v47 = vsel %vm360_vm5, %v606_v17, %v483_v38  ;;  %v2205_v17 = vld [vmem:[%s1645_s30 + $0x20] sm:$0xff] }
 0x15a   : > { %v2059_v45 = vpop.permute.xlu1 %488 }
 0x15b   : > { %v2061_v44 = vpop.permute.xlu0 %486  ;;  %v613_v53 = vsel %vm360_vm5, %v609_v56, %v2059_v45 }
 0x15e   : > { %v497_v35 = vpop.permute.xlu1 %496 }
 0x15f   : > { %v495_v34 = vpop.permute.xlu0 %494  ;;  %v615_v42 = vsel %vm365_vm6, %v611_v46, %v497_v35 }
 0x160   : > { %v614_v58 = vsel %vm365_vm6, %v610_v47, %v495_v34 }
 0x162   : > { %v2063_v41 = vpop.permute.xlu1 %500 }
 0x163   : > { %v2065_v40 = vpop.permute.xlu0 %498  ;;  %v617_v49 = vsel %vm365_vm6, %v613_v53, %v2063_v41 }
 0x166   : > { %v509_v31 = vpop.permute.xlu1 %508 }
 0x167   : > { %v507_v30 = vpop.permute.xlu0 %506  ;;  %v619_v39 = vsel %vm370_vm7, %v615_v42, %v509_v31  ;;  %v612_v31 = vsel %vm360_vm5, %v608_v60, %v2061_v44 }
 0x168   : > { %v618_v38 = vsel %vm370_vm7, %v614_v58, %v507_v30 }
 0x16a   : > { %v2067_v37 = vpop.permute.xlu1 %512 }
 0x16b   : > { %v2069_v36 = vpop.permute.xlu0 %510  ;;  %v621_v45 = vsel %vm370_vm7, %v617_v49, %v2067_v37 }
 0x16e   : > { %v521_v27 = vpop.permute.xlu1 %520 }
 0x16f   : > { %v519_v26 = vpop.permute.xlu0 %518  ;;  %v623_v35 = vsel %vm375_vm8, %v619_v39, %v521_v27  ;;  %v616_v27 = vsel %vm365_vm6, %v612_v31, %v2065_v40 }
 0x170   : > { %v622_v34 = vsel %vm375_vm8, %v618_v38, %v519_v26  ;;  %v620_v44 = vsel %vm370_vm7, %v616_v27, %v2069_v36 }
 0x172   : > { %v2071_v33 = vpop.permute.xlu1 %524 }
 0x173   : > { %v2073_v32 = vpop.permute.xlu0 %522  ;;  %v625_v41 = vsel %vm375_vm8, %v621_v45, %v2071_v33 }
 0x174   : > { %v624_v40 = vsel %vm375_vm8, %v620_v44, %v2073_v32 }
 0x176   : > { %v533_v23 = vpop.permute.xlu1 %532 }
 0x177   : > { %v531_v22 = vpop.permute.xlu0 %530  ;;  %v627_v30 = vsel %vm380_vm9, %v623_v35, %v533_v23 }
 0x178   : > { %v626_v52 = vsel %vm380_vm9, %v622_v34, %v531_v22 }
 0x17a   : > { %v2075_v29 = vpop.permute.xlu1 %536 }
 0x17b   : > { %v2077_v28 = vpop.permute.xlu0 %534  ;;  %v629_v37 = vsel %vm380_vm9, %v625_v41, %v2075_v29 }
 0x17e   : > { %v545_v19 = vpop.permute.xlu1 %544 }
 0x17f   : > { %v543_v18 = vpop.permute.xlu0 %542  ;;  %v631_v26 = vsel %vm385_vm10, %v627_v30, %v545_v19 }
 0x180   : > { %v630_v48 = vsel %vm385_vm10, %v626_v52, %v543_v18 }
 0x182   : > { %v2079_v25 = vpop.permute.xlu1 %548 }
 0x183   : > { %v2081_v24 = vpop.permute.xlu0 %546  ;;  %v633_v33 = vsel %vm385_vm10, %v629_v37, %v2079_v25 }
 0x186   : > { %v557_v15 = vpop.permute.xlu1 %556 }
 0x187   : > { %v555_v14 = vpop.permute.xlu0 %554  ;;  %v635_v23 = vsel %vm390_vm11, %v631_v26, %v557_v15  ;;  %v628_v15 = vsel %vm380_vm9, %v624_v40, %v2077_v28 }
 0x188   : > { %v634_v22 = vsel %vm390_vm11, %v630_v48, %v555_v14  ;;  %v632_v32 = vsel %vm385_vm10, %v628_v15, %v2081_v24 }
 0x18a   : > { %v2085_v10 = vpop.permute.xlu1 %560 }
 0x18b   : > { %v2087_v8 = vpop.permute.xlu0 %558  ;;  %v637_v28 = vsel %vm390_vm11, %v633_v33, %v2085_v10 }
 0x18c   : > { %v636_v29 = vsel %vm390_vm11, %v632_v32, %v2087_v8 }
 0x18e   : > { %v569_v16 = vpop.permute.xlu1 %568 }
 0x18f   : > { %v567_v57 = vpop.permute.xlu0 %566  ;;  %v639_v19 = vsel %vm395_vm12, %v635_v23, %v569_v16  ;;  %v2212_v16 = vld [vmem:[%s1645_s30 + $0x68] sm:$0xff] }
 0x190   : > { %v638_v18 = vsel %vm395_vm12, %v634_v22, %v567_v57  ;;  %v2215_v57 = vld [vmem:[%s1645_s30 + $0x60] sm:$0xff] }
 0x191   : > { %2982 = vst [vmem:[#allocation68_spill] sm:$0xff] %v2215_v57 }
 0x192   : > { %v573_v61 = vpop.permute.xlu1 %572 }
 0x193   : > { %v571_v63 = vpop.permute.xlu0 %570 }
 0x194   : > { %v640_v24 = vsel %vm395_vm12, %v636_v29, %v571_v63 }
 0x196   : > { %v581_v4 = vpop.permute.xlu1 %580 }
 0x197   : > { %v579_v5 = vpop.permute.xlu0 %578  ;;  %v643_v14 = vsel %vm400_vm13, %v639_v19, %v581_v4 }
 0x198   : > { %v642_v36 = vsel %vm400_vm13, %v638_v18, %v579_v5  ;;  %v647_v6 = vsel %vm405_vm14, %v643_v14, %v1665_v3  ;;  %v641_v3 = vsel %vm395_vm12, %v637_v28, %v573_v61 }
 0x199   : > { %v646_v7 = vsel %vm405_vm14, %v642_v36, %v1655_v1  ;;  %656 = vrot.lane.b32.xlu1 %v647_v6, %s1523_s24 }
 0x19a   : > { %654 = vrot.lane.b32.xlu0 %v646_v7, %s1523_s24  ;;  %v585_v1 = vpop.permute.xlu1 %584 }
 0x19b   : > { %v583_v25 = vpop.permute.xlu0 %582  ;;  %v645_v10 = vsel %vm400_vm13, %v641_v3, %v585_v1 }
 0x19c   : > { %v644_v54 = vsel %vm400_vm13, %v640_v24, %v583_v25  ;;  %v649_v8 = vsel %vm405_vm14, %v645_v10, %v1662_v2  ;;  %v2192_v2 = vld [vmem:[%s1645_s30 + $0x78] sm:$0xff] }
 0x19d   : > { %v648_v55 = vsel %vm405_vm14, %v644_v54, %v1652_v0  ;;  %660 = vrot.lane.b32.xlu1 %v649_v8, %s1523_s24  ;;  %v2202_v0 = vld [vmem:[%s1645_s30 + $0x28] sm:$0xff] }
 0x19e   : > { %658 = vrot.lane.b32.xlu0 %v648_v55, %s1523_s24 }
 0x1a1   : > { %687 = vrot.lane.b32.xlu1 %v2182_v62, %s1507_s25 }
 0x1a2   : > { %685 = vrot.lane.b32.xlu0 %v2185_v20, %s1507_s25 }
 0x1a5   : > { %691 = vrot.lane.b32.xlu1 %v2192_v2, %s1507_s25 }
 0x1a6   : > { %689 = vrot.lane.b32.xlu0 %v2195_v21, %s1507_s25 }
 0x1a9   : > { %703 = vrot.lane.b32.xlu1 %v2202_v0, %s1507_s25 }
 0x1aa   : > { %701 = vrot.lane.b32.xlu0 %v2205_v17, %s1507_s25 }
 0x1ad   : > { %707 = vrot.lane.b32.xlu1 %v2212_v16, %s1507_s25 }
 0x1ae   : > { %705 = vrot.lane.b32.xlu0 %v2215_v57, %s1507_s25 }
 0x1b1   : > { %715 = vrot.lane.b32.xlu1 %v2182_v62, %s1508_s17 }
 0x1b2   : > { %713 = vrot.lane.b32.xlu0 %v2185_v20, %s1508_s17 }
 0x1b5   : > { %719 = vrot.lane.b32.xlu1 %v2192_v2, %s1508_s17 }
 0x1b6   : > { %717 = vrot.lane.b32.xlu0 %v2195_v21, %s1508_s17 }
 0x1b9   : > { %727 = vrot.lane.b32.xlu1 %v2202_v0, %s1508_s17 }
 0x1ba   : > { %725 = vrot.lane.b32.xlu0 %v2205_v17, %s1508_s17 }
 0x1bd   : > { %731 = vrot.lane.b32.xlu1 %v2212_v16, %s1508_s17 }
 0x1be   : > { %729 = vrot.lane.b32.xlu0 %v2215_v57, %s1508_s17 }
 0x1c1   : > { %739 = vrot.lane.b32.xlu1 %v2182_v62, %s1509_s27 }
 0x1c2   : > { %737 = vrot.lane.b32.xlu0 %v2185_v20, %s1509_s27 }
 0x1c5   : > { %743 = vrot.lane.b32.xlu1 %v2192_v2, %s1509_s27 }
 0x1c6   : > { %741 = vrot.lane.b32.xlu0 %v2195_v21, %s1509_s27 }
 0x1c9   : > { %751 = vrot.lane.b32.xlu1 %v2202_v0, %s1509_s27 }
 0x1ca   : > { %749 = vrot.lane.b32.xlu0 %v2205_v17, %s1509_s27 }
 0x1cd   : > { %755 = vrot.lane.b32.xlu1 %v2212_v16, %s1509_s27 }
 0x1ce   : > { %753 = vrot.lane.b32.xlu0 %v2215_v57, %s1509_s27  ;;  %s1334_s27 = sshll.u32 %s1558_s10, 9 }
 0x1d1   : > { %763 = vrot.lane.b32.xlu1 %v2182_v62, %s1510_s28 }
 0x1d2   : > { %761 = vrot.lane.b32.xlu0 %v2185_v20, %s1510_s28 }
 0x1d5   : > { %767 = vrot.lane.b32.xlu1 %v2192_v2, %s1510_s28 }
 0x1d6   : > { %765 = vrot.lane.b32.xlu0 %v2195_v21, %s1510_s28 }
 0x1d9   : > { %775 = vrot.lane.b32.xlu1 %v2202_v0, %s1510_s28 }
 0x1da   : > { %773 = vrot.lane.b32.xlu0 %v2205_v17, %s1510_s28 }
 0x1dd   : > { %779 = vrot.lane.b32.xlu1 %v2212_v16, %s1510_s28 }
 0x1de   : > { %777 = vrot.lane.b32.xlu0 %v2215_v57, %s1510_s28 }
 0x1e1   : > { %931 = vrot.lane.b32.xlu1 %v2202_v0, %s1515_s5 }
 0x1e2   : > { %929 = vrot.lane.b32.xlu0 %v2205_v17, %s1515_s5 }
 0x1e5   : > { %935 = vrot.lane.b32.xlu1 %v2212_v16, %s1515_s5 }
 0x1e6   : > { %933 = vrot.lane.b32.xlu0 %v2215_v57, %s1515_s5  ;;  %s1525_s5 = smov [#allocation5]  }
 0x1e9   : > { %943 = vrot.lane.b32.xlu1 %v2182_v62, %s1516_s11 }
 0x1ea   : > { %941 = vrot.lane.b32.xlu0 %v2185_v20, %s1516_s11 }
 0x1ed   : > { %947 = vrot.lane.b32.xlu1 %v2192_v2, %s1516_s11 }
 0x1ee   : > { %945 = vrot.lane.b32.xlu0 %v2195_v21, %s1516_s11 }
 0x1f1   : > { %955 = vrot.lane.b32.xlu1 %v2202_v0, %s1516_s11 }
 0x1f2   : > { %953 = vrot.lane.b32.xlu0 %v2205_v17, %s1516_s11 }
 0x1f5   : > { %959 = vrot.lane.b32.xlu1 %v2212_v16, %s1516_s11 }
 0x1f6   : > { %957 = vrot.lane.b32.xlu0 %v2215_v57, %s1516_s11  ;;  %s1440_s11 = sshll.u32 %s1525_s5, 4  ;;  %s1441_s11 = int_to_ptr.vmem [resolvable:$false] %s1440_s11 }
 0x1f9   : > { %967 = vrot.lane.b32.xlu1 %v2182_v62, %s1517_s13 }
 0x1fa   : > { %965 = vrot.lane.b32.xlu0 %v2185_v20, %s1517_s13 }
 0x1fd   : > { %971 = vrot.lane.b32.xlu1 %v2192_v2, %s1517_s13 }
 0x1fe   : > { %969 = vrot.lane.b32.xlu0 %v2195_v21, %s1517_s13 }
 0x201   : > { %979 = vrot.lane.b32.xlu1 %v2202_v0, %s1517_s13 }
 0x202   : > { %977 = vrot.lane.b32.xlu0 %v2205_v17, %s1517_s13 }
 0x205   : > { %983 = vrot.lane.b32.xlu1 %v2212_v16, %s1517_s13 }
 0x206   : > { %981 = vrot.lane.b32.xlu0 %v2215_v57, %s1517_s13  ;;  %s1442_s13 = scalar_lea.vmem %s1441_s11, 1024 }
 0x209   : > { %991 = vrot.lane.b32.xlu1 %v2182_v62, %s1518_s14 }
 0x20a   : > { %989 = vrot.lane.b32.xlu0 %v2185_v20, %s1518_s14 }
 0x20b   : > { %v2313_v13 = vpop.permute.xlu1 %656 }
 0x20c   : > { %2983 = vst [vmem:[#allocation69_spill] sm:$0xff] %v2313_v13  ;;  %v2315_v12 = vpop.permute.xlu0 %654 }
 0x20d   : > { %2984 = vst [vmem:[#allocation70_spill] sm:$0xff] %v2315_v12  ;;  %995 = vrot.lane.b32.xlu1 %v2192_v2, %s1518_s14 }
 0x20e   : > { %993 = vrot.lane.b32.xlu0 %v2195_v21, %s1518_s14 }
 0x20f   : > { %v2321_v46 = vpop.permute.xlu1 %660 }
 0x210   : > { %2985 = vst [vmem:[#allocation71_spill] sm:$0xff] %v2321_v46  ;;  %v2323_v47 = vpop.permute.xlu0 %658 }
 0x211   : > { %2986 = vst [vmem:[#allocation72_spill] sm:$0xff] %v2323_v47  ;;  %1003 = vrot.lane.b32.xlu1 %v2202_v0, %s1518_s14 }
 0x212   : > { %1001 = vrot.lane.b32.xlu0 %v2205_v17, %s1518_s14 }
 0x213   : > { %v2329_v51 = vpop.permute.xlu1 %687 }
 0x214   : > { %v2331_v43 = vpop.permute.xlu0 %685 }
 0x215   : > { %1007 = vrot.lane.b32.xlu1 %v2212_v16, %s1518_s14 }
 0x216   : > { %1005 = vrot.lane.b32.xlu0 %v2215_v57, %s1518_s14 }
 0x217   : > { %v2337_v42 = vpop.permute.xlu1 %691 }
 0x218   : > { %v2339_v58 = vpop.permute.xlu0 %689 }
 0x219   : > { %1015 = vrot.lane.b32.xlu1 %v2182_v62, %s1519_s16 }
 0x21a   : > { %1013 = vrot.lane.b32.xlu0 %v2185_v20, %s1519_s16 }
 0x21b   : > { %v2345_v59 = vpop.permute.xlu1 %703 }
 0x21c   : > { %v2347_v50 = vpop.permute.xlu0 %701 }
 0x21d   : > { %1019 = vrot.lane.b32.xlu1 %v2192_v2, %s1519_s16 }
 0x21e   : > { %1017 = vrot.lane.b32.xlu0 %v2195_v21, %s1519_s16 }
 0x21f   : > { %v2353_v39 = vpop.permute.xlu1 %707 }
 0x220   : > { %2987 = vst [vmem:[#allocation73_spill] sm:$0xff] %v2353_v39  ;;  %v2355_v38 = vpop.permute.xlu0 %705 }
 0x221   : > { %2988 = vst [vmem:[#allocation74_spill] sm:$0xff] %v2355_v38  ;;  %1027 = vrot.lane.b32.xlu1 %v2202_v0, %s1519_s16 }
 0x222   : > { %1025 = vrot.lane.b32.xlu0 %v2205_v17, %s1519_s16 }
 0x223   : > { %v2361_v56 = vpop.permute.xlu1 %715 }
 0x224   : > { %v2363_v60 = vpop.permute.xlu0 %713 }
 0x225   : > { %1031 = vrot.lane.b32.xlu1 %v2212_v16, %s1519_s16 }
 0x226   : > { %1029 = vrot.lane.b32.xlu0 %v2215_v57, %s1519_s16 }
 0x227   : > { %v2369_v35 = vpop.permute.xlu1 %719 }
 0x228   : > { %2989 = vst [vmem:[#allocation75_spill] sm:$0xff] %v2369_v35  ;;  %v2371_v34 = vpop.permute.xlu0 %717 }
 0x229   : > { %2990 = vst [vmem:[#allocation76_spill] sm:$0xff] %v2371_v34  ;;  %1039 = vrot.lane.b32.xlu1 %v2182_v62, %s1520_s20 }
 0x22a   : > { %1037 = vrot.lane.b32.xlu0 %v2185_v20, %s1520_s20 }
 0x22b   : > { %v2377_v61 = vpop.permute.xlu1 %727 }
 0x22c   : > { %v2379_v63 = vpop.permute.xlu0 %725 }
 0x22d   : > { %1043 = vrot.lane.b32.xlu1 %v2192_v2, %s1520_s20 }
 0x22e   : > { %1041 = vrot.lane.b32.xlu0 %v2195_v21, %s1520_s20 }
 0x22f   : > { %v2385_v53 = vpop.permute.xlu1 %731 }
 0x230   : > { %2991 = vst [vmem:[#allocation77_spill] sm:$0xff] %v2385_v53  ;;  %v2387_v31 = vpop.permute.xlu0 %729 }
 0x231   : > { %2992 = vst [vmem:[#allocation78_spill] sm:$0xff] %v2387_v31  ;;  %1051 = vrot.lane.b32.xlu1 %v2202_v0, %s1520_s20 }
 0x232   : > { %1049 = vrot.lane.b32.xlu0 %v2205_v17, %s1520_s20 }
 0x233   : > { %v2393_v30 = vpop.permute.xlu1 %739 }
 0x234   : > { %2993 = vst [vmem:[#allocation79_spill] sm:$0xff] %v2393_v30  ;;  %v2395_v52 = vpop.permute.xlu0 %737 }
 0x235   : > { %2994 = vst [vmem:[#allocation80_spill] sm:$0xff] %v2395_v52  ;;  %1055 = vrot.lane.b32.xlu1 %v2212_v16, %s1520_s20 }
 0x236   : > { %1053 = vrot.lane.b32.xlu0 %v2215_v57, %s1520_s20 }
 0x237   : > { %v2401_v49 = vpop.permute.xlu1 %743 }
 0x238   : > { %2995 = vst [vmem:[#allocation81_spill] sm:$0xff] %v2401_v49  ;;  %v2403_v27 = vpop.permute.xlu0 %741 }
 0x239   : > { %2996 = vst [vmem:[#allocation82_spill] sm:$0xff] %v2403_v27  ;;  %1063 = vrot.lane.b32.xlu1 %v2182_v62, %s1521_s21 }
 0x23a   : > { %1061 = vrot.lane.b32.xlu0 %v2185_v20, %s1521_s21 }
 0x23b   : > { %v2409_v26 = vpop.permute.xlu1 %751 }
 0x23c   : > { %2997 = vst [vmem:[#allocation83_spill] sm:$0xff] %v2409_v26  ;;  %v2411_v48 = vpop.permute.xlu0 %749 }
 0x23d   : > { %2998 = vst [vmem:[#allocation84_spill] sm:$0xff] %v2411_v48  ;;  %1067 = vrot.lane.b32.xlu1 %v2192_v2, %s1521_s21 }
 0x23e   : > { %1065 = vrot.lane.b32.xlu0 %v2195_v21, %s1521_s21 }
 0x23f   : > { %v2417_v45 = vpop.permute.xlu1 %755 }
 0x240   : > { %2999 = vst [vmem:[#allocation85_spill] sm:$0xff] %v2417_v45  ;;  %v2419_v44 = vpop.permute.xlu0 %753 }
 0x241   : > { %3000 = vst [vmem:[#allocation86_spill] sm:$0xff] %v2419_v44  ;;  %1075 = vrot.lane.b32.xlu1 %v2202_v0, %s1521_s21 }
 0x242   : > { %1073 = vrot.lane.b32.xlu0 %v2205_v17, %s1521_s21 }
 0x243   : > { %v2425_v23 = vpop.permute.xlu1 %763 }
 0x244   : > { %3001 = vst [vmem:[#allocation87_spill] sm:$0xff] %v2425_v23  ;;  %v2427_v22 = vpop.permute.xlu0 %761 }
 0x245   : > { %3002 = vst [vmem:[#allocation88_spill] sm:$0xff] %v2427_v22  ;;  %1079 = vrot.lane.b32.xlu1 %v2212_v16, %s1521_s21 }
 0x246   : > { %1077 = vrot.lane.b32.xlu0 %v2215_v57, %s1521_s21 }
 0x247   : > { %v2433_v41 = vpop.permute.xlu1 %767 }
 0x248   : > { %3003 = vst [vmem:[#allocation89_spill] sm:$0xff] %v2433_v41  ;;  %v2435_v40 = vpop.permute.xlu0 %765 }
 0x249   : > { %3004 = vst [vmem:[#allocation90_spill] sm:$0xff] %v2435_v40  ;;  %1087 = vrot.lane.b32.xlu1 %v2182_v62, %s1522_s22 }
 0x24a   : > { %1085 = vrot.lane.b32.xlu0 %v2185_v20, %s1522_s22 }
 0x24b   : > { %v2441_v19 = vpop.permute.xlu1 %775 }
 0x24c   : > { %3005 = vst [vmem:[#allocation91_spill] sm:$0xff] %v2441_v19  ;;  %v2443_v18 = vpop.permute.xlu0 %773 }
 0x24d   : > { %3006 = vst [vmem:[#allocation92_spill] sm:$0xff] %v2443_v18  ;;  %1091 = vrot.lane.b32.xlu1 %v2192_v2, %s1522_s22 }
 0x24e   : > { %1089 = vrot.lane.b32.xlu0 %v2195_v21, %s1522_s22 }
 0x24f   : > { %v2449_v4 = vpop.permute.xlu1 %779 }
 0x250   : > { %3007 = vst [vmem:[#allocation93_spill] sm:$0xff] %v2449_v4  ;;  %v2451_v5 = vpop.permute.xlu0 %777 }
 0x251   : > { %3008 = vst [vmem:[#allocation94_spill] sm:$0xff] %v2451_v5  ;;  %1099 = vrot.lane.b32.xlu1 %v2202_v0, %s1522_s22 }
 0x252   : > { %1097 = vrot.lane.b32.xlu0 %v2205_v17, %s1522_s22 }
 0x253   : > { %v932_v37 = vpop.permute.xlu1 %931 }
 0x254   : > { %v930_v15 = vpop.permute.xlu0 %929 }
 0x255   : > { %1103 = vrot.lane.b32.xlu1 %v2212_v16, %s1522_s22 }
 0x256   : > { %1101 = vrot.lane.b32.xlu0 %v2215_v57, %s1522_s22 }
 0x257   : > { %v936_v14 = vpop.permute.xlu1 %935 }
 0x258   : > { %v934_v36 = vpop.permute.xlu0 %933 }
 0x259   : > { %787 = vrot.lane.b32.xlu1 %v2182_v62, %s1511_s29 }
 0x25a   : > { %785 = vrot.lane.b32.xlu0 %v2185_v20, %s1511_s29 }
 0x25b   : > { %v944_v33 = vpop.permute.xlu1 %943 }
 0x25c   : > { %v942_v32 = vpop.permute.xlu0 %941  ;;  %v1110_v6 = vsel %vm335_vm0, %v932_v37, %v944_v33 }
 0x25d   : > { %v1109_v7 = vsel %vm335_vm0, %v930_v15, %v942_v32  ;;  %791 = vrot.lane.b32.xlu1 %v2192_v2, %s1511_s29 }
 0x25e   : > { %789 = vrot.lane.b32.xlu0 %v2195_v21, %s1511_s29 }
 0x25f   : > { %v948_v28 = vpop.permute.xlu1 %947 }
 0x260   : > { %v946_v29 = vpop.permute.xlu0 %945  ;;  %v1112_v3 = vsel %vm335_vm0, %v936_v14, %v948_v28 }
 0x261   : > { %v1111_v24 = vsel %vm335_vm0, %v934_v36, %v946_v29  ;;  %799 = vrot.lane.b32.xlu1 %v2202_v0, %s1511_s29 }
 0x262   : > { %797 = vrot.lane.b32.xlu0 %v2205_v17, %s1511_s29 }
 0x263   : > { %v956_v1 = vpop.permute.xlu1 %955 }
 0x264   : > { %v954_v25 = vpop.permute.xlu0 %953  ;;  %v1114_v10 = vsel %vm340_vm1, %v1110_v6, %v956_v1 }
 0x265   : > { %v1113_v54 = vsel %vm340_vm1, %v1109_v7, %v954_v25  ;;  %803 = vrot.lane.b32.xlu1 %v2212_v16, %s1511_s29 }
 0x266   : > { %801 = vrot.lane.b32.xlu0 %v2215_v57, %s1511_s29  ;;  %s2864_s29 = scalar_lea.hbm %s2914_s1, %s1334_s27 }
 0x267   : > { %v960_v8 = vpop.permute.xlu1 %959 }
 0x268   : > { %v958_v55 = vpop.permute.xlu0 %957  ;;  %v1116_v37 = vsel %vm340_vm1, %v1112_v3, %v960_v8 }
 0x269   : > { %v1115_v15 = vsel %vm340_vm1, %v1111_v24, %v958_v55  ;;  %811 = vrot.lane.b32.xlu1 %v2182_v62, %s1512_s2 }
 0x26a   : > { %809 = vrot.lane.b32.xlu0 %v2185_v20, %s1512_s2 }
 0x26b   : > { %v968_v14 = vpop.permute.xlu1 %967 }
 0x26c   : > { %v966_v36 = vpop.permute.xlu0 %965  ;;  %v1118_v33 = vsel %vm345_vm2, %v1114_v10, %v968_v14 }
 0x26d   : > { %v1117_v32 = vsel %vm345_vm2, %v1113_v54, %v966_v36  ;;  %815 = vrot.lane.b32.xlu1 %v2192_v2, %s1512_s2 }
 0x26e   : > { %813 = vrot.lane.b32.xlu0 %v2195_v21, %s1512_s2 }
 0x26f   : > { %v972_v6 = vpop.permute.xlu1 %971 }
 0x270   : > { %v970_v7 = vpop.permute.xlu0 %969  ;;  %v1120_v28 = vsel %vm345_vm2, %v1116_v37, %v972_v6 }
 0x271   : > { %v1119_v29 = vsel %vm345_vm2, %v1115_v15, %v970_v7  ;;  %823 = vrot.lane.b32.xlu1 %v2202_v0, %s1512_s2 }
 0x272   : > { %821 = vrot.lane.b32.xlu0 %v2205_v17, %s1512_s2 }
 0x273   : > { %v980_v3 = vpop.permute.xlu1 %979 }
 0x274   : > { %v978_v24 = vpop.permute.xlu0 %977  ;;  %v1122_v1 = vsel %vm350_vm3, %v1118_v33, %v980_v3 }
 0x275   : > { %v1121_v25 = vsel %vm350_vm3, %v1117_v32, %v978_v24  ;;  %827 = vrot.lane.b32.xlu1 %v2212_v16, %s1512_s2 }
 0x276   : > { %825 = vrot.lane.b32.xlu0 %v2215_v57, %s1512_s2  ;;  %s1216_s2 = scalar_lea.sflag [#allocation4], %s1641_s23 }
 0x277   : > { %v984_v10 = vpop.permute.xlu1 %983 }
 0x278   : > { %v982_v54 = vpop.permute.xlu0 %981  ;;  %v1124_v8 = vsel %vm350_vm3, %v1120_v28, %v984_v10 }
 0x279   : > { %v1123_v55 = vsel %vm350_vm3, %v1119_v29, %v982_v54  ;;  %835 = vrot.lane.b32.xlu1 %v2182_v62, %s1513_s3 }
 0x27a   : > { %833 = vrot.lane.b32.xlu0 %v2185_v20, %s1513_s3 }
 0x27b   : > { %v992_v37 = vpop.permute.xlu1 %991 }
 0x27c   : > { %v990_v15 = vpop.permute.xlu0 %989  ;;  %v1126_v22 = vsel %vm355_vm4, %v1122_v1, %v992_v37 }
 0x27d   : > { %839 = vrot.lane.b32.xlu1 %v2192_v2, %s1513_s3  ;;  %v1125_v23 = vsel %vm355_vm4, %v1121_v25, %v990_v15 }
 0x27e   : > { %837 = vrot.lane.b32.xlu0 %v2195_v21, %s1513_s3 }
 0x27f   : > { %v996_v14 = vpop.permute.xlu1 %995 }
 0x280   : > { %v994_v36 = vpop.permute.xlu0 %993 }
 0x281   : > { %847 = vrot.lane.b32.xlu1 %v2202_v0, %s1513_s3  ;;  %v1127_v1 = vsel %vm355_vm4, %v1123_v55, %v994_v36 }
 0x282   : > { %845 = vrot.lane.b32.xlu0 %v2205_v17, %s1513_s3 }
 0x283   : > { %v1004_v33 = vpop.permute.xlu1 %1003 }
 0x284   : > { %v1002_v32 = vpop.permute.xlu0 %1001  ;;  %v1130_v48 = vsel %vm360_vm5, %v1126_v22, %v1004_v33 }
 0x285   : > { %851 = vrot.lane.b32.xlu1 %v2212_v16, %s1513_s3  ;;  %v1129_v26 = vsel %vm360_vm5, %v1125_v23, %v1002_v32 }
 0x286   : > { %849 = vrot.lane.b32.xlu0 %v2215_v57, %s1513_s3  ;;  %v1128_v57 = vsel %vm355_vm4, %v1124_v8, %v996_v14 }
 0x287   : > { %v1008_v6 = vpop.permute.xlu1 %1007 }
 0x288   : > { %v1006_v7 = vpop.permute.xlu0 %1005  ;;  %v1132_v23 = vsel %vm360_vm5, %v1128_v57, %v1008_v6 }
 0x289   : > { %859 = vrot.lane.b32.xlu1 %v2182_v62, %s1514_s4 }
 0x28a   : > { %857 = vrot.lane.b32.xlu0 %v2185_v20, %s1514_s4 }
 0x28b   : > { %v1016_v28 = vpop.permute.xlu1 %1015 }
 0x28c   : > { %v1014_v29 = vpop.permute.xlu0 %1013  ;;  %v1134_v38 = vsel %vm365_vm6, %v1130_v48, %v1016_v28  ;;  %v1131_v48 = vsel %vm360_vm5, %v1127_v1, %v1006_v7 }
 0x28d   : > { %863 = vrot.lane.b32.xlu1 %v2192_v2, %s1514_s4  ;;  %v1133_v39 = vsel %vm365_vm6, %v1129_v26, %v1014_v29 }
 0x28e   : > { %861 = vrot.lane.b32.xlu0 %v2195_v21, %s1514_s4 }
 0x28f   : > { %v1020_v3 = vpop.permute.xlu1 %1019 }
 0x290   : > { %v1018_v24 = vpop.permute.xlu0 %1017 }
 0x291   : > { %v1135_v8 = vsel %vm365_vm6, %v1131_v48, %v1018_v24 }
 0x293   : > { %v1028_v10 = vpop.permute.xlu1 %1027 }
 0x294   : > { %v1026_v54 = vpop.permute.xlu0 %1025  ;;  %v1138_v52 = vsel %vm370_vm7, %v1134_v38, %v1028_v10 }
 0x295   : > { %v1137_v30 = vsel %vm370_vm7, %v1133_v39, %v1026_v54  ;;  %v1136_v39 = vsel %vm365_vm6, %v1132_v23, %v1020_v3 }
 0x297   : > { %v1032_v47 = vpop.permute.xlu1 %1031 }
 0x298   : > { %v1030_v46 = vpop.permute.xlu0 %1029 }
 0x29b   : > { %v1040_v12 = vpop.permute.xlu1 %1039 }
 0x29c   : > { %v1038_v13 = vpop.permute.xlu0 %1037  ;;  %v1142_v25 = vsel %vm375_vm8, %v1138_v52, %v1040_v12 }
 0x29d   : > { %v1141_v37 = vsel %vm375_vm8, %v1137_v30, %v1038_v13  ;;  %v1140_v13 = vsel %vm370_vm7, %v1136_v39, %v1032_v47  ;;  %v1139_v30 = vsel %vm370_vm7, %v1135_v8, %v1030_v46 }
 0x29f   : > { %v1044_v11 = vpop.permute.xlu1 %1043 }
 0x2a0   : > { %v1042_v9 = vpop.permute.xlu0 %1041 }
 0x2a3   : > { %v1052_v5 = vpop.permute.xlu1 %1051 }
 0x2a4   : > { %v1050_v4 = vpop.permute.xlu0 %1049  ;;  %v1146_v26 = vsel %vm380_vm9, %v1142_v25, %v1052_v5  ;;  %v1144_v5 = vsel %vm375_vm8, %v1140_v13, %v1044_v11 }
 0x2a5   : > { %v1145_v38 = vsel %vm380_vm9, %v1141_v37, %v1050_v4  ;;  %v1143_v4 = vsel %vm375_vm8, %v1139_v30, %v1042_v9  ;;  %v870_v30 = vsel %vm335_vm0, %v2202_v0, %v2329_v51  ;;  %v3009_v51 = vld [vmem:[#allocation68_spill] sm:$0xff] }
 0x2a7   : > { %v1056_v40 = vpop.permute.xlu1 %1055 }
 0x2a8   : > { %v1054_v41 = vpop.permute.xlu0 %1053 }
 0x2a9   : > { %v1147_v47 = vsel %vm380_vm9, %v1143_v4, %v1054_v41 }
 0x2ab   : > { %v1064_v44 = vpop.permute.xlu1 %1063 }
 0x2ac   : > { %v1062_v45 = vpop.permute.xlu0 %1061  ;;  %v1150_v55 = vsel %vm385_vm10, %v1146_v26, %v1064_v44 }
 0x2ad   : > { %v1149_v12 = vsel %vm385_vm10, %v1145_v38, %v1062_v45  ;;  %v1148_v45 = vsel %vm380_vm9, %v1144_v5, %v1056_v40 }
 0x2af   : > { %v1068_v27 = vpop.permute.xlu1 %1067 }
 0x2b0   : > { %v1066_v49 = vpop.permute.xlu0 %1065 }
 0x2b1   : > { %v1151_v11 = vsel %vm385_vm10, %v1147_v47, %v1066_v49 }
 0x2b3   : > { %v1076_v18 = vpop.permute.xlu1 %1075 }
 0x2b4   : > { %v1074_v19 = vpop.permute.xlu0 %1073  ;;  %v1154_v57 = vsel %vm390_vm11, %v1150_v55, %v1076_v18 }
 0x2b5   : > { %v1153_v52 = vsel %vm390_vm11, %v1149_v12, %v1074_v19  ;;  %v1152_v19 = vsel %vm385_vm10, %v1148_v45, %v1068_v27 }
 0x2b7   : > { %v1080_v31 = vpop.permute.xlu1 %1079 }
 0x2b8   : > { %v1078_v53 = vpop.permute.xlu0 %1077 }
 0x2b9   : > { %v1155_v40 = vsel %vm390_vm11, %v1151_v11, %v1078_v53  ;;  %v3017_v11 = vld [vmem:[#allocation76_spill] sm:$0xff] }
 0x2bb   : > { %v1088_v34 = vpop.permute.xlu1 %1087 }
 0x2bc   : > { %v1086_v35 = vpop.permute.xlu0 %1085  ;;  %v1158_v14 = vsel %vm395_vm12, %v1154_v57, %v1088_v34  ;;  %v1156_v34 = vsel %vm390_vm11, %v1152_v19, %v1080_v31  ;;  %v869_v57 = vsel %vm335_vm0, %v2205_v17, %v2331_v43  ;;  %v872_v17 = vsel %vm335_vm0, %v2212_v16, %v2337_v42  ;;  %v3015_v42 = vld [vmem:[#allocation84_spill] sm:$0xff] }
 0x2bd   : > { %v1157_v36 = vsel %vm395_vm12, %v1153_v52, %v1086_v35  ;;  %v874_v52 = vsel %vm340_vm1, %v870_v30, %v2345_v59  ;;  %v873_v5 = vsel %vm340_vm1, %v869_v57, %v2347_v50  ;;  %v871_v43 = vsel %vm335_vm0, %v3009_v51, %v2339_v58  ;;  %v3010_v59 = vld [vmem:[#allocation79_spill] sm:$0xff]  ;;  %v3024_v57 = vld [vmem:[#allocation81_spill] sm:$0xff]  ;;  %v3027_v51 = vld [vmem:[#allocation86_spill] sm:$0xff] }
 0x2be   : > { %v878_v4 = vsel %vm345_vm2, %v874_v52, %v2361_v56  ;;  %v3011_v56 = vld [vmem:[#allocation80_spill] sm:$0xff] }
 0x2bf   : > { %v1092_v15 = vpop.permute.xlu1 %1091 }
 0x2c0   : > { %v1090_v22 = vpop.permute.xlu0 %1089  ;;  %v1160_v41 = vsel %vm395_vm12, %v1156_v34, %v1092_v15 }
 0x2c1   : > { %v1159_v27 = vsel %vm395_vm12, %v1155_v40, %v1090_v22  ;;  %v3019_v40 = vld [vmem:[#allocation88_spill] sm:$0xff] }
 0x2c3   : > { %v1100_v33 = vpop.permute.xlu1 %1099 }
 0x2c4   : > { %v1098_v44 = vpop.permute.xlu0 %1097  ;;  %v1162_v46 = vsel %vm400_vm13, %v1158_v14, %v1100_v33  ;;  %v877_v14 = vsel %vm345_vm2, %v873_v5, %v2363_v60  ;;  %v3025_v5 = vld [vmem:[#allocation82_spill] sm:$0xff] }
 0x2c5   : > { %v1161_v18 = vsel %vm400_vm13, %v1157_v36, %v1098_v44  ;;  %v1166_v9 = vsel %vm405_vm14, %v1162_v46, %v2182_v62  ;;  %v882_v36 = vsel %vm350_vm3, %v878_v4, %v2377_v61  ;;  %v881_v0 = vsel %vm350_vm3, %v877_v14, %v2379_v63  ;;  %v3012_v61 = vld [vmem:[#allocation73_spill] sm:$0xff]  ;;  %v3013_v63 = vld [vmem:[#allocation74_spill] sm:$0xff]  ;;  %v3014_v46 = vld [vmem:[#allocation83_spill] sm:$0xff] }
 0x2c6   : > { %v1165_v35 = vsel %vm405_vm14, %v1161_v18, %v2185_v20  ;;  %1175 = vrot.lane.b32.xlu1 %v1166_v9, %s1523_s24  ;;  %v886_v50 = vsel %vm355_vm4, %v882_v36, %v3010_v59  ;;  %v885_v60 = vsel %vm355_vm4, %v881_v0, %v3011_v56  ;;  %v876_v45 = vsel %vm340_vm1, %v872_v17, %v3012_v61  ;;  %v3016_v18 = vld [vmem:[#allocation75_spill] sm:$0xff]  ;;  %v3026_v0 = vld [vmem:[#allocation85_spill] sm:$0xff]  ;;  %v3029_v61 = vld [vmem:[#allocation90_spill] sm:$0xff] }
 0x2c7   : > { %1173 = vrot.lane.b32.xlu0 %v1165_v35, %s1523_s24  ;;  %v1104_v32 = vpop.permute.xlu1 %1103  ;;  %v875_v47 = vsel %vm340_vm1, %v871_v43, %v3013_v63  ;;  %v890_v16 = vsel %vm360_vm5, %v886_v50, %v3014_v46  ;;  %v889_v58 = vsel %vm360_vm5, %v885_v60, %v3015_v42  ;;  %v880_v19 = vsel %vm345_vm2, %v876_v45, %v3016_v18  ;;  %v3018_v35 = vld [vmem:[#allocation87_spill] sm:$0xff]  ;;  %v3028_v56 = vld [vmem:[#allocation89_spill] sm:$0xff]  ;;  %v3031_v42 = vld [vmem:[#allocation94_spill] sm:$0xff] }
 0x2c8   : > { %v1102_v49 = vpop.permute.xlu0 %1101  ;;  %v1164_v6 = vsel %vm400_vm13, %v1160_v41, %v1104_v32  ;;  %v879_v9 = vsel %vm345_vm2, %v875_v47, %v3017_v11  ;;  %v894_v34 = vsel %vm365_vm6, %v890_v16, %v3018_v35  ;;  %v893_v41 = vsel %vm365_vm6, %v889_v58, %v3019_v40  ;;  %v3030_v46 = vld [vmem:[#allocation93_spill] sm:$0xff] }
 0x2c9   : > { %v1163_v62 = vsel %vm400_vm13, %v1159_v27, %v1102_v49  ;;  %v1168_v20 = vsel %vm405_vm14, %v1164_v6, %v2192_v2  ;;  %v3020_v27 = vld [vmem:[#allocation77_spill] sm:$0xff]  ;;  %v3021_v49 = vld [vmem:[#allocation78_spill] sm:$0xff] }
 0x2ca   : > { %v1167_v53 = vsel %vm405_vm14, %v1163_v62, %v2195_v21  ;;  %1179 = vrot.lane.b32.xlu1 %v1168_v20, %s1523_s24  ;;  %v884_v32 = vsel %vm350_vm3, %v880_v19, %v3020_v27  ;;  %v883_v6 = vsel %vm350_vm3, %v879_v9, %v3021_v49  ;;  %v3022_v62 = vld [vmem:[#allocation91_spill] sm:$0xff]  ;;  %v1402_v27 = vld [vmem:[%s1645_s30] sm:$0xff]  ;;  %v1403_v49 = vld [vmem:[%s1645_s30 + $0x8] sm:$0xff] }
 0x2cb   : > { %1177 = vrot.lane.b32.xlu0 %v1167_v53, %s1523_s24  ;;  %v788_v31 = vpop.permute.xlu1 %787  ;;  %v898_v20 = vsel %vm370_vm7, %v894_v34, %v3022_v62  ;;  %v3023_v53 = vld [vmem:[#allocation92_spill] sm:$0xff]  ;;  %v888_v52 = vsel %vm355_vm4, %v884_v32, %v3024_v57  ;;  %v887_v4 = vsel %vm355_vm4, %v883_v6, %v3025_v5  ;;  %v3032_v32 = vld [vmem:[#allocation9_spill] sm:$0xff] }
 0x2cc   : > { %v786_v7 = vpop.permute.xlu0 %785  ;;  %v897_v30 = vsel %vm370_vm7, %v893_v41, %v3023_v53  ;;  %v902_v14 = vsel %vm375_vm8, %v898_v20, %v788_v31  ;;  %v892_v17 = vsel %vm360_vm5, %v888_v52, %v3026_v0  ;;  %v891_v43 = vsel %vm360_vm5, %v887_v4, %v3027_v51  ;;  %v3034_v62 = vld [vmem:[#allocation12_spill] sm:$0xff]  ;;  %v3035_v53 = vld [vmem:[#allocation13_spill] sm:$0xff]  ;;  %v3039_v51 = vld [vmem:[#allocation10_spill] sm:$0xff] }
 0x2cd   : > { %v901_v36 = vsel %vm375_vm8, %v897_v30, %v786_v7  ;;  %v896_v60 = vsel %vm365_vm6, %v892_v17, %v3028_v56  ;;  %v895_v45 = vsel %vm365_vm6, %v891_v43, %v3029_v61  ;;  %v3036_v57 = vld [vmem:[#allocation16_spill] sm:$0xff]  ;;  %v3037_v5 = vld [vmem:[#allocation17_spill] sm:$0xff]  ;;  %v3042_v61 = vld [vmem:[#allocation14_spill] sm:$0xff] }
 0x2ce   : > { %v900_v16 = vsel %vm370_vm7, %v896_v60, %v3030_v46  ;;  %v1405_v17 = vld [vmem:[%s1645_s30 + $0x48] sm:$0xff] }
 0x2cf   : > { %v2585_v28 = vpop.permute.xlu1 %791  ;;  %v339_v43 = vsel %vm335_vm0, %v1405_v17, %v3039_v51  ;;  %v3041_v56 = vld [vmem:[#allocation21_spill] sm:$0xff]  ;;  %v3071_v51 = vld [vmem:[#allocation43_spill] sm:$0xff] }
 0x2d0   : > { %v2587_v29 = vpop.permute.xlu0 %789  ;;  %v904_v18 = vsel %vm375_vm8, %v900_v16, %v2585_v28  ;;  %v3045_v46 = vld [vmem:[#allocation25_spill] sm:$0xff] }
 0x2d3   : > { %v800_v3 = vpop.permute.xlu1 %799 }
 0x2d4   : > { %v798_v24 = vpop.permute.xlu0 %797  ;;  %v906_v59 = vsel %vm380_vm9, %v902_v14, %v800_v3  ;;  %v899_v3 = vsel %vm370_vm7, %v895_v45, %v3031_v42  ;;  %v1404_v14 = vld [vmem:[%s1645_s30 + $0x40] sm:$0xff]  ;;  %v344_v45 = vsel %vm340_vm1, %v339_v43, %v3042_v61  ;;  %v3046_v42 = vld [vmem:[#allocation18_spill] sm:$0xff]  ;;  %s1312_s30 = sshll.u32 %s1641_s23, 5 }
 0x2d5   : > { %v905_v50 = vsel %vm380_vm9, %v901_v36, %v798_v24  ;;  %v3038_v36 = vld [vmem:[#allocation8_spill] sm:$0xff]  ;;  %v3074_v61 = vld [vmem:[#allocation46_spill] sm:$0xff]  ;;  %s135_s25 = scalar_lea.vmem [#allocation5], %s1312_s30 }
 0x2d6   : > { %v338_v0 = vsel %vm335_vm0, %v1404_v14, %v3038_v36  ;;  %v3069_v14 = vld [vmem:[#allocation49_spill] sm:$0xff]  ;;  %s1230_s17 = sshll.u32 %s135_s25, 4  ;;  %s2855_s17 = int_to_ptr.vmem [resolvable:$true] %s1230_s17 }
 0x2d7   : > { %v2589_v10 = vpop.permute.xlu1 %803  ;;  %s1436_s3 = scalar_lea.vmem %s2855_s17, 512  ;;  %p1443_p8 = scmp.lt.s32.totalorder %s2855_s17, %s1441_s11 }
 0x2d8   : > { %v2591_v54 = vpop.permute.xlu0 %801  ;;  %v908_v11 = vsel %vm380_vm9, %v904_v18, %v2589_v10  ;;  %v3048_v18 = vld [vmem:[#allocation28_spill] sm:$0xff]  ;;  %p1437_p6 = scmp.ne.s32.totalorder %s2855_s17, %s1436_s3  ;;  %p1444_p10 = scmp.lt.s32.totalorder %s1442_s13, %s1436_s3 }
 0x2da   : > { %p1438_p12 = pnand %p1437_p6, %p3096_p11  ;;  %p1445_p0 = por %p1444_p10, %p1443_p8 }
 0x2db   : > { %v812_v2 = vpop.permute.xlu1 %811 }
 0x2dc   : > { %v810_v1 = vpop.permute.xlu0 %809  ;;  %v910_v31 = vsel %vm385_vm10, %v906_v59, %v812_v2  ;;  %v903_v2 = vsel %vm375_vm8, %v899_v3, %v2587_v29  ;;  %v3040_v59 = vld [vmem:[#allocation20_spill] sm:$0xff]  ;;  %v349_v3 = vsel %vm345_vm2, %v344_v45, %v3046_v42  ;;  %v3078_v42 = vld [vmem:[#allocation50_spill] sm:$0xff]  ;;  %p1439_p13 = pneg %p1438_p12 }
 0x2dd   : > { %v909_v7 = vsel %vm385_vm10, %v905_v50, %v810_v1  ;;  %v907_v9 = vsel %vm380_vm9, %v903_v2, %v2591_v54 }
 0x2de   : > { %p1446_p2 = pnand %p1445_p0, %p1439_p13 }
 0x2df   : > { %v2593_v25 = vpop.permute.xlu1 %815 }
 0x2e0   : > { %v2595_v21 = vpop.permute.xlu0 %813  ;;  %v912_v28 = vsel %vm385_vm10, %v908_v11, %v2593_v25  ;;  %v3050_v11 = vld [vmem:[#allocation22_spill] sm:$0xff] }
 0x2e1   : > { %v911_v29 = vsel %vm385_vm10, %v907_v9, %v2595_v21  ;;  %v354_v9 = vsel %vm350_vm3, %v349_v3, %v3050_v11  ;;  %v3082_v11 = vld [vmem:[#allocation64_spill] sm:$0xff] }
 0x2e3   : > { %v824_v37 = vpop.permute.xlu1 %823 }
 0x2e4   : > { %v822_v15 = vpop.permute.xlu0 %821  ;;  %v914_v24 = vsel %vm390_vm11, %v910_v31, %v824_v37  ;;  %v3043_v31 = vld [vmem:[#allocation15_spill] sm:$0xff] }
 0x2e5   : > { %v913_v58 = vsel %vm390_vm11, %v909_v7, %v822_v15  ;;  %v343_v7 = vsel %vm340_vm1, %v338_v0, %v3043_v31  ;;  %v3070_v0 = vld [vmem:[#allocation42_spill] sm:$0xff]  ;;  %v3075_v31 = vld [vmem:[#allocation47_spill] sm:$0xff] }
 0x2e7   : > { %v2597_v22 = vpop.permute.xlu1 %827 }
 0x2e8   : > { %v2599_v23 = vpop.permute.xlu0 %825  ;;  %v916_v10 = vsel %vm390_vm11, %v912_v28, %v2597_v22  ;;  %v3052_v28 = vld [vmem:[#allocation32_spill] sm:$0xff] }
 0x2e9   : > { %v915_v54 = vsel %vm390_vm11, %v911_v29, %v2599_v23 }
 0x2eb   : > { %v836_v48 = vpop.permute.xlu1 %835 }
 0x2ec   : > { %v834_v26 = vpop.permute.xlu0 %833  ;;  %v918_v1 = vsel %vm395_vm12, %v914_v24, %v836_v48  ;;  %v3047_v24 = vld [vmem:[#allocation19_spill] sm:$0xff] }
 0x2ed   : > { %v917_v19 = vsel %vm395_vm12, %v913_v58, %v834_v26  ;;  %v348_v58 = vsel %vm345_vm2, %v343_v7, %v3047_v24  ;;  %v3079_v24 = vld [vmem:[#allocation60_spill] sm:$0xff] }
 0x2ef   : > { %v2601_v38 = vpop.permute.xlu1 %839 }
 0x2f0   : > { %v2603_v39 = vpop.permute.xlu0 %837  ;;  %v920_v25 = vsel %vm395_vm12, %v916_v10, %v2601_v38  ;;  %v3055_v10 = vld [vmem:[#allocation27_spill] sm:$0xff] }
 0x2f1   : > { %v919_v21 = vsel %vm395_vm12, %v915_v54, %v2603_v39 }
 0x2f3   : > { %v848_v8 = vpop.permute.xlu1 %847 }
 0x2f4   : > { %v846_v55 = vpop.permute.xlu0 %845  ;;  %v922_v37 = vsel %vm400_vm13, %v918_v1, %v848_v8  ;;  %v3049_v1 = vld [vmem:[#allocation29_spill] sm:$0xff] }
 0x2f5   : > { %v921_v15 = vsel %vm400_vm13, %v917_v19, %v846_v55 }
 0x2f7   : > { %v2605_v12 = vpop.permute.xlu1 %851 }
 0x2f8   : > { %v2607_v13 = vpop.permute.xlu0 %849  ;;  %v924_v22 = vsel %vm400_vm13, %v920_v25, %v2605_v12  ;;  %v336_v12 = vsel %vm335_vm0, %v1402_v27, %v3032_v32  ;;  %v3057_v25 = vld [vmem:[#allocation37_spill] sm:$0xff]  ;;  %v3062_v27 = vld [vmem:[#allocation34_spill] sm:$0xff] }
 0x2f9   : > { %v923_v23 = vsel %vm400_vm13, %v919_v21, %v2607_v13  ;;  %v3033_v13 = vld [vmem:[#allocation11_spill] sm:$0xff]  ;;  %v341_v30 = vsel %vm340_vm1, %v336_v12, %v3035_v53  ;;  %v3066_v53 = vld [vmem:[#allocation38_spill] sm:$0xff] }
 0x2fa   : > { %v337_v6 = vsel %vm335_vm0, %v1403_v49, %v3033_v13  ;;  %v346_v4 = vsel %vm345_vm2, %v341_v30, %v3037_v5  ;;  %v3063_v12 = vld [vmem:[#allocation35_spill] sm:$0xff]  ;;  %v3064_v13 = vld [vmem:[#allocation44_spill] sm:$0xff]  ;;  %vm1205_vm0 = vcmask 261120  }
 0x2fb   : > { %v860_v33 = vpop.permute.xlu1 %859  ;;  %v342_v20 = vsel %vm340_vm1, %v337_v6, %v3034_v62  ;;  %v351_v60 = vsel %vm350_vm3, %v346_v4, %v3041_v56  ;;  %v3065_v62 = vld [vmem:[#allocation45_spill] sm:$0xff]  ;;  %v3068_v5 = vld [vmem:[#allocation48_spill] sm:$0xff]  ;;  %vm1210_vm1 = vcmask 523264  }
 0x2fc   : > { %v858_v44 = vpop.permute.xlu0 %857  ;;  %v926_v48 = vsel %vm405_vm14, %v922_v37, %v860_v33  ;;  %v347_v52 = vsel %vm345_vm2, %v342_v20, %v3036_v57  ;;  %v356_v16 = vsel %vm355_vm4, %v351_v60, %v3045_v46  ;;  %v3051_v37 = vld [vmem:[#allocation23_spill] sm:$0xff]  ;;  %v3073_v56 = vld [vmem:[#allocation53_spill] sm:$0xff] }
 0x2fd   : > { %v925_v26 = vsel %vm405_vm14, %v921_v15, %v858_v44  ;;  %v352_v50 = vsel %vm350_vm3, %v347_v52, %v3040_v59  ;;  %v361_v19 = vsel %vm360_vm5, %v356_v16, %v3049_v1  ;;  %v353_v15 = vsel %vm350_vm3, %v348_v58, %v3051_v37  ;;  %v3067_v57 = vld [vmem:[#allocation39_spill] sm:$0xff]  ;;  %v3072_v59 = vld [vmem:[#allocation52_spill] sm:$0xff]  ;;  %v3077_v46 = vld [vmem:[#allocation57_spill] sm:$0xff] }
 0x2fe   : > { %v358_v54 = vsel %vm355_vm4, %v353_v15, %v3055_v10  ;;  %v3081_v1 = vld [vmem:[#allocation51_spill] sm:$0xff]  ;;  %v3083_v37 = vld [vmem:[#allocation65_spill] sm:$0xff]  ;;  %v3087_v10 = vld [vmem:[#allocation70_spill] sm:$0xff] }
 0x2ff   : > { %v864_v63 = vpop.permute.xlu1 %863 }
 0x300   : > { %v862_v47 = vpop.permute.xlu0 %861  ;;  %v928_v33 = vsel %vm405_vm14, %v924_v22, %v864_v63  ;;  %v3044_v63 = vld [vmem:[#allocation24_spill] sm:$0xff]  ;;  %v3058_v22 = vld [vmem:[#allocation30_spill] sm:$0xff] }
 0x301   : > { %v927_v44 = vsel %vm405_vm14, %v923_v23, %v862_v47  ;;  %v357_v47 = vsel %vm355_vm4, %v352_v50, %v3044_v63  ;;  %v3076_v63 = vld [vmem:[#allocation56_spill] sm:$0xff] }
 0x302   : > { %v362_v2 = vsel %vm360_vm5, %v357_v47, %v3048_v18  ;;  %v3080_v18 = vld [vmem:[#allocation61_spill] sm:$0xff] }
 0x303   : > { %v367_v29 = vsel %vm365_vm6, %v362_v2, %v3052_v28  ;;  %v3084_v28 = vld [vmem:[#allocation54_spill] sm:$0xff] }
 0x338   : > { %v1176_v35 = vpop.permute.xlu1 %1175 }
 0x339   : > { %v1174_v34 = vpop.permute.xlu0 %1173  ;;  %v1186_v8 = vsel %vm666_vm15, %v926_v48, %v1176_v35  ;;  %v3053_v48 = vld [vmem:[#allocation33_spill] sm:$0xff]  ;;  %v3054_v35 = vld [vmem:[#allocation26_spill] sm:$0xff] }
 0x33a   : > { %v1185_v55 = vsel %vm666_vm15, %v925_v26, %v1174_v34  ;;  %1195 = vrot.lane.b32.xlu1 %v1186_v8, %s1524_s26  ;;  %v366_v26 = vsel %vm365_vm6, %v361_v19, %v3053_v48  ;;  %v359_v34 = vsel %vm355_vm4, %v354_v9, %v3054_v35  ;;  %v3056_v8 = vld [vmem:[#allocation36_spill] sm:$0xff]  ;;  %v3085_v48 = vld [vmem:[#allocation55_spill] sm:$0xff]  ;;  %v3086_v35 = vld [vmem:[#allocation69_spill] sm:$0xff] }
 0x33b   : > { %1193 = vrot.lane.b32.xlu0 %v1185_v55, %s1524_s26  ;;  %v372_v55 = vsel %vm370_vm7, %v367_v29, %v3056_v8  ;;  %v371_v21 = vsel %vm370_vm7, %v366_v26, %v3057_v25  ;;  %v364_v23 = vsel %vm360_vm5, %v359_v34, %v3058_v22  ;;  %v3088_v25 = vld [vmem:[#allocation58_spill] sm:$0xff]  ;;  %v3089_v22 = vld [vmem:[#allocation59_spill] sm:$0xff] }
 0x33c   : > { %v1180_v40 = vpop.permute.xlu1 %1179  ;;  %v369_v32 = vsel %vm365_vm6, %v364_v23, %v3062_v27  ;;  %v3092_v27 = vld [vmem:[#allocation66_spill] sm:$0xff] }
 0x33d   : > { %v1178_v38 = vpop.permute.xlu0 %1177  ;;  %v1188_v39 = vsel %vm666_vm15, %v928_v33, %v1180_v40  ;;  %v3059_v33 = vld [vmem:[#allocation31_spill] sm:$0xff]  ;;  %v3060_v40 = vld [vmem:[#allocation40_spill] sm:$0xff]  ;;  %v374_v30 = vsel %vm370_vm7, %v369_v32, %v3066_v53 }
 0x33e   : > { %v1187_v41 = vsel %vm666_vm15, %v927_v44, %v1178_v38  ;;  %1199 = vrot.lane.b32.xlu1 %v1188_v39, %s1524_s26  ;;  %v363_v44 = vsel %vm360_vm5, %v358_v54, %v3059_v33  ;;  %v377_v38 = vsel %vm375_vm8, %v372_v55, %v3060_v40  ;;  %v3061_v39 = vld [vmem:[#allocation41_spill] sm:$0xff]  ;;  %v379_v17 = vsel %vm375_vm8, %v374_v30, %v3070_v0  ;;  %v3090_v40 = vld [vmem:[#allocation62_spill] sm:$0xff] }
 0x33f   : > { %1197 = vrot.lane.b32.xlu0 %v1187_v41, %s1524_s26  ;;  %v376_v41 = vsel %vm375_vm8, %v371_v21, %v3061_v39  ;;  %v368_v49 = vsel %vm365_vm6, %v363_v44, %v3063_v12  ;;  %v382_v6 = vsel %vm380_vm9, %v377_v38, %v3064_v13  ;;  %v384_v45 = vsel %vm380_vm9, %v379_v17, %v3074_v61  ;;  %v3091_v39 = vld [vmem:[#allocation63_spill] sm:$0xff] }
 0x340   : > { %v381_v20 = vsel %vm380_vm9, %v376_v41, %v3065_v62  ;;  %v373_v52 = vsel %vm370_vm7, %v368_v49, %v3067_v57  ;;  %v387_v4 = vsel %vm385_vm10, %v382_v6, %v3068_v5  ;;  %v389_v3 = vsel %vm385_vm10, %v384_v45, %v3078_v42  ;;  %v3093_v12 = vld [vmem:[#allocation67_spill] sm:$0xff]  ;;  %v3095_v62 = vld [vmem:[#allocation72_spill] sm:$0xff] }
 0x341   : > { %v386_v36 = vsel %vm385_vm10, %v381_v20, %v3069_v14  ;;  %v378_v43 = vsel %vm375_vm8, %v373_v52, %v3071_v51  ;;  %v392_v50 = vsel %vm390_vm11, %v387_v4, %v3072_v59  ;;  %v394_v29 = vsel %vm390_vm11, %v389_v3, %v3084_v28  ;;  %v3094_v13 = vld [vmem:[#allocation71_spill] sm:$0xff] }
 0x342   : > { %v391_v60 = vsel %vm390_vm11, %v386_v36, %v3073_v56  ;;  %v383_v7 = vsel %vm380_vm9, %v378_v43, %v3075_v31  ;;  %v397_v47 = vsel %vm395_vm12, %v392_v50, %v3076_v63  ;;  %v399_v21 = vsel %vm395_vm12, %v394_v29, %v3088_v25 }
 0x343   : > { %v396_v16 = vsel %vm395_vm12, %v391_v60, %v3077_v46  ;;  %v402_v58 = vsel %vm400_vm13, %v397_v47, %v3079_v24  ;;  %v388_v19 = vsel %vm385_vm10, %v383_v7, %v3081_v1  ;;  %v404_v38 = vsel %vm400_vm13, %v399_v21, %v3090_v40 }
 0x344   : > { %v401_v2 = vsel %vm400_vm13, %v396_v16, %v3080_v18  ;;  %v407_v9 = vsel %vm405_vm14, %v402_v58, %v3082_v11  ;;  %v393_v26 = vsel %vm390_vm11, %v388_v19, %v3085_v48  ;;  %v409_v32 = vsel %vm405_vm14, %v404_v38, %v3092_v27 }
 0x345   : > { %v406_v15 = vsel %vm405_vm14, %v401_v2, %v3083_v37  ;;  %v668_v34 = vsel %vm666_vm15, %v407_v9, %v3086_v35  ;;  %v398_v23 = vsel %vm395_vm12, %v393_v26, %v3089_v22  ;;  %v670_v6 = vsel %vm666_vm15, %v409_v32, %v3094_v13 }
 0x346   : > { %v667_v54 = vsel %vm666_vm15, %v406_v15, %v3087_v10  ;;  %v403_v41 = vsel %vm400_vm13, %v398_v23, %v3091_v39 }
 0x347   : > { %v408_v49 = vsel %vm405_vm14, %v403_v41, %v3093_v12 }
 0x348   : > { %v669_v20 = vsel %vm666_vm15, %v408_v49, %v3095_v62 }
 0x3ac   : > { %v1196_v8 = vpop.permute.xlu1 %1195 }
 0x3ad   : > { %v1194_v55 = vpop.permute.xlu0 %1193  ;;  %v1207_v33 = vsel %vm1205_vm0, %v668_v34, %v1196_v8 }
 0x3ae   : > { %v1206_v44 = vsel %vm1205_vm0, %v667_v54, %v1194_v55  ;;  %1212 = vst.msk [vmem:[%s135_s25 + $0x8] sm:$0xff] %vm1210_vm1, %v1207_v33 }
 0x3af   : > { %1211 = vst.msk [vmem:[%s135_s25] sm:$0xff] %vm1210_vm1, %v1206_v44 }
 0x3b0   : > { %v1200_v53 = vpop.permute.xlu1 %1199 }
 0x3b1   : > { %v1198_v30 = vpop.permute.xlu0 %1197  ;;  %v1209_v57 = vsel %vm1205_vm0, %v670_v6, %v1200_v53 }
 0x3b2   : > { %v1208_v52 = vsel %vm1205_vm0, %v669_v20, %v1198_v30  ;;  %1214 = vst.msk [vmem:[%s135_s25 + $0x18] sm:$0xff] %vm1210_vm1, %v1209_v57 }
 0x3b3   : > { %1213 = vst.msk [vmem:[%s135_s25 + $0x10] sm:$0xff] %vm1210_vm1, %v1208_v52 }
 0x3b4   : > { %1449 = shalt.err (!%p1446_p2)
}
 0x3b5   : > { %s1450_s14 = scalar_lea.hbm %s2864_s29, 512  ;;  %s1454_s21 = scalar_lea.hbm %s2914_s1, 1024 }
 0x3b6   : > { %p1451_p4 = scmp.ne.s32.totalorder %s2864_s29, %s1450_s14  ;;  %p1455_p9 = scmp.lt.u32.totalorder %s2864_s29, %s2914_s1 }
 0x3b7   : > { %p1456_p1 = scmp.lt.u32.totalorder %s1454_s21, %s1450_s14  ;;  %p1458_p6 = scmp.lt.u32.totalorder %s1450_s14, %s2864_s29 }
 0x3b8   : > { %p1452_p5 = pnand %p1451_p4, %p3096_p11 }
 0x3b9   : > { %p1457_p3 = por %p1456_p1, %p1455_p9 }
 0x3ba   : > { %p1453_p7 = pneg %p1452_p5 }
 0x3bb   : > { %p1459_p12 = por %p1458_p6, %p1457_p3 }
 0x3bd   : > { %p1460_p13 = pnand %p1459_p12, %p1453_p7 }
 0x3bf   : > { %1463 = shalt.err (!%p1460_p13)
}
 0x3c0   : > { %s1526_s26 = smov 128  }
 0x3c1   : > { %1337 = dma.vmem_to_hbm [thread:$0]  (%p3096_p11), %s2855_s17, 512, %s2864_s29, %s1216_s2, %s1526_s26, %s1526_s26, %s1514_s4  }
 0x3c2 PF: > { %s1245_s30 = sand.u32 1, %s1490_s6   ;;  %p3097_p8 = scmp.ne.s32.totalorder %s2920_s19, 0 }
 0x3c3   : > { %p3098_p10 = scmp.ge.s32.totalorder %s1502_s9, 2  ;;  %s1246_s25 = scalar_lea.sflag [#allocation4], %s1245_s30 }
 0x3c5   : > { %p1344_p0 = pnand %p3098_p10, %p3097_p8 }
 0x3c7   : > { %1485 = dma.done.wait (!%p1344_p0), %s1246_s25, 512  }
 0x3c8   : > { %1487 = vsyncadd (!%p1344_p0), %s1246_s25, 4294966784  ;;  %p14_p2 = scmp.ge.s32.totalorder %s1562_s12, 4   ;;  %s3099_s6 = smov %s1494_s7 }
 0x3c9   : > { %s3100_s7 = smov %s1498_s8  ;;  %s3101_s8 = smov %s1574_s15 }
 0x3ca   : > { %s3102_s9 = smov %s1562_s12  ;;  %16 = sbr.rel (!%p14_p2) target bundleno = 5 (0x5), region = 72 }
 0x3d1   :  { %1251 = vsyncpa [#allocation3], 1 }
 0x3d2   :  { %1253 = vsyncpa [#allocation3 + $0x1], 1 }
 0x3d3   :  { %1254 = vsyncpa [#allocation4], 1 }
 0x3d4   :  { %1256 = vsyncpa [#allocation4 + $0x1], 1 }

</bundles_post_ra>
